<compile_context>
chip_gen: v7x
topology: tpu7x:2x2x1
jax: 0.10.0
libtpu: 0.0.40
codegen_flags: <defaults>
</compile_context>

<pallas_src>
import jax
import jax.numpy as jnp
from jax.experimental import pallas as pl
from jax.experimental.pallas import tpu as pltpu


# ----------------------------------------------------------------------------
# Fused forward kernel (one grid step == one image)
# ----------------------------------------------------------------------------
def _mynet_kernel(x_ref,                      # [1,1,28,28] input image block
                  k1_ref, b1_ref,             # conv1: [9,28,280], [1,280]
                  k2_ref, b2_ref,             # conv2: [9,120,240], [1,240]
                  k3_ref, b3_ref,             # conv3: [9,120,240], [1,240]
                  sh1_ref, sw1_ref,           # pool1 selectors [2,14,28], [2,280,140]
                  sh2_ref, sw2_ref,           # pool2 selectors [2,6,12],  [2,240,120]
                  sh3_ref, sw3_ref,           # pool3 selectors [2,3,6],   [2,240,120]
                  wf_ref, fb_ref,             # fc: [3,120,10], [1,10]
                  o_ref,                      # out: [1,1,10]
                  p1_ref, p2_ref, p3_ref, pf_ref):   # VMEM scratch
    f32 = jnp.float32

    def conv(src_ref, k_ref, b_ref, ho, wo, cin):
        # src_ref holds the (padded) input in fused layout [Hin, Win*cin],
        # k_ref[k] is kron(I_wo, w_k) -> one plain 2-D matmul per 3x3 tap.
        acc = None
        for di in range(3):
            for dj in range(3):
                k = di * 3 + dj
                s = src_ref[di:di + ho, dj * cin:(dj + wo) * cin]    # [ho, wo*cin]
                t = jnp.dot(s, k_ref[k], preferred_element_type=f32)  # [ho, wo*cout]
                acc = t if acc is None else acc + t
        return acc + b_ref[...]                                       # + tiled bias

    def pool_relu(y, sh_ref, sw_ref):
        # 2x2 max pool on fused layout via 0/1 selection matmuls, then ReLU.
        rows = jnp.maximum(
            jnp.dot(sh_ref[0], y, preferred_element_type=f32),        # even rows
            jnp.dot(sh_ref[1], y, preferred_element_type=f32))        # odd rows
        cols = jnp.maximum(
            jnp.dot(rows, sw_ref[0], preferred_element_type=f32),     # even cols
            jnp.dot(rows, sw_ref[1], preferred_element_type=f32))     # odd cols
        return jnp.maximum(cols, 0.0)

    # ---- conv1 (1->10, 28x28, pad=1) + pool + relu -> [14, 14*10] ----
    p1_ref[...] = jnp.zeros_like(p1_ref)          # zero-padded border
    p1_ref[1:29, 1:29] = x_ref[0, 0]              # interior = image plane
    a1 = pool_relu(conv(p1_ref, k1_ref, b1_ref, 28, 28, 1), sh1_ref, sw1_ref)

    # ---- conv2 (10->20, 14x14 valid -> 12x12) + pool + relu -> [6, 6*20] ----
    p2_ref[...] = a1
    a2 = pool_relu(conv(p2_ref, k2_ref, b2_ref, 12, 12, 10), sh2_ref, sw2_ref)

    # ---- conv3 (20->40, 6x6, pad=1) + pool + relu -> [3, 3*40] ----
    p3_ref[...] = jnp.zeros_like(p3_ref)
    p3_ref[1:7, 20:140] = a2
    a3 = pool_relu(conv(p3_ref, k3_ref, b3_ref, 6, 6, 20), sh3_ref, sw3_ref)

    # ---- fc (360 -> 10), weights pre-permuted to match torch .view() ----
    pf_ref[...] = a3
    logits = fb_ref[...]                           # [1, 10]
    for h in range(3):
        logits = logits + jnp.dot(pf_ref[h:h + 1, :], wf_ref[h],
                                  preferred_element_type=f32)
    o_ref[0] = logits


# ----------------------------------------------------------------------------
# Host-side one-time weight / constant packing
# ----------------------------------------------------------------------------
def _pack_params(params):
    f32 = jnp.float32

    def conv_pack(w, wo):
        # [Cout,Cin,3,3] -> 9 x kron(I_wo, w_k) : [9, wo*Cin, wo*Cout]
        cout, cin = w.shape[0], w.shape[1]
        wk = jnp.transpose(w, (2, 3, 1, 0)).reshape(9, cin, cout)
        eye = jnp.eye(wo, dtype=f32)
        return jnp.stack([jnp.kron(eye, wk[k]) for k in range(9)])

    def bias_pack(b, wo):
        return jnp.tile(b, wo).reshape(1, -1)      # [1, wo*Cout]

    def pool_pack(ho, wo, c):
        rh = jnp.arange(ho // 2)
        sh = jnp.stack([(jnp.arange(ho)[None, :] == (2 * rh + p)[:, None]).astype(f32)
                        for p in (0, 1)])                              # [2, ho/2, ho]
        ew = [(jnp.arange(wo)[:, None] ==
               (2 * jnp.arange(wo // 2) + p)[None, :]).astype(f32) for p in (0, 1)]
        eye_c = jnp.eye(c, dtype=f32)
        sw = jnp.stack([jnp.kron(e, eye_c) for e in ew])               # [2, wo*c, (wo/2)*c]
        return sh, sw

    sh1, sw1 = pool_pack(28, 28, 10)
    sh2, sw2 = pool_pack(12, 12, 20)
    sh3, sw3 = pool_pack(6, 6, 40)
    # torch fc flatten order is (c, h, w); our layout is rows=h, cols=w*40+c.
    wf = params["fc_w"].reshape(10, 40, 3, 3).transpose(2, 3, 1, 0).reshape(3, 120, 10)
    return [
        conv_pack(params["conv1_w"], 28), bias_pack(params["conv1_b"], 28),
        conv_pack(params["conv2_w"], 12), bias_pack(params["conv2_b"], 12),
        conv_pack(params["conv3_w"], 6),  bias_pack(params["conv3_b"], 6),
        sh1, sw1, sh2, sw2, sh3, sw3,
        wf, params["fc_b"].reshape(1, 10),
    ]


# ----------------------------------------------------------------------------
# Forward pass: single pallas_call, grid over batch
# ----------------------------------------------------------------------------
def mynet_forward(params, x):
    """x: [N, 1, 28, 28] float32 -> logits [N, 10]."""
    n = x.shape[0]
    consts = _pack_params(params)

    def const_spec(a):
        return pl.BlockSpec(a.shape, lambda i, _nd=a.ndim: (0,) * _nd)

    in_specs = [pl.BlockSpec((1, 1, 28, 28), lambda i: (i, 0, 0, 0))]
    in_specs += [const_spec(a) for a in consts]

    out = pl.pallas_call(
        _mynet_kernel,
        out_shape=jax.ShapeDtypeStruct((n, 1, 10), jnp.float32),
        grid=(n,),
        in_specs=in_specs,
        out_specs=pl.BlockSpec((1, 1, 10), lambda i: (i, 0, 0)),
        scratch_shapes=[
            pltpu.VMEM((30, 30), jnp.float32),    # padded conv1 input
            pltpu.VMEM((14, 140), jnp.float32),   # conv2 input  [14, 14*10]
            pltpu.VMEM((8, 160), jnp.float32),    # padded conv3 input [8, 8*20]
            pltpu.VMEM((3, 120), jnp.float32),    # flattened fc input [3, 3*40]
        ],
        compiler_params=pltpu.CompilerParams(
            dimension_semantics=("parallel",)),
    )(x.astype(jnp.float32), *consts)
    return out.reshape(n, 10)


# ----------------------------------------------------------------------------
# Parameter init (matches PyTorch defaults) and pure-JAX reference
# ----------------------------------------------------------------------------
def init_params(key):
    ks = jax.random.split(key, 8)

    def u(k, shape, fan_in):
        bound = 1.0 / jnp.sqrt(float(fan_in))
        return jax.random.uniform(k, shape, jnp.float32, -bound, bound)

    return {
        "conv1_w": u(ks[0], (10, 1, 3, 3), 1 * 9),
        "conv1_b": u(ks[1], (10,), 1 * 9),
        "conv2_w": u(ks[2], (20, 10, 3, 3), 10 * 9),
        "conv2_b": u(ks[3], (20,), 10 * 9),
        "conv3_w": u(ks[4], (40, 20, 3, 3), 20 * 9),
        "conv3_b": u(ks[5], (40,), 20 * 9),
        "fc_w": u(ks[6], (10, 360), 360),   # PyTorch Linear: [out, in]
        "fc_b": u(ks[7], (10,), 360),
    }


def _ref_forward(params, x):
    def conv(x, w, b, pad):
        y = jax.lax.conv_general_dilated(
            x, w, window_strides=(1, 1), padding=[(pad, pad), (pad, pad)],
            dimension_numbers=("NCHW", "OIHW", "NCHW"))
        return y + b.reshape(1, -1, 1, 1)

    def pool_relu(x):
        y = jax.lax.reduce_window(x, -jnp.inf, jax.lax.max,
                                  (1, 1, 2, 2), (1, 1, 2, 2), "VALID")
        return jnp.maximum(y, 0.0)

    n = x.shape[0]
    x = pool_relu(conv(x, params["conv1_w"], params["conv1_b"], 1))
    x = pool_relu(conv(x, params["conv2_w"], params["conv2_b"], 0))
    x = pool_relu(conv(x, params["conv3_w"], params["conv3_b"], 1))
    x = x.reshape(n, -1)
    return x @ params["fc_w"].T + params["fc_b"]


if __name__ == "__main__":
    key = jax.random.PRNGKey(0)
    k_param, k_x = jax.random.split(key)
    params = init_params(k_param)
    # MNIST-style input implied by fc(360 = 40*3*3): N=2, C=1, 28x28.
    x = jax.random.normal(k_x, (2, 1, 28, 28), jnp.float32)

    out = jax.block_until_ready(mynet_forward(params, x))
    ref = jax.block_until_ready(_ref_forward(params, x))

    assert out.shape == (2, 10)
    # Tolerance accounts for default-precision (bf16-pass) MXU matmuls used by
    # both the kernel and the XLA reference.
    assert jnp.allclose(out, ref, rtol=2e-2, atol=2e-2)
    print("KERNEL_OK")
</pallas_src>

<mosaic_0001>
module attributes {stable_mosaic.version = 11 : i64} {
  func.func @_mynet_kernel(%arg0: i32, %arg1: memref<1x1x28x28xf32, #tpu.memory_space<vmem>>, %arg2: memref<9x28x280xf32, #tpu.memory_space<vmem>>, %arg3: memref<1x280xf32, #tpu.memory_space<vmem>>, %arg4: memref<9x120x240xf32, #tpu.memory_space<vmem>>, %arg5: memref<1x240xf32, #tpu.memory_space<vmem>>, %arg6: memref<9x120x240xf32, #tpu.memory_space<vmem>>, %arg7: memref<1x240xf32, #tpu.memory_space<vmem>>, %arg8: memref<2x14x28xf32, #tpu.memory_space<vmem>>, %arg9: memref<2x280x140xf32, #tpu.memory_space<vmem>>, %arg10: memref<2x6x12xf32, #tpu.memory_space<vmem>>, %arg11: memref<2x240x120xf32, #tpu.memory_space<vmem>>, %arg12: memref<2x3x6xf32, #tpu.memory_space<vmem>>, %arg13: memref<2x240x120xf32, #tpu.memory_space<vmem>>, %arg14: memref<3x120x10xf32, #tpu.memory_space<vmem>>, %arg15: memref<1x10xf32, #tpu.memory_space<vmem>>, %arg16: memref<1x1x10xf32, #tpu.memory_space<vmem>>, %arg17: memref<30x30xf32, #tpu.memory_space<vmem>>, %arg18: memref<14x140xf32, #tpu.memory_space<vmem>>, %arg19: memref<8x160xf32, #tpu.memory_space<vmem>>, %arg20: memref<3x120xf32, #tpu.memory_space<vmem>>) attributes {dimension_semantics = [#tpu.dimension_semantics<parallel>], iteration_bounds = array<i64: 2>, scalar_prefetch = 0 : i64, scratch_operands = 4 : i64, tpu.core_type = #tpu.core_type<tc>, window_params = [{transform_indices = @transform_0, window_bounds = array<i64: 1, 1, 28, 28>}, {pipeline_mode = #tpu.pipeline_mode<synchronous>, transform_indices = @transform_1, window_bounds = array<i64: 9, 28, 280>}, {pipeline_mode = #tpu.pipeline_mode<synchronous>, transform_indices = @transform_2, window_bounds = array<i64: 1, 280>}, {pipeline_mode = #tpu.pipeline_mode<synchronous>, transform_indices = @transform_3, window_bounds = array<i64: 9, 120, 240>}, {pipeline_mode = #tpu.pipeline_mode<synchronous>, transform_indices = @transform_4, window_bounds = array<i64: 1, 240>}, {pipeline_mode = #tpu.pipeline_mode<synchronous>, transform_indices = @transform_5, window_bounds = array<i64: 9, 120, 240>}, {pipeline_mode = #tpu.pipeline_mode<synchronous>, transform_indices = @transform_6, window_bounds = array<i64: 1, 240>}, {pipeline_mode = #tpu.pipeline_mode<synchronous>, transform_indices = @transform_7, window_bounds = array<i64: 2, 14, 28>}, {pipeline_mode = #tpu.pipeline_mode<synchronous>, transform_indices = @transform_8, window_bounds = array<i64: 2, 280, 140>}, {pipeline_mode = #tpu.pipeline_mode<synchronous>, transform_indices = @transform_9, window_bounds = array<i64: 2, 6, 12>}, {pipeline_mode = #tpu.pipeline_mode<synchronous>, transform_indices = @transform_10, window_bounds = array<i64: 2, 240, 120>}, {pipeline_mode = #tpu.pipeline_mode<synchronous>, transform_indices = @transform_11, window_bounds = array<i64: 2, 3, 6>}, {pipeline_mode = #tpu.pipeline_mode<synchronous>, transform_indices = @transform_12, window_bounds = array<i64: 2, 240, 120>}, {pipeline_mode = #tpu.pipeline_mode<synchronous>, transform_indices = @transform_13, window_bounds = array<i64: 3, 120, 10>}, {pipeline_mode = #tpu.pipeline_mode<synchronous>, transform_indices = @transform_14, window_bounds = array<i64: 1, 10>}, {transform_indices = @transform_15, window_bounds = array<i64: 1, 1, 10>}]} {
    %cst = arith.constant 0.000000e+00 : f32
    %0 = vector.broadcast %cst : f32 to vector<30x30xf32>
    %c0 = arith.constant 0 : index
    %c0_0 = arith.constant 0 : index
    %1 = vector.load %arg17[%c0, %c0_0] : memref<30x30xf32, #tpu.memory_space<vmem>>, vector<30x30xf32>
    tpu.vector_store %arg17[%c0, %c0_0], %0 {strides = array<i32>} : memref<30x30xf32, #tpu.memory_space<vmem>>, vector<30x30xf32>,
    %c0_1 = arith.constant 0 : index
    %c0_2 = arith.constant 0 : index
    %c0_3 = arith.constant 0 : index
    %c0_4 = arith.constant 0 : index
    %2 = vector.load %arg1[%c0_1, %c0_2, %c0_3, %c0_4] : memref<1x1x28x28xf32, #tpu.memory_space<vmem>>, vector<1x1x28x28xf32>
    %3 = vector.shape_cast %2 : vector<1x1x28x28xf32> to vector<28x28xf32>
    %c1 = arith.constant 1 : index
    %c1_5 = arith.constant 1 : index
    %4 = vector.load %arg17[%c1, %c1_5] : memref<30x30xf32, #tpu.memory_space<vmem>>, vector<28x28xf32>
    tpu.vector_store %arg17[%c1, %c1_5], %3 {strides = array<i32>} : memref<30x30xf32, #tpu.memory_space<vmem>>, vector<28x28xf32>,
    %c0_6 = arith.constant 0 : index
    %c0_7 = arith.constant 0 : index
    %5 = vector.load %arg17[%c0_6, %c0_7] : memref<30x30xf32, #tpu.memory_space<vmem>>, vector<28x28xf32>
    %c0_8 = arith.constant 0 : index
    %c0_9 = arith.constant 0 : index
    %c0_10 = arith.constant 0 : index
    %6 = vector.load %arg2[%c0_8, %c0_9, %c0_10] : memref<9x28x280xf32, #tpu.memory_space<vmem>>, vector<1x28x280xf32>
    %7 = vector.shape_cast %6 : vector<1x28x280xf32> to vector<28x280xf32>
    %cst_11 = arith.constant dense<0.000000e+00> : vector<28x280xf32>
    %8 = tpu.matmul %5, %7, %cst_11 {dimension_numbers = #tpu.dot_dimension_numbers<[1], [0], [0], [1], [0, 0, 1, 1], [], []>} : vector<28x28xf32>, vector<28x280xf32>, vector<28x280xf32> -> vector<28x280xf32>
    %c0_12 = arith.constant 0 : index
    %c1_13 = arith.constant 1 : index
    %9 = vector.load %arg17[%c0_12, %c1_13] : memref<30x30xf32, #tpu.memory_space<vmem>>, vector<28x28xf32>
    %c1_14 = arith.constant 1 : index
    %c0_15 = arith.constant 0 : index
    %c0_16 = arith.constant 0 : index
    %10 = vector.load %arg2[%c1_14, %c0_15, %c0_16] : memref<9x28x280xf32, #tpu.memory_space<vmem>>, vector<1x28x280xf32>
    %11 = vector.shape_cast %10 : vector<1x28x280xf32> to vector<28x280xf32>
    %cst_17 = arith.constant dense<0.000000e+00> : vector<28x280xf32>
    %12 = tpu.matmul %9, %11, %cst_17 {dimension_numbers = #tpu.dot_dimension_numbers<[1], [0], [0], [1], [0, 0, 1, 1], [], []>} : vector<28x28xf32>, vector<28x280xf32>, vector<28x280xf32> -> vector<28x280xf32>
    %13 = arith.addf %8, %12 : vector<28x280xf32>
    %c0_18 = arith.constant 0 : index
    %c2 = arith.constant 2 : index
    %14 = vector.load %arg17[%c0_18, %c2] : memref<30x30xf32, #tpu.memory_space<vmem>>, vector<28x28xf32>
    %c2_19 = arith.constant 2 : index
    %c0_20 = arith.constant 0 : index
    %c0_21 = arith.constant 0 : index
    %15 = vector.load %arg2[%c2_19, %c0_20, %c0_21] : memref<9x28x280xf32, #tpu.memory_space<vmem>>, vector<1x28x280xf32>
    %16 = vector.shape_cast %15 : vector<1x28x280xf32> to vector<28x280xf32>
    %cst_22 = arith.constant dense<0.000000e+00> : vector<28x280xf32>
    %17 = tpu.matmul %14, %16, %cst_22 {dimension_numbers = #tpu.dot_dimension_numbers<[1], [0], [0], [1], [0, 0, 1, 1], [], []>} : vector<28x28xf32>, vector<28x280xf32>, vector<28x280xf32> -> vector<28x280xf32>
    %18 = arith.addf %13, %17 : vector<28x280xf32>
    %c1_23 = arith.constant 1 : index
    %c0_24 = arith.constant 0 : index
    %19 = vector.load %arg17[%c1_23, %c0_24] : memref<30x30xf32, #tpu.memory_space<vmem>>, vector<28x28xf32>
    %c3 = arith.constant 3 : index
    %c0_25 = arith.constant 0 : index
    %c0_26 = arith.constant 0 : index
    %20 = vector.load %arg2[%c3, %c0_25, %c0_26] : memref<9x28x280xf32, #tpu.memory_space<vmem>>, vector<1x28x280xf32>
    %21 = vector.shape_cast %20 : vector<1x28x280xf32> to vector<28x280xf32>
    %cst_27 = arith.constant dense<0.000000e+00> : vector<28x280xf32>
    %22 = tpu.matmul %19, %21, %cst_27 {dimension_numbers = #tpu.dot_dimension_numbers<[1], [0], [0], [1], [0, 0, 1, 1], [], []>} : vector<28x28xf32>, vector<28x280xf32>, vector<28x280xf32> -> vector<28x280xf32>
    %23 = arith.addf %18, %22 : vector<28x280xf32>
    %c1_28 = arith.constant 1 : index
    %c1_29 = arith.constant 1 : index
    %24 = vector.load %arg17[%c1_28, %c1_29] : memref<30x30xf32, #tpu.memory_space<vmem>>, vector<28x28xf32>
    %c4 = arith.constant 4 : index
    %c0_30 = arith.constant 0 : index
    %c0_31 = arith.constant 0 : index
    %25 = vector.load %arg2[%c4, %c0_30, %c0_31] : memref<9x28x280xf32, #tpu.memory_space<vmem>>, vector<1x28x280xf32>
    %26 = vector.shape_cast %25 : vector<1x28x280xf32> to vector<28x280xf32>
    %cst_32 = arith.constant dense<0.000000e+00> : vector<28x280xf32>
    %27 = tpu.matmul %24, %26, %cst_32 {dimension_numbers = #tpu.dot_dimension_numbers<[1], [0], [0], [1], [0, 0, 1, 1], [], []>} : vector<28x28xf32>, vector<28x280xf32>, vector<28x280xf32> -> vector<28x280xf32>
    %28 = arith.addf %23, %27 : vector<28x280xf32>
    %c1_33 = arith.constant 1 : index
    %c2_34 = arith.constant 2 : index
    %29 = vector.load %arg17[%c1_33, %c2_34] : memref<30x30xf32, #tpu.memory_space<vmem>>, vector<28x28xf32>
    %c5 = arith.constant 5 : index
    %c0_35 = arith.constant 0 : index
    %c0_36 = arith.constant 0 : index
    %30 = vector.load %arg2[%c5, %c0_35, %c0_36] : memref<9x28x280xf32, #tpu.memory_space<vmem>>, vector<1x28x280xf32>
    %31 = vector.shape_cast %30 : vector<1x28x280xf32> to vector<28x280xf32>
    %cst_37 = arith.constant dense<0.000000e+00> : vector<28x280xf32>
    %32 = tpu.matmul %29, %31, %cst_37 {dimension_numbers = #tpu.dot_dimension_numbers<[1], [0], [0], [1], [0, 0, 1, 1], [], []>} : vector<28x28xf32>, vector<28x280xf32>, vector<28x280xf32> -> vector<28x280xf32>
    %33 = arith.addf %28, %32 : vector<28x280xf32>
    %c2_38 = arith.constant 2 : index
    %c0_39 = arith.constant 0 : index
    %34 = vector.load %arg17[%c2_38, %c0_39] : memref<30x30xf32, #tpu.memory_space<vmem>>, vector<28x28xf32>
    %c6 = arith.constant 6 : index
    %c0_40 = arith.constant 0 : index
    %c0_41 = arith.constant 0 : index
    %35 = vector.load %arg2[%c6, %c0_40, %c0_41] : memref<9x28x280xf32, #tpu.memory_space<vmem>>, vector<1x28x280xf32>
    %36 = vector.shape_cast %35 : vector<1x28x280xf32> to vector<28x280xf32>
    %cst_42 = arith.constant dense<0.000000e+00> : vector<28x280xf32>
    %37 = tpu.matmul %34, %36, %cst_42 {dimension_numbers = #tpu.dot_dimension_numbers<[1], [0], [0], [1], [0, 0, 1, 1], [], []>} : vector<28x28xf32>, vector<28x280xf32>, vector<28x280xf32> -> vector<28x280xf32>
    %38 = arith.addf %33, %37 : vector<28x280xf32>
    %c2_43 = arith.constant 2 : index
    %c1_44 = arith.constant 1 : index
    %39 = vector.load %arg17[%c2_43, %c1_44] : memref<30x30xf32, #tpu.memory_space<vmem>>, vector<28x28xf32>
    %c7 = arith.constant 7 : index
    %c0_45 = arith.constant 0 : index
    %c0_46 = arith.constant 0 : index
    %40 = vector.load %arg2[%c7, %c0_45, %c0_46] : memref<9x28x280xf32, #tpu.memory_space<vmem>>, vector<1x28x280xf32>
    %41 = vector.shape_cast %40 : vector<1x28x280xf32> to vector<28x280xf32>
    %cst_47 = arith.constant dense<0.000000e+00> : vector<28x280xf32>
    %42 = tpu.matmul %39, %41, %cst_47 {dimension_numbers = #tpu.dot_dimension_numbers<[1], [0], [0], [1], [0, 0, 1, 1], [], []>} : vector<28x28xf32>, vector<28x280xf32>, vector<28x280xf32> -> vector<28x280xf32>
    %43 = arith.addf %38, %42 : vector<28x280xf32>
    %c2_48 = arith.constant 2 : index
    %c2_49 = arith.constant 2 : index
    %44 = vector.load %arg17[%c2_48, %c2_49] : memref<30x30xf32, #tpu.memory_space<vmem>>, vector<28x28xf32>
    %c8 = arith.constant 8 : index
    %c0_50 = arith.constant 0 : index
    %c0_51 = arith.constant 0 : index
    %45 = vector.load %arg2[%c8, %c0_50, %c0_51] : memref<9x28x280xf32, #tpu.memory_space<vmem>>, vector<1x28x280xf32>
    %46 = vector.shape_cast %45 : vector<1x28x280xf32> to vector<28x280xf32>
    %cst_52 = arith.constant dense<0.000000e+00> : vector<28x280xf32>
    %47 = tpu.matmul %44, %46, %cst_52 {dimension_numbers = #tpu.dot_dimension_numbers<[1], [0], [0], [1], [0, 0, 1, 1], [], []>} : vector<28x28xf32>, vector<28x280xf32>, vector<28x280xf32> -> vector<28x280xf32>
    %48 = arith.addf %43, %47 : vector<28x280xf32>
    %c0_53 = arith.constant 0 : index
    %c0_54 = arith.constant 0 : index
    %49 = vector.load %arg3[%c0_53, %c0_54] : memref<1x280xf32, #tpu.memory_space<vmem>>, vector<1x280xf32>
    %50 = vector.broadcast %49 : vector<1x280xf32> to vector<28x280xf32>
    %51 = arith.addf %48, %50 : vector<28x280xf32>
    %c0_55 = arith.constant 0 : index
    %c0_56 = arith.constant 0 : index
    %c0_57 = arith.constant 0 : index
    %52 = vector.load %arg8[%c0_55, %c0_56, %c0_57] : memref<2x14x28xf32, #tpu.memory_space<vmem>>, vector<1x14x28xf32>
    %53 = vector.shape_cast %52 : vector<1x14x28xf32> to vector<14x28xf32>
    %cst_58 = arith.constant dense<0.000000e+00> : vector<14x280xf32>
    %54 = tpu.matmul %53, %51, %cst_58 {dimension_numbers = #tpu.dot_dimension_numbers<[1], [0], [0], [1], [0, 0, 1, 1], [], []>} : vector<14x28xf32>, vector<28x280xf32>, vector<14x280xf32> -> vector<14x280xf32>
    %c1_59 = arith.constant 1 : index
    %c0_60 = arith.constant 0 : index
    %c0_61 = arith.constant 0 : index
    %55 = vector.load %arg8[%c1_59, %c0_60, %c0_61] : memref<2x14x28xf32, #tpu.memory_space<vmem>>, vector<1x14x28xf32>
    %56 = vector.shape_cast %55 : vector<1x14x28xf32> to vector<14x28xf32>
    %cst_62 = arith.constant dense<0.000000e+00> : vector<14x280xf32>
    %57 = tpu.matmul %56, %51, %cst_62 {dimension_numbers = #tpu.dot_dimension_numbers<[1], [0], [0], [1], [0, 0, 1, 1], [], []>} : vector<14x28xf32>, vector<28x280xf32>, vector<14x280xf32> -> vector<14x280xf32>
    %58 = arith.maximumf %54, %57 : vector<14x280xf32>
    %c0_63 = arith.constant 0 : index
    %c0_64 = arith.constant 0 : index
    %c0_65 = arith.constant 0 : index
    %59 = vector.load %arg9[%c0_63, %c0_64, %c0_65] : memref<2x280x140xf32, #tpu.memory_space<vmem>>, vector<1x280x140xf32>
    %60 = vector.shape_cast %59 : vector<1x280x140xf32> to vector<280x140xf32>
    %cst_66 = arith.constant dense<0.000000e+00> : vector<14x140xf32>
    %61 = tpu.matmul %58, %60, %cst_66 {dimension_numbers = #tpu.dot_dimension_numbers<[1], [0], [0], [1], [0, 0, 1, 1], [], []>} : vector<14x280xf32>, vector<280x140xf32>, vector<14x140xf32> -> vector<14x140xf32>
    %c1_67 = arith.constant 1 : index
    %c0_68 = arith.constant 0 : index
    %c0_69 = arith.constant 0 : index
    %62 = vector.load %arg9[%c1_67, %c0_68, %c0_69] : memref<2x280x140xf32, #tpu.memory_space<vmem>>, vector<1x280x140xf32>
    %63 = vector.shape_cast %62 : vector<1x280x140xf32> to vector<280x140xf32>
    %cst_70 = arith.constant dense<0.000000e+00> : vector<14x140xf32>
    %64 = tpu.matmul %58, %63, %cst_70 {dimension_numbers = #tpu.dot_dimension_numbers<[1], [0], [0], [1], [0, 0, 1, 1], [], []>} : vector<14x280xf32>, vector<280x140xf32>, vector<14x140xf32> -> vector<14x140xf32>
    %65 = arith.maximumf %61, %64 : vector<14x140xf32>
    %cst_71 = arith.constant 0.000000e+00 : f32
    %66 = vector.broadcast %cst_71 : f32 to vector<14x140xf32>
    %67 = arith.maximumf %65, %66 : vector<14x140xf32>
    %c0_72 = arith.constant 0 : index
    %c0_73 = arith.constant 0 : index
    %68 = vector.load %arg18[%c0_72, %c0_73] : memref<14x140xf32, #tpu.memory_space<vmem>>, vector<14x140xf32>
    tpu.vector_store %arg18[%c0_72, %c0_73], %67 {strides = array<i32>} : memref<14x140xf32, #tpu.memory_space<vmem>>, vector<14x140xf32>,
    %c0_74 = arith.constant 0 : index
    %c0_75 = arith.constant 0 : index
    %69 = vector.load %arg18[%c0_74, %c0_75] : memref<14x140xf32, #tpu.memory_space<vmem>>, vector<12x120xf32>
    %c0_76 = arith.constant 0 : index
    %c0_77 = arith.constant 0 : index
    %c0_78 = arith.constant 0 : index
    %70 = vector.load %arg4[%c0_76, %c0_77, %c0_78] : memref<9x120x240xf32, #tpu.memory_space<vmem>>, vector<1x120x240xf32>
    %71 = vector.shape_cast %70 : vector<1x120x240xf32> to vector<120x240xf32>
    %cst_79 = arith.constant dense<0.000000e+00> : vector<12x240xf32>
    %72 = tpu.matmul %69, %71, %cst_79 {dimension_numbers = #tpu.dot_dimension_numbers<[1], [0], [0], [1], [0, 0, 1, 1], [], []>} : vector<12x120xf32>, vector<120x240xf32>, vector<12x240xf32> -> vector<12x240xf32>
    %c0_80 = arith.constant 0 : index
    %c10 = arith.constant 10 : index
    %73 = vector.load %arg18[%c0_80, %c10] : memref<14x140xf32, #tpu.memory_space<vmem>>, vector<12x120xf32>
    %c1_81 = arith.constant 1 : index
    %c0_82 = arith.constant 0 : index
    %c0_83 = arith.constant 0 : index
    %74 = vector.load %arg4[%c1_81, %c0_82, %c0_83] : memref<9x120x240xf32, #tpu.memory_space<vmem>>, vector<1x120x240xf32>
    %75 = vector.shape_cast %74 : vector<1x120x240xf32> to vector<120x240xf32>
    %cst_84 = arith.constant dense<0.000000e+00> : vector<12x240xf32>
    %76 = tpu.matmul %73, %75, %cst_84 {dimension_numbers = #tpu.dot_dimension_numbers<[1], [0], [0], [1], [0, 0, 1, 1], [], []>} : vector<12x120xf32>, vector<120x240xf32>, vector<12x240xf32> -> vector<12x240xf32>
    %77 = arith.addf %72, %76 : vector<12x240xf32>
    %c0_85 = arith.constant 0 : index
    %c20 = arith.constant 20 : index
    %78 = vector.load %arg18[%c0_85, %c20] : memref<14x140xf32, #tpu.memory_space<vmem>>, vector<12x120xf32>
    %c2_86 = arith.constant 2 : index
    %c0_87 = arith.constant 0 : index
    %c0_88 = arith.constant 0 : index
    %79 = vector.load %arg4[%c2_86, %c0_87, %c0_88] : memref<9x120x240xf32, #tpu.memory_space<vmem>>, vector<1x120x240xf32>
    %80 = vector.shape_cast %79 : vector<1x120x240xf32> to vector<120x240xf32>
    %cst_89 = arith.constant dense<0.000000e+00> : vector<12x240xf32>
    %81 = tpu.matmul %78, %80, %cst_89 {dimension_numbers = #tpu.dot_dimension_numbers<[1], [0], [0], [1], [0, 0, 1, 1], [], []>} : vector<12x120xf32>, vector<120x240xf32>, vector<12x240xf32> -> vector<12x240xf32>
    %82 = arith.addf %77, %81 : vector<12x240xf32>
    %c1_90 = arith.constant 1 : index
    %c0_91 = arith.constant 0 : index
    %83 = vector.load %arg18[%c1_90, %c0_91] : memref<14x140xf32, #tpu.memory_space<vmem>>, vector<12x120xf32>
    %c3_92 = arith.constant 3 : index
    %c0_93 = arith.constant 0 : index
    %c0_94 = arith.constant 0 : index
    %84 = vector.load %arg4[%c3_92, %c0_93, %c0_94] : memref<9x120x240xf32, #tpu.memory_space<vmem>>, vector<1x120x240xf32>
    %85 = vector.shape_cast %84 : vector<1x120x240xf32> to vector<120x240xf32>
    %cst_95 = arith.constant dense<0.000000e+00> : vector<12x240xf32>
    %86 = tpu.matmul %83, %85, %cst_95 {dimension_numbers = #tpu.dot_dimension_numbers<[1], [0], [0], [1], [0, 0, 1, 1], [], []>} : vector<12x120xf32>, vector<120x240xf32>, vector<12x240xf32> -> vector<12x240xf32>
    %87 = arith.addf %82, %86 : vector<12x240xf32>
    %c1_96 = arith.constant 1 : index
    %c10_97 = arith.constant 10 : index
    %88 = vector.load %arg18[%c1_96, %c10_97] : memref<14x140xf32, #tpu.memory_space<vmem>>, vector<12x120xf32>
    %c4_98 = arith.constant 4 : index
    %c0_99 = arith.constant 0 : index
    %c0_100 = arith.constant 0 : index
    %89 = vector.load %arg4[%c4_98, %c0_99, %c0_100] : memref<9x120x240xf32, #tpu.memory_space<vmem>>, vector<1x120x240xf32>
    %90 = vector.shape_cast %89 : vector<1x120x240xf32> to vector<120x240xf32>
    %cst_101 = arith.constant dense<0.000000e+00> : vector<12x240xf32>
    %91 = tpu.matmul %88, %90, %cst_101 {dimension_numbers = #tpu.dot_dimension_numbers<[1], [0], [0], [1], [0, 0, 1, 1], [], []>} : vector<12x120xf32>, vector<120x240xf32>, vector<12x240xf32> -> vector<12x240xf32>
    %92 = arith.addf %87, %91 : vector<12x240xf32>
    %c1_102 = arith.constant 1 : index
    %c20_103 = arith.constant 20 : index
    %93 = vector.load %arg18[%c1_102, %c20_103] : memref<14x140xf32, #tpu.memory_space<vmem>>, vector<12x120xf32>
    %c5_104 = arith.constant 5 : index
    %c0_105 = arith.constant 0 : index
    %c0_106 = arith.constant 0 : index
    %94 = vector.load %arg4[%c5_104, %c0_105, %c0_106] : memref<9x120x240xf32, #tpu.memory_space<vmem>>, vector<1x120x240xf32>
    %95 = vector.shape_cast %94 : vector<1x120x240xf32> to vector<120x240xf32>
    %cst_107 = arith.constant dense<0.000000e+00> : vector<12x240xf32>
    %96 = tpu.matmul %93, %95, %cst_107 {dimension_numbers = #tpu.dot_dimension_numbers<[1], [0], [0], [1], [0, 0, 1, 1], [], []>} : vector<12x120xf32>, vector<120x240xf32>, vector<12x240xf32> -> vector<12x240xf32>
    %97 = arith.addf %92, %96 : vector<12x240xf32>
    %c2_108 = arith.constant 2 : index
    %c0_109 = arith.constant 0 : index
    %98 = vector.load %arg18[%c2_108, %c0_109] : memref<14x140xf32, #tpu.memory_space<vmem>>, vector<12x120xf32>
    %c6_110 = arith.constant 6 : index
    %c0_111 = arith.constant 0 : index
    %c0_112 = arith.constant 0 : index
    %99 = vector.load %arg4[%c6_110, %c0_111, %c0_112] : memref<9x120x240xf32, #tpu.memory_space<vmem>>, vector<1x120x240xf32>
    %100 = vector.shape_cast %99 : vector<1x120x240xf32> to vector<120x240xf32>
    %cst_113 = arith.constant dense<0.000000e+00> : vector<12x240xf32>
    %101 = tpu.matmul %98, %100, %cst_113 {dimension_numbers = #tpu.dot_dimension_numbers<[1], [0], [0], [1], [0, 0, 1, 1], [], []>} : vector<12x120xf32>, vector<120x240xf32>, vector<12x240xf32> -> vector<12x240xf32>
    %102 = arith.addf %97, %101 : vector<12x240xf32>
    %c2_114 = arith.constant 2 : index
    %c10_115 = arith.constant 10 : index
    %103 = vector.load %arg18[%c2_114, %c10_115] : memref<14x140xf32, #tpu.memory_space<vmem>>, vector<12x120xf32>
    %c7_116 = arith.constant 7 : index
    %c0_117 = arith.constant 0 : index
    %c0_118 = arith.constant 0 : index
    %104 = vector.load %arg4[%c7_116, %c0_117, %c0_118] : memref<9x120x240xf32, #tpu.memory_space<vmem>>, vector<1x120x240xf32>
    %105 = vector.shape_cast %104 : vector<1x120x240xf32> to vector<120x240xf32>
    %cst_119 = arith.constant dense<0.000000e+00> : vector<12x240xf32>
    %106 = tpu.matmul %103, %105, %cst_119 {dimension_numbers = #tpu.dot_dimension_numbers<[1], [0], [0], [1], [0, 0, 1, 1], [], []>} : vector<12x120xf32>, vector<120x240xf32>, vector<12x240xf32> -> vector<12x240xf32>
    %107 = arith.addf %102, %106 : vector<12x240xf32>
    %c2_120 = arith.constant 2 : index
    %c20_121 = arith.constant 20 : index
    %108 = vector.load %arg18[%c2_120, %c20_121] : memref<14x140xf32, #tpu.memory_space<vmem>>, vector<12x120xf32>
    %c8_122 = arith.constant 8 : index
    %c0_123 = arith.constant 0 : index
    %c0_124 = arith.constant 0 : index
    %109 = vector.load %arg4[%c8_122, %c0_123, %c0_124] : memref<9x120x240xf32, #tpu.memory_space<vmem>>, vector<1x120x240xf32>
    %110 = vector.shape_cast %109 : vector<1x120x240xf32> to vector<120x240xf32>
    %cst_125 = arith.constant dense<0.000000e+00> : vector<12x240xf32>
    %111 = tpu.matmul %108, %110, %cst_125 {dimension_numbers = #tpu.dot_dimension_numbers<[1], [0], [0], [1], [0, 0, 1, 1], [], []>} : vector<12x120xf32>, vector<120x240xf32>, vector<12x240xf32> -> vector<12x240xf32>
    %112 = arith.addf %107, %111 : vector<12x240xf32>
    %c0_126 = arith.constant 0 : index
    %c0_127 = arith.constant 0 : index
    %113 = vector.load %arg5[%c0_126, %c0_127] : memref<1x240xf32, #tpu.memory_space<vmem>>, vector<1x240xf32>
    %114 = vector.broadcast %113 : vector<1x240xf32> to vector<12x240xf32>
    %115 = arith.addf %112, %114 : vector<12x240xf32>
    %c0_128 = arith.constant 0 : index
    %c0_129 = arith.constant 0 : index
    %c0_130 = arith.constant 0 : index
    %116 = vector.load %arg10[%c0_128, %c0_129, %c0_130] : memref<2x6x12xf32, #tpu.memory_space<vmem>>, vector<1x6x12xf32>
    %117 = vector.shape_cast %116 : vector<1x6x12xf32> to vector<6x12xf32>
    %cst_131 = arith.constant dense<0.000000e+00> : vector<6x240xf32>
    %118 = tpu.matmul %117, %115, %cst_131 {dimension_numbers = #tpu.dot_dimension_numbers<[1], [0], [0], [1], [0, 0, 1, 1], [], []>} : vector<6x12xf32>, vector<12x240xf32>, vector<6x240xf32> -> vector<6x240xf32>
    %c1_132 = arith.constant 1 : index
    %c0_133 = arith.constant 0 : index
    %c0_134 = arith.constant 0 : index
    %119 = vector.load %arg10[%c1_132, %c0_133, %c0_134] : memref<2x6x12xf32, #tpu.memory_space<vmem>>, vector<1x6x12xf32>
    %120 = vector.shape_cast %119 : vector<1x6x12xf32> to vector<6x12xf32>
    %cst_135 = arith.constant dense<0.000000e+00> : vector<6x240xf32>
    %121 = tpu.matmul %120, %115, %cst_135 {dimension_numbers = #tpu.dot_dimension_numbers<[1], [0], [0], [1], [0, 0, 1, 1], [], []>} : vector<6x12xf32>, vector<12x240xf32>, vector<6x240xf32> -> vector<6x240xf32>
    %122 = arith.maximumf %118, %121 : vector<6x240xf32>
    %c0_136 = arith.constant 0 : index
    %c0_137 = arith.constant 0 : index
    %c0_138 = arith.constant 0 : index
    %123 = vector.load %arg11[%c0_136, %c0_137, %c0_138] : memref<2x240x120xf32, #tpu.memory_space<vmem>>, vector<1x240x120xf32>
    %124 = vector.shape_cast %123 : vector<1x240x120xf32> to vector<240x120xf32>
    %cst_139 = arith.constant dense<0.000000e+00> : vector<6x120xf32>
    %125 = tpu.matmul %122, %124, %cst_139 {dimension_numbers = #tpu.dot_dimension_numbers<[1], [0], [0], [1], [0, 0, 1, 1], [], []>} : vector<6x240xf32>, vector<240x120xf32>, vector<6x120xf32> -> vector<6x120xf32>
    %c1_140 = arith.constant 1 : index
    %c0_141 = arith.constant 0 : index
    %c0_142 = arith.constant 0 : index
    %126 = vector.load %arg11[%c1_140, %c0_141, %c0_142] : memref<2x240x120xf32, #tpu.memory_space<vmem>>, vector<1x240x120xf32>
    %127 = vector.shape_cast %126 : vector<1x240x120xf32> to vector<240x120xf32>
    %cst_143 = arith.constant dense<0.000000e+00> : vector<6x120xf32>
    %128 = tpu.matmul %122, %127, %cst_143 {dimension_numbers = #tpu.dot_dimension_numbers<[1], [0], [0], [1], [0, 0, 1, 1], [], []>} : vector<6x240xf32>, vector<240x120xf32>, vector<6x120xf32> -> vector<6x120xf32>
    %129 = arith.maximumf %125, %128 : vector<6x120xf32>
    %cst_144 = arith.constant 0.000000e+00 : f32
    %130 = vector.broadcast %cst_144 : f32 to vector<6x120xf32>
    %131 = arith.maximumf %129, %130 : vector<6x120xf32>
    %cst_145 = arith.constant 0.000000e+00 : f32
    %132 = vector.broadcast %cst_145 : f32 to vector<8x160xf32>
    %c0_146 = arith.constant 0 : index
    %c0_147 = arith.constant 0 : index
    %133 = vector.load %arg19[%c0_146, %c0_147] : memref<8x160xf32, #tpu.memory_space<vmem>>, vector<8x160xf32>
    tpu.vector_store %arg19[%c0_146, %c0_147], %132 {strides = array<i32>} : memref<8x160xf32, #tpu.memory_space<vmem>>, vector<8x160xf32>,
    %c1_148 = arith.constant 1 : index
    %c20_149 = arith.constant 20 : index
    %134 = vector.load %arg19[%c1_148, %c20_149] : memref<8x160xf32, #tpu.memory_space<vmem>>, vector<6x120xf32>
    tpu.vector_store %arg19[%c1_148, %c20_149], %131 {strides = array<i32>} : memref<8x160xf32, #tpu.memory_space<vmem>>, vector<6x120xf32>,
    %c0_150 = arith.constant 0 : index
    %c0_151 = arith.constant 0 : index
    %135 = vector.load %arg19[%c0_150, %c0_151] : memref<8x160xf32, #tpu.memory_space<vmem>>, vector<6x120xf32>
    %c0_152 = arith.constant 0 : index
    %c0_153 = arith.constant 0 : index
    %c0_154 = arith.constant 0 : index
    %136 = vector.load %arg6[%c0_152, %c0_153, %c0_154] : memref<9x120x240xf32, #tpu.memory_space<vmem>>, vector<1x120x240xf32>
    %137 = vector.shape_cast %136 : vector<1x120x240xf32> to vector<120x240xf32>
    %cst_155 = arith.constant dense<0.000000e+00> : vector<6x240xf32>
    %138 = tpu.matmul %135, %137, %cst_155 {dimension_numbers = #tpu.dot_dimension_numbers<[1], [0], [0], [1], [0, 0, 1, 1], [], []>} : vector<6x120xf32>, vector<120x240xf32>, vector<6x240xf32> -> vector<6x240xf32>
    %c0_156 = arith.constant 0 : index
    %c20_157 = arith.constant 20 : index
    %139 = vector.load %arg19[%c0_156, %c20_157] : memref<8x160xf32, #tpu.memory_space<vmem>>, vector<6x120xf32>
    %c1_158 = arith.constant 1 : index
    %c0_159 = arith.constant 0 : index
    %c0_160 = arith.constant 0 : index
    %140 = vector.load %arg6[%c1_158, %c0_159, %c0_160] : memref<9x120x240xf32, #tpu.memory_space<vmem>>, vector<1x120x240xf32>
    %141 = vector.shape_cast %140 : vector<1x120x240xf32> to vector<120x240xf32>
    %cst_161 = arith.constant dense<0.000000e+00> : vector<6x240xf32>
    %142 = tpu.matmul %139, %141, %cst_161 {dimension_numbers = #tpu.dot_dimension_numbers<[1], [0], [0], [1], [0, 0, 1, 1], [], []>} : vector<6x120xf32>, vector<120x240xf32>, vector<6x240xf32> -> vector<6x240xf32>
    %143 = arith.addf %138, %142 : vector<6x240xf32>
    %c0_162 = arith.constant 0 : index
    %c40 = arith.constant 40 : index
    %144 = vector.load %arg19[%c0_162, %c40] : memref<8x160xf32, #tpu.memory_space<vmem>>, vector<6x120xf32>
    %c2_163 = arith.constant 2 : index
    %c0_164 = arith.constant 0 : index
    %c0_165 = arith.constant 0 : index
    %145 = vector.load %arg6[%c2_163, %c0_164, %c0_165] : memref<9x120x240xf32, #tpu.memory_space<vmem>>, vector<1x120x240xf32>
    %146 = vector.shape_cast %145 : vector<1x120x240xf32> to vector<120x240xf32>
    %cst_166 = arith.constant dense<0.000000e+00> : vector<6x240xf32>
    %147 = tpu.matmul %144, %146, %cst_166 {dimension_numbers = #tpu.dot_dimension_numbers<[1], [0], [0], [1], [0, 0, 1, 1], [], []>} : vector<6x120xf32>, vector<120x240xf32>, vector<6x240xf32> -> vector<6x240xf32>
    %148 = arith.addf %143, %147 : vector<6x240xf32>
    %c1_167 = arith.constant 1 : index
    %c0_168 = arith.constant 0 : index
    %149 = vector.load %arg19[%c1_167, %c0_168] : memref<8x160xf32, #tpu.memory_space<vmem>>, vector<6x120xf32>
    %c3_169 = arith.constant 3 : index
    %c0_170 = arith.constant 0 : index
    %c0_171 = arith.constant 0 : index
    %150 = vector.load %arg6[%c3_169, %c0_170, %c0_171] : memref<9x120x240xf32, #tpu.memory_space<vmem>>, vector<1x120x240xf32>
    %151 = vector.shape_cast %150 : vector<1x120x240xf32> to vector<120x240xf32>
    %cst_172 = arith.constant dense<0.000000e+00> : vector<6x240xf32>
    %152 = tpu.matmul %149, %151, %cst_172 {dimension_numbers = #tpu.dot_dimension_numbers<[1], [0], [0], [1], [0, 0, 1, 1], [], []>} : vector<6x120xf32>, vector<120x240xf32>, vector<6x240xf32> -> vector<6x240xf32>
    %153 = arith.addf %148, %152 : vector<6x240xf32>
    %c1_173 = arith.constant 1 : index
    %c20_174 = arith.constant 20 : index
    %154 = vector.load %arg19[%c1_173, %c20_174] : memref<8x160xf32, #tpu.memory_space<vmem>>, vector<6x120xf32>
    %c4_175 = arith.constant 4 : index
    %c0_176 = arith.constant 0 : index
    %c0_177 = arith.constant 0 : index
    %155 = vector.load %arg6[%c4_175, %c0_176, %c0_177] : memref<9x120x240xf32, #tpu.memory_space<vmem>>, vector<1x120x240xf32>
    %156 = vector.shape_cast %155 : vector<1x120x240xf32> to vector<120x240xf32>
    %cst_178 = arith.constant dense<0.000000e+00> : vector<6x240xf32>
    %157 = tpu.matmul %154, %156, %cst_178 {dimension_numbers = #tpu.dot_dimension_numbers<[1], [0], [0], [1], [0, 0, 1, 1], [], []>} : vector<6x120xf32>, vector<120x240xf32>, vector<6x240xf32> -> vector<6x240xf32>
    %158 = arith.addf %153, %157 : vector<6x240xf32>
    %c1_179 = arith.constant 1 : index
    %c40_180 = arith.constant 40 : index
    %159 = vector.load %arg19[%c1_179, %c40_180] : memref<8x160xf32, #tpu.memory_space<vmem>>, vector<6x120xf32>
    %c5_181 = arith.constant 5 : index
    %c0_182 = arith.constant 0 : index
    %c0_183 = arith.constant 0 : index
    %160 = vector.load %arg6[%c5_181, %c0_182, %c0_183] : memref<9x120x240xf32, #tpu.memory_space<vmem>>, vector<1x120x240xf32>
    %161 = vector.shape_cast %160 : vector<1x120x240xf32> to vector<120x240xf32>
    %cst_184 = arith.constant dense<0.000000e+00> : vector<6x240xf32>
    %162 = tpu.matmul %159, %161, %cst_184 {dimension_numbers = #tpu.dot_dimension_numbers<[1], [0], [0], [1], [0, 0, 1, 1], [], []>} : vector<6x120xf32>, vector<120x240xf32>, vector<6x240xf32> -> vector<6x240xf32>
    %163 = arith.addf %158, %162 : vector<6x240xf32>
    %c2_185 = arith.constant 2 : index
    %c0_186 = arith.constant 0 : index
    %164 = vector.load %arg19[%c2_185, %c0_186] : memref<8x160xf32, #tpu.memory_space<vmem>>, vector<6x120xf32>
    %c6_187 = arith.constant 6 : index
    %c0_188 = arith.constant 0 : index
    %c0_189 = arith.constant 0 : index
    %165 = vector.load %arg6[%c6_187, %c0_188, %c0_189] : memref<9x120x240xf32, #tpu.memory_space<vmem>>, vector<1x120x240xf32>
    %166 = vector.shape_cast %165 : vector<1x120x240xf32> to vector<120x240xf32>
    %cst_190 = arith.constant dense<0.000000e+00> : vector<6x240xf32>
    %167 = tpu.matmul %164, %166, %cst_190 {dimension_numbers = #tpu.dot_dimension_numbers<[1], [0], [0], [1], [0, 0, 1, 1], [], []>} : vector<6x120xf32>, vector<120x240xf32>, vector<6x240xf32> -> vector<6x240xf32>
    %168 = arith.addf %163, %167 : vector<6x240xf32>
    %c2_191 = arith.constant 2 : index
    %c20_192 = arith.constant 20 : index
    %169 = vector.load %arg19[%c2_191, %c20_192] : memref<8x160xf32, #tpu.memory_space<vmem>>, vector<6x120xf32>
    %c7_193 = arith.constant 7 : index
    %c0_194 = arith.constant 0 : index
    %c0_195 = arith.constant 0 : index
    %170 = vector.load %arg6[%c7_193, %c0_194, %c0_195] : memref<9x120x240xf32, #tpu.memory_space<vmem>>, vector<1x120x240xf32>
    %171 = vector.shape_cast %170 : vector<1x120x240xf32> to vector<120x240xf32>
    %cst_196 = arith.constant dense<0.000000e+00> : vector<6x240xf32>
    %172 = tpu.matmul %169, %171, %cst_196 {dimension_numbers = #tpu.dot_dimension_numbers<[1], [0], [0], [1], [0, 0, 1, 1], [], []>} : vector<6x120xf32>, vector<120x240xf32>, vector<6x240xf32> -> vector<6x240xf32>
    %173 = arith.addf %168, %172 : vector<6x240xf32>
    %c2_197 = arith.constant 2 : index
    %c40_198 = arith.constant 40 : index
    %174 = vector.load %arg19[%c2_197, %c40_198] : memref<8x160xf32, #tpu.memory_space<vmem>>, vector<6x120xf32>
    %c8_199 = arith.constant 8 : index
    %c0_200 = arith.constant 0 : index
    %c0_201 = arith.constant 0 : index
    %175 = vector.load %arg6[%c8_199, %c0_200, %c0_201] : memref<9x120x240xf32, #tpu.memory_space<vmem>>, vector<1x120x240xf32>
    %176 = vector.shape_cast %175 : vector<1x120x240xf32> to vector<120x240xf32>
    %cst_202 = arith.constant dense<0.000000e+00> : vector<6x240xf32>
    %177 = tpu.matmul %174, %176, %cst_202 {dimension_numbers = #tpu.dot_dimension_numbers<[1], [0], [0], [1], [0, 0, 1, 1], [], []>} : vector<6x120xf32>, vector<120x240xf32>, vector<6x240xf32> -> vector<6x240xf32>
    %178 = arith.addf %173, %177 : vector<6x240xf32>
    %c0_203 = arith.constant 0 : index
    %c0_204 = arith.constant 0 : index
    %179 = vector.load %arg7[%c0_203, %c0_204] : memref<1x240xf32, #tpu.memory_space<vmem>>, vector<1x240xf32>
    %180 = vector.broadcast %179 : vector<1x240xf32> to vector<6x240xf32>
    %181 = arith.addf %178, %180 : vector<6x240xf32>
    %c0_205 = arith.constant 0 : index
    %c0_206 = arith.constant 0 : index
    %c0_207 = arith.constant 0 : index
    %182 = vector.load %arg12[%c0_205, %c0_206, %c0_207] : memref<2x3x6xf32, #tpu.memory_space<vmem>>, vector<1x3x6xf32>
    %183 = vector.shape_cast %182 : vector<1x3x6xf32> to vector<3x6xf32>
    %cst_208 = arith.constant dense<0.000000e+00> : vector<3x240xf32>
    %184 = tpu.matmul %183, %181, %cst_208 {dimension_numbers = #tpu.dot_dimension_numbers<[1], [0], [0], [1], [0, 0, 1, 1], [], []>} : vector<3x6xf32>, vector<6x240xf32>, vector<3x240xf32> -> vector<3x240xf32>
    %c1_209 = arith.constant 1 : index
    %c0_210 = arith.constant 0 : index
    %c0_211 = arith.constant 0 : index
    %185 = vector.load %arg12[%c1_209, %c0_210, %c0_211] : memref<2x3x6xf32, #tpu.memory_space<vmem>>, vector<1x3x6xf32>
    %186 = vector.shape_cast %185 : vector<1x3x6xf32> to vector<3x6xf32>
    %cst_212 = arith.constant dense<0.000000e+00> : vector<3x240xf32>
    %187 = tpu.matmul %186, %181, %cst_212 {dimension_numbers = #tpu.dot_dimension_numbers<[1], [0], [0], [1], [0, 0, 1, 1], [], []>} : vector<3x6xf32>, vector<6x240xf32>, vector<3x240xf32> -> vector<3x240xf32>
    %188 = arith.maximumf %184, %187 : vector<3x240xf32>
    %c0_213 = arith.constant 0 : index
    %c0_214 = arith.constant 0 : index
    %c0_215 = arith.constant 0 : index
    %189 = vector.load %arg13[%c0_213, %c0_214, %c0_215] : memref<2x240x120xf32, #tpu.memory_space<vmem>>, vector<1x240x120xf32>
    %190 = vector.shape_cast %189 : vector<1x240x120xf32> to vector<240x120xf32>
    %cst_216 = arith.constant dense<0.000000e+00> : vector<3x120xf32>
    %191 = tpu.matmul %188, %190, %cst_216 {dimension_numbers = #tpu.dot_dimension_numbers<[1], [0], [0], [1], [0, 0, 1, 1], [], []>} : vector<3x240xf32>, vector<240x120xf32>, vector<3x120xf32> -> vector<3x120xf32>
    %c1_217 = arith.constant 1 : index
    %c0_218 = arith.constant 0 : index
    %c0_219 = arith.constant 0 : index
    %192 = vector.load %arg13[%c1_217, %c0_218, %c0_219] : memref<2x240x120xf32, #tpu.memory_space<vmem>>, vector<1x240x120xf32>
    %193 = vector.shape_cast %192 : vector<1x240x120xf32> to vector<240x120xf32>
    %cst_220 = arith.constant dense<0.000000e+00> : vector<3x120xf32>
    %194 = tpu.matmul %188, %193, %cst_220 {dimension_numbers = #tpu.dot_dimension_numbers<[1], [0], [0], [1], [0, 0, 1, 1], [], []>} : vector<3x240xf32>, vector<240x120xf32>, vector<3x120xf32> -> vector<3x120xf32>
    %195 = arith.maximumf %191, %194 : vector<3x120xf32>
    %cst_221 = arith.constant 0.000000e+00 : f32
    %196 = vector.broadcast %cst_221 : f32 to vector<3x120xf32>
    %197 = arith.maximumf %195, %196 : vector<3x120xf32>
    %c0_222 = arith.constant 0 : index
    %c0_223 = arith.constant 0 : index
    %198 = vector.load %arg20[%c0_222, %c0_223] : memref<3x120xf32, #tpu.memory_space<vmem>>, vector<3x120xf32>
    tpu.vector_store %arg20[%c0_222, %c0_223], %197 {strides = array<i32>} : memref<3x120xf32, #tpu.memory_space<vmem>>, vector<3x120xf32>,
    %c0_224 = arith.constant 0 : index
    %c0_225 = arith.constant 0 : index
    %199 = vector.load %arg15[%c0_224, %c0_225] : memref<1x10xf32, #tpu.memory_space<vmem>>, vector<1x10xf32>
    %c0_226 = arith.constant 0 : index
    %c0_227 = arith.constant 0 : index
    %200 = vector.load %arg20[%c0_226, %c0_227] : memref<3x120xf32, #tpu.memory_space<vmem>>, vector<1x120xf32>
    %c0_228 = arith.constant 0 : index
    %c0_229 = arith.constant 0 : index
    %c0_230 = arith.constant 0 : index
    %201 = vector.load %arg14[%c0_228, %c0_229, %c0_230] : memref<3x120x10xf32, #tpu.memory_space<vmem>>, vector<1x120x10xf32>
    %202 = vector.shape_cast %201 : vector<1x120x10xf32> to vector<120x10xf32>
    %cst_231 = arith.constant dense<0.000000e+00> : vector<1x10xf32>
    %203 = tpu.matmul %200, %202, %cst_231 {dimension_numbers = #tpu.dot_dimension_numbers<[1], [0], [0], [1], [0, 0, 1, 1], [], []>} : vector<1x120xf32>, vector<120x10xf32>, vector<1x10xf32> -> vector<1x10xf32>
    %204 = arith.addf %199, %203 : vector<1x10xf32>
    %c1_232 = arith.constant 1 : index
    %c0_233 = arith.constant 0 : index
    %205 = vector.load %arg20[%c1_232, %c0_233] : memref<3x120xf32, #tpu.memory_space<vmem>>, vector<1x120xf32>
    %c1_234 = arith.constant 1 : index
    %c0_235 = arith.constant 0 : index
    %c0_236 = arith.constant 0 : index
    %206 = vector.load %arg14[%c1_234, %c0_235, %c0_236] : memref<3x120x10xf32, #tpu.memory_space<vmem>>, vector<1x120x10xf32>
    %207 = vector.shape_cast %206 : vector<1x120x10xf32> to vector<120x10xf32>
    %cst_237 = arith.constant dense<0.000000e+00> : vector<1x10xf32>
    %208 = tpu.matmul %205, %207, %cst_237 {dimension_numbers = #tpu.dot_dimension_numbers<[1], [0], [0], [1], [0, 0, 1, 1], [], []>} : vector<1x120xf32>, vector<120x10xf32>, vector<1x10xf32> -> vector<1x10xf32>
    %209 = arith.addf %204, %208 : vector<1x10xf32>
    %c2_238 = arith.constant 2 : index
    %c0_239 = arith.constant 0 : index
    %210 = vector.load %arg20[%c2_238, %c0_239] : memref<3x120xf32, #tpu.memory_space<vmem>>, vector<1x120xf32>
    %c2_240 = arith.constant 2 : index
    %c0_241 = arith.constant 0 : index
    %c0_242 = arith.constant 0 : index
    %211 = vector.load %arg14[%c2_240, %c0_241, %c0_242] : memref<3x120x10xf32, #tpu.memory_space<vmem>>, vector<1x120x10xf32>
    %212 = vector.shape_cast %211 : vector<1x120x10xf32> to vector<120x10xf32>
    %cst_243 = arith.constant dense<0.000000e+00> : vector<1x10xf32>
    %213 = tpu.matmul %210, %212, %cst_243 {dimension_numbers = #tpu.dot_dimension_numbers<[1], [0], [0], [1], [0, 0, 1, 1], [], []>} : vector<1x120xf32>, vector<120x10xf32>, vector<1x10xf32> -> vector<1x10xf32>
    %214 = arith.addf %209, %213 : vector<1x10xf32>
    %c0_244 = arith.constant 0 : index
    %c0_245 = arith.constant 0 : index
    %c0_246 = arith.constant 0 : index
    %215 = vector.load %arg16[%c0_244, %c0_245, %c0_246] : memref<1x1x10xf32, #tpu.memory_space<vmem>>, vector<1x1x10xf32>
    %216 = vector.shape_cast %215 : vector<1x1x10xf32> to vector<1x10xf32>
    %217 = vector.shape_cast %214 : vector<1x10xf32> to vector<1x1x10xf32>
    tpu.vector_store %arg16[%c0_244, %c0_245, %c0_246], %217 {strides = array<i32>} : memref<1x1x10xf32, #tpu.memory_space<vmem>>, vector<1x1x10xf32>,
    return
  }
  func.func @transform_0(%arg0: i32) -> (i32, i32, i32, i32) {
    %c0_i32 = arith.constant 0 : i32
    %c0_i32_0 = arith.constant 0 : i32
    %c0_i32_1 = arith.constant 0 : i32
    %c0_i32_2 = arith.constant 0 : i32
    return %arg0, %c0_i32, %c0_i32_0, %c0_i32_1 : i32, i32, i32, i32
  }
  func.func @transform_1(%arg0: i32) -> (i32, i32, i32) {
    %c0_i32 = arith.constant 0 : i32
    %c0_i32_0 = arith.constant 0 : i32
    %c0_i32_1 = arith.constant 0 : i32
    %c0_i32_2 = arith.constant 0 : i32
    return %c0_i32, %c0_i32_0, %c0_i32_1 : i32, i32, i32
  }
  func.func @transform_2(%arg0: i32) -> (i32, i32) {
    %c0_i32 = arith.constant 0 : i32
    %c0_i32_0 = arith.constant 0 : i32
    %c0_i32_1 = arith.constant 0 : i32
    return %c0_i32, %c0_i32_0 : i32, i32
  }
  func.func @transform_3(%arg0: i32) -> (i32, i32, i32) {
    %c0_i32 = arith.constant 0 : i32
    %c0_i32_0 = arith.constant 0 : i32
    %c0_i32_1 = arith.constant 0 : i32
    %c0_i32_2 = arith.constant 0 : i32
    return %c0_i32, %c0_i32_0, %c0_i32_1 : i32, i32, i32
  }
  func.func @transform_4(%arg0: i32) -> (i32, i32) {
    %c0_i32 = arith.constant 0 : i32
    %c0_i32_0 = arith.constant 0 : i32
    %c0_i32_1 = arith.constant 0 : i32
    return %c0_i32, %c0_i32_0 : i32, i32
  }
  func.func @transform_5(%arg0: i32) -> (i32, i32, i32) {
    %c0_i32 = arith.constant 0 : i32
    %c0_i32_0 = arith.constant 0 : i32
    %c0_i32_1 = arith.constant 0 : i32
    %c0_i32_2 = arith.constant 0 : i32
    return %c0_i32, %c0_i32_0, %c0_i32_1 : i32, i32, i32
  }
  func.func @transform_6(%arg0: i32) -> (i32, i32) {
    %c0_i32 = arith.constant 0 : i32
    %c0_i32_0 = arith.constant 0 : i32
    %c0_i32_1 = arith.constant 0 : i32
    return %c0_i32, %c0_i32_0 : i32, i32
  }
  func.func @transform_7(%arg0: i32) -> (i32, i32, i32) {
    %c0_i32 = arith.constant 0 : i32
    %c0_i32_0 = arith.constant 0 : i32
    %c0_i32_1 = arith.constant 0 : i32
    %c0_i32_2 = arith.constant 0 : i32
    return %c0_i32, %c0_i32_0, %c0_i32_1 : i32, i32, i32
  }
  func.func @transform_8(%arg0: i32) -> (i32, i32, i32) {
    %c0_i32 = arith.constant 0 : i32
    %c0_i32_0 = arith.constant 0 : i32
    %c0_i32_1 = arith.constant 0 : i32
    %c0_i32_2 = arith.constant 0 : i32
    return %c0_i32, %c0_i32_0, %c0_i32_1 : i32, i32, i32
  }
  func.func @transform_9(%arg0: i32) -> (i32, i32, i32) {
    %c0_i32 = arith.constant 0 : i32
    %c0_i32_0 = arith.constant 0 : i32
    %c0_i32_1 = arith.constant 0 : i32
    %c0_i32_2 = arith.constant 0 : i32
    return %c0_i32, %c0_i32_0, %c0_i32_1 : i32, i32, i32
  }
  func.func @transform_10(%arg0: i32) -> (i32, i32, i32) {
    %c0_i32 = arith.constant 0 : i32
    %c0_i32_0 = arith.constant 0 : i32
    %c0_i32_1 = arith.constant 0 : i32
    %c0_i32_2 = arith.constant 0 : i32
    return %c0_i32, %c0_i32_0, %c0_i32_1 : i32, i32, i32
  }
  func.func @transform_11(%arg0: i32) -> (i32, i32, i32) {
    %c0_i32 = arith.constant 0 : i32
    %c0_i32_0 = arith.constant 0 : i32
    %c0_i32_1 = arith.constant 0 : i32
    %c0_i32_2 = arith.constant 0 : i32
    return %c0_i32, %c0_i32_0, %c0_i32_1 : i32, i32, i32
  }
  func.func @transform_12(%arg0: i32) -> (i32, i32, i32) {
    %c0_i32 = arith.constant 0 : i32
    %c0_i32_0 = arith.constant 0 : i32
    %c0_i32_1 = arith.constant 0 : i32
    %c0_i32_2 = arith.constant 0 : i32
    return %c0_i32, %c0_i32_0, %c0_i32_1 : i32, i32, i32
  }
  func.func @transform_13(%arg0: i32) -> (i32, i32, i32) {
    %c0_i32 = arith.constant 0 : i32
    %c0_i32_0 = arith.constant 0 : i32
    %c0_i32_1 = arith.constant 0 : i32
    %c0_i32_2 = arith.constant 0 : i32
    return %c0_i32, %c0_i32_0, %c0_i32_1 : i32, i32, i32
  }
  func.func @transform_14(%arg0: i32) -> (i32, i32) {
    %c0_i32 = arith.constant 0 : i32
    %c0_i32_0 = arith.constant 0 : i32
    %c0_i32_1 = arith.constant 0 : i32
    return %c0_i32, %c0_i32_0 : i32, i32
  }
  func.func @transform_15(%arg0: i32) -> (i32, i32, i32) {
    %c0_i32 = arith.constant 0 : i32
    %c0_i32_0 = arith.constant 0 : i32
    %c0_i32_1 = arith.constant 0 : i32
    return %arg0, %c0_i32, %c0_i32_0 : i32, i32, i32
  }
}

</mosaic_0001>

<bundles_post_ra>
// kernel: tpu_custom_call.1
= control target key start
LH: loop header
LB: loop body
LE: loop exit
PB: predicated region body
PF: predicated region fallthrough
CT: control target
= control target key end

     0   :  { %s11630_s0 = inlined_call_operand.vmem [shape: f32[2,1,28,28], index: 0, kind: input, shape index: {}]   ;;  %s11631_s1 = inlined_call_operand.hbm [shape: f32[9,28,280], index: 1, kind: input, shape index: {}]   ;;  %s11632_s2 = inlined_call_operand.vmem [shape: f32[1,280], index: 2, kind: input, shape index: {}]   ;;  %s11633_s3 = inlined_call_operand.vmem [shape: f32[9,120,240], index: 3, kind: input, shape index: {}]   ;;  %s11634_s4 = inlined_call_operand.vmem [shape: f32[1,240], index: 4, kind: input, shape index: {}]   ;;  %s11635_s5 = inlined_call_operand.hbm [shape: f32[9,120,240], index: 5, kind: input, shape index: {}]   ;;  %s11636_s6 = inlined_call_operand.vmem [shape: f32[1,240], index: 6, kind: input, shape index: {}]   ;;  %s11637_s7 = inlined_call_operand.vmem [shape: f32[2,14,28], index: 7, kind: input, shape index: {}]   ;;  %s11638_s8 = inlined_call_operand.vmem [shape: f32[2,280,140], index: 8, kind: input, shape index: {}]   ;;  %s11639_s9 = inlined_call_operand.vmem [shape: f32[2,6,12], index: 9, kind: input, shape index: {}]   ;;  %s11640_s10 = inlined_call_operand.hbm [shape: f32[2,240,120], index: 10, kind: input, shape index: {}]   ;;  %s11641_s11 = inlined_call_operand.vmem [shape: f32[2,3,6], index: 11, kind: input, shape index: {}]   ;;  %s11642_s12 = inlined_call_operand.hbm [shape: f32[2,240,120], index: 12, kind: input, shape index: {}]   ;;  %s11643_s13 = inlined_call_operand.vmem [shape: f32[3,120,10], index: 13, kind: input, shape index: {}]   ;;  %s11644_s14 = inlined_call_operand.vmem [shape: f32[1,10], index: 14, kind: input, shape index: {}]   ;;  %s11645_s15 = inlined_call_operand.hbm [shape: f32[2,1,10], index: 15, kind: output, shape index: {}]  }
   0x1   :  { %11659 = sst [smem:[#allocation27_spill]] %s11635_s5 }
   0x2   :  { %11660 = sst [smem:[#allocation28_spill]] %s11644_s14 }
   0x3   :  { %11661 = sst [smem:[#allocation29_spill]] %s11645_s15 }
   0x4   :  { %20 = vsyncpa [#allocation7], 0 }
   0x5   :  { %21 = vsyncpa [#allocation10], 0 }
   0x6   :  { %22 = vsyncpa [#allocation13], 0 }
   0x7   :  { %23 = vsyncpa [#allocation8], 0 }
   0x8   :  { %25 = vsyncpa [#allocation8 + $0x1], 0  ;;  %s9289_s18 = smov 0   ;;  %s9291_s19 = smov 0  }
   0x9   :  { %s9293_s20 = smov 0   ;;  %s9295_s21 = smov 0  }
   0xa LB: > { %11662 = sst [smem:[#allocation19_spill]] %s9173_s18  ;;  %s9310_s22 = sadd.s32 4294967295, %s9185_s21   ;;  %s9185_s21 = sphi %s9295_s21, %s11694_s21   ;;  %s9181_s20 = sphi %s9293_s20, %s11697_s20   ;;  %s9177_s19 = sphi %s9291_s19, %s11696_s19   ;;  %s9173_s18 = sphi %s9289_s18, %s11695_s18  }
   0xb   : > { %11663 = sst [smem:[#allocation20_spill]] %s9177_s19  ;;  %s6723_s23 = sadd.s32 4294967294, %s9185_s21  }
   0xc   : > { %11664 = sst [smem:[#allocation21_spill]] %s9181_s20  ;;  %s9314_s24 = sadd.s32 1, %s9185_s21  }
   0xd   : > { %11665 = sst [smem:[#allocation22_spill]] %s9185_s21  ;;  %s358_s25 = sadd.s32 1, %s9181_s20 }
   0xe   : > { %11666 = sst [smem:[#allocation23_spill]] %s9314_s24  ;;  %s355_s26 = ssub.s32 %s9185_s21, %s9314_s24 }
   0xf   : > { %p368_p0 = scmp.ne.s32.totalorder %s9181_s20, %s9177_s19  ;;  %p356_p1 = scmp.eq.s32.totalorder %s355_s26, 0 }
  0x10   : > { %p369_p2 = scmp.eq.s32.totalorder %s9310_s22, 1  ;;  %p374_p3 = scmp.ne.s32.totalorder %s9177_s19, %s9173_s18 }
  0x11   : > { %p375_p4 = scmp.eq.s32.totalorder %s6723_s23, 1  ;;  %p6724_p7 = scmp.ge.s32.totalorder %s9185_s21, 1 }
  0x12   : > { %s9325_s27 = scalar_select %p356_p1, %s9181_s20, %s358_s25  }
  0x13   : > { %p9327_p5 = por %p369_p2, %p368_p0  ;;  %p9331_p6 = por %p375_p4, %p374_p3 }
  0x14   : > { %11667 = sst [smem:[#allocation24_spill]] %s9325_s27  ;;  %p382_p8 = scmp.lt.s32.totalorder %s9185_s21, 3 }
  0x15   : > { %s11668_s28 = scalar_select %p9327_p5, 1, 0 }
  0x16   : > { %s11670_s29 = scalar_select %p9331_p6, 1, 0 }
  0x17   : > { %11669 = sst [smem:[#allocation25_spill]] %s11668_s28  ;;  %p11652_p9 = scmp.eq.s32.totalorder %s9310_s22, 0 }
  0x18   : > { %11671 = sst [smem:[#allocation26_spill]] %s11670_s29  ;;  %p9338_p10 = pnand %p6724_p7, %p382_p8 }
  0x19   : > { %s9187_s16 = smov [#allocation9]   ;;  %s9188_s25 = smov [#allocation6]  }
  0x1a   : > { %s11672_s30 = scalar_select %p9338_p10, 1, 0 }
  0x1b   : > { %s416_s17 = sshll.u32 %s9187_s16, 4  ;;  %p8917_p11 = pneg %p9338_p10  ;;  %s417_s17 = int_to_ptr.vmem [resolvable:$true] %s416_s17 }
  0x1c   : > { %s394_s26 = sshll.u32 %s9188_s25, 4  ;;  %s11674_s5 = sld [smem:[#allocation27_spill]]  ;;  %s9350_s26 = int_to_ptr.vmem [resolvable:$true] %s394_s26 }
  0x1d   : > { %p9346_p12 = pnand %p11652_p9, %p8917_p11 }
  0x1f   : > { %p9360_p0 = pneg %p9346_p12 }
  0x22   : > { %s8999_s24 = scalar_lea.hbm %s11674_s5, 34560 }
  0x23   : > { %p9000_p13 = scmp.ne.s32.totalorder %s11674_s5, %s8999_s24  ;;  %p9006_p3 = scmp.lt.u32.totalorder %s8999_s24, %s11674_s5 }
  0x25   : > { %p9002_p1 = pnand %p9360_p0, %p9000_p13 }
  0x27   : > { %p9003_p2 = pneg %p9002_p1 }
  0x29   : > { %p9008_p4 = pnand %p9006_p3, %p9003_p2 }
  0x2b   : > { %9011 = shalt.err (!%p9008_p4)
}
  0x2c   : > { %s9012_s20 = scalar_lea.vmem %s417_s17, 34560  ;;  %p9020_p9 = scmp.lt.s32.totalorder %s417_s17, %s417_s17 }
  0x2d   : > { %p9013_p7 = scmp.ne.s32.totalorder %s417_s17, %s9012_s20  ;;  %p9021_p6 = scmp.lt.s32.totalorder %s9012_s20, %s9012_s20 }
  0x2f   : > { %p9015_p8 = pnand %p9013_p7, %p9360_p0  ;;  %p9022_p5 = por %p9021_p6, %p9020_p9 }
  0x31   : > { %p9016_p11 = pneg %p9015_p8 }
  0x33   : > { %p9023_p10 = pnand %p9022_p5, %p9016_p11 }
  0x35   : > { %9026 = shalt.err (!%p9023_p10)
}
  0x36   : > { %s9189_s18 = smov 256   ;;  %s9190_s27 = smov 16  }
  0x37   : > { %8923 = dma.hbm_to_vmem [thread:$0]  (!%p9346_p12), %s11674_s5, 34560, %s417_s17, [#allocation10], %s9189_s18, %s9189_s18, %s9190_s27  }
  0x38   : > { %s9027_s15 = scalar_lea.hbm %s11631_s1, 13824 }
  0x39   : > { %p9028_p13 = scmp.ne.s32.totalorder %s11631_s1, %s9027_s15  ;;  %p9034_p9 = scmp.lt.u32.totalorder %s9027_s15, %s11631_s1 }
  0x3b   : > { %p9030_p5 = pnand %p9028_p13, %p9360_p0 }
  0x3d   : > { %p9031_p6 = pneg %p9030_p5 }
  0x3f   : > { %p9036_p10 = pnand %p9034_p9, %p9031_p6 }
  0x41   : > { %9039 = shalt.err (!%p9036_p10)
}
  0x42   : > { %s9040_s17 = scalar_lea.vmem %s9350_s26, 13824  ;;  %p9048_p4 = scmp.lt.s32.totalorder %s9350_s26, %s9350_s26 }
  0x43   : > { %p9041_p1 = scmp.ne.s32.totalorder %s9350_s26, %s9040_s17  ;;  %p9049_p7 = scmp.lt.s32.totalorder %s9040_s17, %s9040_s17 }
  0x45   : > { %p9043_p2 = pnand %p9041_p1, %p9360_p0  ;;  %p9050_p8 = por %p9049_p7, %p9048_p4 }
  0x47   : > { %p9044_p3 = pneg %p9043_p2 }
  0x49   : > { %p9051_p11 = pnand %p9050_p8, %p9044_p3 }
  0x4b   : > { %9054 = shalt.err (!%p9051_p11)
}
  0x4c   : > { %s9191_s14 = smov 384   ;;  %s9192_s15 = smov 24  }
  0x4d   : > { %8920 = dma.hbm_to_vmem [thread:$0]  (!%p9346_p12), %s11631_s1, 13824, %s9350_s26, [#allocation7], %s9191_s14, %s9191_s14, %s9192_s15  }
  0x4e   : > { %s9193_s18 = smov [#allocation11]   ;;  %s9055_s29 = scalar_lea.hbm %s11640_s10, 7680 }
  0x4f   : > { %s441_s27 = sshll.u32 %s9193_s18, 4  ;;  %p9056_p13 = scmp.ne.s32.totalorder %s11640_s10, %s9055_s29  ;;  %s442_s27 = int_to_ptr.vmem [resolvable:$true] %s441_s27 }
  0x50   : > { %p9062_p9 = scmp.lt.u32.totalorder %s9055_s29, %s11640_s10 }
  0x51   : > { %p9058_p5 = pnand %p9056_p13, %p9360_p0 }
  0x53   : > { %p9059_p6 = pneg %p9058_p5 }
  0x55   : > { %p9064_p10 = pnand %p9062_p9, %p9059_p6 }
  0x57   : > { %9067 = shalt.err (!%p9064_p10)
}
  0x58   : > { %s9068_s26 = scalar_lea.vmem %s442_s27, 7680  ;;  %p9076_p4 = scmp.lt.s32.totalorder %s442_s27, %s442_s27 }
  0x59   : > { %p9069_p1 = scmp.ne.s32.totalorder %s442_s27, %s9068_s26  ;;  %p9077_p7 = scmp.lt.s32.totalorder %s9068_s26, %s9068_s26 }
  0x5b   : > { %p9071_p2 = pnand %p9069_p1, %p9360_p0  ;;  %p9078_p8 = por %p9077_p7, %p9076_p4 }
  0x5d   : > { %p9072_p3 = pneg %p9071_p2 }
  0x5f   : > { %p9079_p11 = pnand %p9078_p8, %p9072_p3 }
  0x61   : > { %9082 = shalt.err (!%p9079_p11)
}
  0x62   : > { %s9194_s14 = smov 128   ;;  %s9195_s15 = smov 8  }
  0x63   : > { %8926 = dma.hbm_to_vmem [thread:$0]  (!%p9346_p12), %s11640_s10, 7680, %s442_s27, [#allocation10], %s9194_s14, %s9194_s14, %s9195_s15  }
  0x64   : > { %s9196_s28 = smov [#allocation12]   ;;  %s9083_s29 = scalar_lea.hbm %s11642_s12, 7680 }
  0x65   : > { %s457_s18 = sshll.u32 %s9196_s28, 4  ;;  %p9084_p13 = scmp.ne.s32.totalorder %s11642_s12, %s9083_s29  ;;  %s458_s18 = int_to_ptr.vmem [resolvable:$true] %s457_s18 }
  0x66   : > { %p9090_p9 = scmp.lt.u32.totalorder %s9083_s29, %s11642_s12 }
  0x67   : > { %p9086_p5 = pnand %p9084_p13, %p9360_p0 }
  0x69   : > { %p9087_p6 = pneg %p9086_p5 }
  0x6b   : > { %p9092_p10 = pnand %p9090_p9, %p9087_p6 }
  0x6d   : > { %9095 = shalt.err (!%p9092_p10)
}
  0x6e   : > { %s9096_s27 = scalar_lea.vmem %s458_s18, 7680  ;;  %p9104_p4 = scmp.lt.s32.totalorder %s458_s18, %s458_s18 }
  0x6f   : > { %p9097_p1 = scmp.ne.s32.totalorder %s458_s18, %s9096_s27  ;;  %p9105_p7 = scmp.lt.s32.totalorder %s9096_s27, %s9096_s27 }
  0x71   : > { %p9099_p2 = pnand %p9097_p1, %p9360_p0  ;;  %p9106_p8 = por %p9105_p7, %p9104_p4 }
  0x73   : > { %p9100_p3 = pneg %p9099_p2 }
  0x75   : > { %p9107_p11 = pnand %p9106_p8, %p9100_p3 }
  0x77   : > { %9110 = shalt.err (!%p9107_p11)
}
  0x78   : > { %8929 = dma.hbm_to_vmem [thread:$0]  (!%p9346_p12), %s11642_s12, 7680, %s458_s18, [#allocation13], %s9194_s14, %s9194_s14, %s9195_s15  }
  0x79   : > { %p11676_p13 = scmp.ne.s32.totalorder %s11672_s30, 0 }
  0x7a   : > { %p11677_p5 = scmp.eq.s32.totalorder (!%p11676_p13), %s9310_s22, 0 }
  0x7b   : > { %487 = sbr.rel (%p11676_p13) target bundleno = 3719 (0xe87), region = 80 }
  0x82   : > { %9156 = dma.done.wait (%p11677_p5), [#allocation7], 13824   ;;  %p11678_p0 = pmov %p11677_p5 }
  0x84   : > { %9158 = vsyncadd (%p11678_p0), [#allocation7], 4294953472  ;;  %p11679_p6 = pmov %p11678_p0 }
  0x85   : > { %p11680_p9 = pmov %p11678_p0 }
  0x86   : > { %9160 = dma.done.wait (%p11679_p6), [#allocation10], 42240  }
  0x87   : > { %9162 = vsyncadd (%p11680_p9), [#allocation10], 4294925056  ;;  %p11681_p10 = pmov %p11678_p0 }
  0x88   : > { %p11682_p12 = pmov %p11678_p0 }
  0x89   : > { %9164 = dma.done.wait (%p11681_p10), [#allocation13], 7680  }
  0x8a   : > { %9166 = vsyncadd (%p11682_p12), [#allocation13], 4294959616  ;;  %p546_p1 = scmp.lt.s32.totalorder %s9310_s22, 1  ;;  %vm551_vm0 = vcmask 244736   ;;  %v9197_v0 = vmov 0.0   ;;  %vm555_vm1 = vcmask 242688  }
  0x8b   : > { %552 = vst.msk [vmem:[#allocation2] sm:$0xff] %vm551_vm0, %v9197_v0  ;;  %553 = vst.msk [vmem:[#allocation2 + $0x8] sm:$0xff] %vm551_vm0, %v9197_v0  ;;  %707 = vmatprep.mubr.f32.mxu0 %v9197_v0  ;;  %s9198_s28 = smov 1   ;;  %v601_v5 = vld [vmem:[#allocation6 + $0x68] sm:$0xff]  ;;  %v604_v6 = vld [vmem:[#allocation6 + $0x80] sm:$0xff]  ;;  %vm633_vm2 = vcmask 1043456  }
  0x8c   : > { %554 = vst.msk [vmem:[#allocation2 + $0x10] sm:$0xff] %vm551_vm0, %v9197_v0  ;;  %4943 = vst [vmem:[#allocation4] sm:$0xff] %v9197_v0  ;;  %s547_s30 = scalar_select %p546_p1, %s9310_s22, 1  ;;  %v600_v7 = vld [vmem:[#allocation6 + $0x60] sm:$0xff]  ;;  %v7627_v8 = vpack.c.bf16 %v604_v6, %v601_v5  ;;  %v603_v9 = vld [vmem:[#allocation6 + $0x78] sm:$0xff]  ;;  %vm9199_vm3 = vmmov 1  }
  0x8d   : > { %556 = vst.msk [vmem:[#allocation2 + $0x18] sm:$0x3f] %vm555_vm1, %v9197_v0  ;;  %v607_v10 = vld [vmem:[#allocation6 + $0x98] sm:$0xff]  ;;  %v610_v11 = vld [vmem:[#allocation6 + $0xb0] sm:$0xf]  ;;  %v7629_v12 = vpack.c.bf16 %v603_v9, %v600_v7  ;;  %vm9460_vm4 = vmpackc.low %vm633_vm2, %vm9199_vm3  ;;  %vm577_vm5 = vcmask 236552  }
  0x8e   : > { %s7247_s23 = sshll.u32 %s547_s30, 5  ;;  %v7631_v13 = vpack.c.bf16 %v610_v11, %v607_v10  ;;  %v602_v15 = vld [vmem:[#allocation6 + $0x70] sm:$0xff]  ;;  %v605_v16 = vld [vmem:[#allocation6 + $0x88] sm:$0xff]  ;;  %7628 = vmatprep.subr.bf16.mxu0 %v7627_v8  ;;  %v608_v21 = vld [vmem:[#allocation6 + $0xa0] sm:$0xff]  ;;  %vm581_vm6 = vcmask 232456   ;;  %s9200_s18 = smov 127  }
  0x8f   : > { %s550_s15 = scalar_lea.vmem %s11630_s0, %s7247_s23  ;;  %v7637_v17 = vpack.c.bf16 %v605_v16, %v602_v15  ;;  %v606_v18 = vld [vmem:[#allocation6 + $0x90] sm:$0xff]  ;;  %v609_v19 = vld [vmem:[#allocation6 + $0xa8] sm:$0xf]  ;;  %7630 = vmatpush1.bf16.msra.mxu0 %v7629_v12  ;;  %v611_v22 = vld [vmem:[#allocation6 + $0xb8] sm:$0xf]  ;;  %s9201_s21 = smov 126  }
  0x90   : > { %v557_v1 = vld [vmem:[%s550_s15] sm:$0xff]  ;;  %v559_v2 = vld [vmem:[%s550_s15 + $0x10] sm:$0xff]  ;;  %v558_v3 = vld [vmem:[%s550_s15 + $0x8] sm:$0xff]  ;;  %v7634_v20 = vpack.c.bf16 %v609_v19, %v606_v18  ;;  %7633 = vmatprep.subr.msk.bf16.mxu0 %vm9460_vm4, %v7631_v13  ;;  %v7641_v23 = vpack.c.bf16 %v611_v22, %v608_v21  ;;  %vm624_vm7 = vcmask 228352   ;;  %vm3011_vm8 = vcmask 195584   ;;  %s9202_s17 = smov 108  }
  0x91   : > { %565 = vrot.lane.b32.xlu0 %v557_v1, %s9198_s28  ;;  %569 = vrot.lane.b32.xlu1 %v559_v2, %s9198_s28  ;;  %v560_v4 = vld [vmem:[%s550_s15 + $0x18] sm:$0xf]  ;;  %v589_v24 = vld [vmem:[#allocation6 + $0x10] sm:$0xff]  ;;  %v592_v25 = vld [vmem:[#allocation6 + $0x28] sm:$0xff]  ;;  %vm3491_vm9 = vcmask 982016   ;;  %vm3406_vm10 = vcmask 97280  }
  0x92   : > { %7638 = vmatprep.subr.bf16.mxu1 %v7637_v17  ;;  %v9472_v28 = vpack.c.bf16 %v592_v25, %v589_v24  ;;  %v588_v29 = vld [vmem:[#allocation6 + $0x8] sm:$0xff]  ;;  %v591_v30 = vld [vmem:[#allocation6 + $0x20] sm:$0xff]  ;;  %v590_v47 = vld [vmem:[#allocation6 + $0x18] sm:$0xff]  ;;  %vm3409_vm11 = vcmask 95232   ;;  %vm3816_vm12 = vcmask 1046528   ;;  %s9203_s15 = smov 118  }
  0x93   : > { %7640 = vmatpush3.bf16.msra.mxu1 %v7637_v17  ;;  %7636 = vmatpush1.bf16.msk.msra.mxu0 %vm9460_vm4, %v7634_v20  ;;  %v7647_v31 = vpack.c.bf16 %v591_v30, %v588_v29  ;;  %v587_v46 = vld [vmem:[#allocation6] sm:$0xff]  ;;  %v594_v48 = vld [vmem:[#allocation6 + $0x38] sm:$0xff]  ;;  %v597_v49 = vld [vmem:[#allocation6 + $0x50] sm:$0xf]  ;;  %vm4206_vm13 = vcmask 1045504   ;;  %vm3693_vm14 = vcmask 883712  }
  0x94   : > { %7643 = vmatprep.subr.msk.bf16.mxu1 %vm9460_vm4, %v7641_v23  ;;  %v7649_v50 = vpack.c.bf16 %v590_v47, %v587_v46  ;;  %v7651_v51 = vpack.c.bf16 %v597_v49, %v594_v48  ;;  %v595_v53 = vld [vmem:[#allocation6 + $0x40] sm:$0xff]  ;;  %v598_v54 = vld [vmem:[#allocation6 + $0x58] sm:$0xf]  ;;  %v593_v55 = vld [vmem:[#allocation6 + $0x30] sm:$0xff]  ;;  %vm3488_vm15 = vcmask 965632   ;;  %vm4766_vm0 = vcmask 916480  }
  0x95   : > { %567 = vrot.lane.b32.xlu0 %v558_v3, %s9198_s28  ;;  %571 = vrot.lane.b32.xlu1 %v560_v4, %s9198_s28  ;;  %v596_v56 = vld [vmem:[#allocation6 + $0x48] sm:$0xf]  ;;  %v7661_v57 = vpack.c.bf16 %v598_v54, %v595_v53  ;;  %v1011_v60 = vld [vmem:[#allocation6 + $0xd0] sm:$0xff]  ;;  %v1013_v1 = vld [vmem:[#allocation6 + $0xe0] sm:$0xff]  ;;  %vm4944_vm1 = vcmask 261120   ;;  %s9205_s29 = smov 20  }
  0x96   : > { %7648 = vmatprep.subr.bf16.mxu0 %v7647_v31  ;;  %v1014_v61 = vld [vmem:[#allocation6 + $0xe8] sm:$0xff]  ;;  %v7654_v62 = vpack.c.bf16 %v596_v56, %v593_v55  ;;  %v1017_v4 = vld [vmem:[#allocation6 + $0x100] sm:$0xff]  ;;  %v1020_v5 = vld [vmem:[#allocation6 + $0x118] sm:$0xf]  ;;  %vm4951_vm2 = vcmask 1046689   ;;  %vm4953_vm3 = vcmask 96257  }
  0x97   : > { %7646 = vmatpush3.bf16.msk.msra.mxu1 %vm9460_vm4, %v7641_v23  ;;  %v1010_v63 = vld [vmem:[#allocation6 + $0xc8] sm:$0xff]  ;;  %v7677_v2 = vpack.c.bf16 %v1014_v61, %v1011_v60  ;;  %v7681_v7 = vpack.c.bf16 %v1020_v5, %v1017_v4  ;;  %v1239_v8 = vld [vmem:[#allocation6 + $0x130] sm:$0xff]  ;;  %v1009_v10 = vld [vmem:[#allocation6 + $0xc0] sm:$0xff]  ;;  %s9206_s25 = smov 88   ;;  %s11685_s19 = sld [smem:[#allocation20_spill]] }
  0x98   : > { %7658 = vmatprep.subr.bf16.mxu1 %v9472_v28  ;;  %v7667_v6 = vpack.c.bf16 %v1013_v1, %v1010_v63  ;;  %v1242_v9 = vld [vmem:[#allocation6 + $0x148] sm:$0xff]  ;;  %v1012_v11 = vld [vmem:[#allocation6 + $0xd8] sm:$0xff]  ;;  %v1245_v16 = vld [vmem:[#allocation6 + $0x160] sm:$0xff]  ;;  %s11688_s30 = sld [smem:[#allocation29_spill]] }
  0x99   : > { %v7697_v13 = vpack.c.bf16 %v1242_v9, %v1239_v8  ;;  %v7669_v15 = vpack.c.bf16 %v1012_v11, %v1009_v10  ;;  %v1248_v17 = vld [vmem:[#allocation6 + $0x178] sm:$0xf]  ;;  %v1019_v19 = vld [vmem:[#allocation6 + $0x110] sm:$0xf]  ;;  %v1462_v24 = vld [vmem:[#allocation6 + $0x1a8] sm:$0xff] }
  0x9a   : > { %v1016_v18 = vld [vmem:[#allocation6 + $0xf8] sm:$0xff]  ;;  %v7701_v21 = vpack.c.bf16 %v1248_v17, %v1245_v16  ;;  %v1459_v23 = vld [vmem:[#allocation6 + $0x190] sm:$0xff]  ;;  %v1465_v31 = vld [vmem:[#allocation6 + $0x1c0] sm:$0xff] }
  0x9b   : > { %v7671_v22 = vpack.c.bf16 %v1019_v19, %v1016_v18  ;;  %v1686_v47 = vld [vmem:[#allocation6 + $0x208] sm:$0xff]  ;;  %v1237_v49 = vld [vmem:[#allocation6 + $0x120] sm:$0xff]  ;;  %v1692_v54 = vld [vmem:[#allocation6 + $0x238] sm:$0xf] }
  0x9c   : > { %v1244_v56 = vld [vmem:[#allocation6 + $0x158] sm:$0xff]  ;;  %v1911_v61 = vld [vmem:[#allocation6 + $0x250] sm:$0xff]  ;;  %v1246_v1 = vld [vmem:[#allocation6 + $0x168] sm:$0xf] }
  0x9d   : > { %v1243_v63 = vld [vmem:[#allocation6 + $0x150] sm:$0xff]  ;;  %v1917_v5 = vld [vmem:[#allocation6 + $0x280] sm:$0xff]  ;;  %v1460_v17 = vld [vmem:[#allocation6 + $0x198] sm:$0xff] }
  0x9e   : > { %v7694_v4 = vpack.c.bf16 %v1246_v1, %v1243_v63  ;;  %v1461_v8 = vld [vmem:[#allocation6 + $0x1a0] sm:$0xff]  ;;  %v2131_v11 = vld [vmem:[#allocation6 + $0x2b0] sm:$0xff] }
  0x9f   : > { %v1457_v16 = vld [vmem:[#allocation6 + $0x180] sm:$0xff]  ;;  %v4740_v14 = vld [vmem:[#allocation11 + $0x20] sm:$0xff] }
 0x103   : > { %v566_v26 = vpop.permute.xlu0 %565  ;;  %v570_v27 = vpop.permute.xlu1 %569 }
 0x104   : > { %578 = vst.msk [vmem:[#allocation2 + $0x1] sm:$0xff] %vm577_vm5, %v566_v26  ;;  %580 = vst.msk [vmem:[#allocation2 + $0x11] sm:$0xff] %vm577_vm5, %v570_v27  ;;  %v1015_v26 = vld [vmem:[#allocation6 + $0xf0] sm:$0xff]  ;;  %v1018_v27 = vld [vmem:[#allocation6 + $0x108] sm:$0xf] }
 0x105   : > { %v7674_v30 = vpack.c.bf16 %v1018_v27, %v1015_v26 }
 0x107   : > { %v568_v32 = vpop.permute.xlu0 %567  ;;  %v572_v33 = vpop.permute.xlu1 %571 }
 0x108   : > { %579 = vst.msk [vmem:[#allocation2 + $0x9] sm:$0xff] %vm577_vm5, %v568_v32  ;;  %v1468_v32 = vld [vmem:[#allocation6 + $0x1d8] sm:$0xf]  ;;  %vm5972_vm5 = vcmask 48128  }
 0x109   : > { %582 = vst.msk [vmem:[#allocation2 + $0x19] sm:$0xf] %vm581_vm6, %v572_v33  ;;  %v1238_v33 = vld [vmem:[#allocation6 + $0x128] sm:$0xff]  ;;  %v7721_v46 = vpack.c.bf16 %v1468_v32, %v1465_v31  ;;  %vm9207_vm6 = vmmov 0  }
 0x10b   : > { %v9478_v34 = vld [vmem:[#allocation2] sm:$0xff]  ;;  %v9504_v40 = vld [vmem:[#allocation2 + $0x11] sm:$0xff] }
 0x10c   : > { %616 = vrot.lane.b32.xlu0 %v9478_v34, %s9200_s18  ;;  %v9497_v38 = vld [vmem:[#allocation2 + $0x1] sm:$0xff] }
 0x10f   : > { %v9482_v35 = vld [vmem:[#allocation2 + $0x8] sm:$0xff]  ;;  %v9484_v36 = vld [vmem:[#allocation2 + $0x10] sm:$0xff] }
 0x110   : > { %618 = vrot.lane.b32.xlu1 %v9482_v35, %s9200_s18  ;;  %620 = vrot.lane.b32.xlu0 %v9484_v36, %s9200_s18  ;;  %v9490_v37 = vld [vmem:[#allocation2 + $0x18] sm:$0xf]  ;;  %v9502_v39 = vld [vmem:[#allocation2 + $0x9] sm:$0xff] }
 0x111   : > { %v9510_v41 = vld [vmem:[#allocation2 + $0x19] sm:$0xf]  ;;  %v9517_v42 = vld [vmem:[#allocation2 + $0x2] sm:$0xff]  ;;  %v9522_v43 = vld [vmem:[#allocation2 + $0xa] sm:$0xff] }
 0x112   : > { %v9524_v44 = vld [vmem:[#allocation2 + $0x12] sm:$0xff]  ;;  %v9530_v45 = vld [vmem:[#allocation2 + $0x1a] sm:$0xf] }
 0x114   : > { %622 = vrot.lane.b32.xlu1 %v9490_v37, %s9200_s18  ;;  %1021 = vrot.lane.b32.xlu0 %v9478_v34, %s9201_s21 }
 0x118   : > { %1023 = vrot.lane.b32.xlu1 %v9482_v35, %s9201_s21  ;;  %1025 = vrot.lane.b32.xlu0 %v9484_v36, %s9201_s21 }
 0x11c   : > { %1027 = vrot.lane.b32.xlu1 %v9490_v37, %s9201_s21  ;;  %1469 = vrot.lane.b32.xlu0 %v9497_v38, %s9200_s18 }
 0x120   : > { %1471 = vrot.lane.b32.xlu1 %v9502_v39, %s9200_s18  ;;  %1473 = vrot.lane.b32.xlu0 %v9504_v40, %s9200_s18 }
 0x124   : > { %1475 = vrot.lane.b32.xlu1 %v9510_v41, %s9200_s18  ;;  %1693 = vrot.lane.b32.xlu0 %v9497_v38, %s9201_s21 }
 0x128   : > { %1695 = vrot.lane.b32.xlu1 %v9502_v39, %s9201_s21  ;;  %1697 = vrot.lane.b32.xlu0 %v9504_v40, %s9201_s21 }
 0x12c   : > { %1699 = vrot.lane.b32.xlu1 %v9510_v41, %s9201_s21  ;;  %2141 = vrot.lane.b32.xlu0 %v9517_v42, %s9200_s18 }
 0x130   : > { %2143 = vrot.lane.b32.xlu1 %v9522_v43, %s9200_s18  ;;  %2145 = vrot.lane.b32.xlu0 %v9524_v44, %s9200_s18 }
 0x134   : > { %2147 = vrot.lane.b32.xlu1 %v9530_v45, %s9200_s18  ;;  %2365 = vrot.lane.b32.xlu0 %v9517_v42, %s9201_s21 }
 0x138   : > { %2367 = vrot.lane.b32.xlu1 %v9522_v43, %s9201_s21  ;;  %2369 = vrot.lane.b32.xlu0 %v9524_v44, %s9201_s21 }
 0x13c   : > { %2371 = vrot.lane.b32.xlu1 %v9530_v45, %s9201_s21  ;;  %s544_s21 = sand.u32 1, %s11685_s19  }
 0x13d   : > { %s545_s20 = scalar_lea.vmem [#allocation14], %s544_s21  ;;  %s6615_s19 = scalar_lea.sflag [#allocation8], %s544_s21 }
 0x13e   : > { %s6627_s26 = sshll.u32 %s545_s20, 4  ;;  %s11590_s26 = int_to_ptr.vmem [resolvable:$true] %s6627_s26 }
 0x13f   : > { %s9111_s16 = scalar_lea.vmem %s11590_s26, 16 }
 0x140   : > { %p9112_p2 = scmp.ne.s32.totalorder %s11590_s26, %s9111_s16 }
 0x17e   : > { %v617_v52 = vpop.permute.xlu0 %616 }
 0x17f   : > { %6739 = vmatmul.mubr.msk.f32.vlgmr.msra.gmra.mrb[0].mxu0 %vm624_vm7, %v617_v52  ;;  %7388 = vmatprep.mubr.msk.f32.mxu1 %vm624_vm7, %v617_v52 }
 0x180   : > { %713 = vmatprep.mubr.f32.mxu0 %v9197_v0  ;;  %7650 = vmatpush1.bf16.msra.mxu0 %v7649_v50  ;;  %v1240_v50 = vld [vmem:[#allocation6 + $0x138] sm:$0xff] }
 0x181   : > { %7653 = vmatprep.subr.msk.bf16.mxu0 %vm9460_vm4, %v7651_v51  ;;  %v7689_v53 = vpack.c.bf16 %v1240_v50, %v1237_v49  ;;  %v1681_v50 = vld [vmem:[#allocation6 + $0x1e0] sm:$0xff] }
 0x182   : > { %v619_v58 = vpop.permute.xlu1 %618  ;;  %v621_v59 = vpop.permute.xlu0 %620 }
 0x183   : > { %6740 = vmatmul.mubr.msk.f32.gmra.mrb[2].mxu0 %vm624_vm7, %v619_v58  ;;  %7389 = vmatmul.mubr.msk.f32.vlgmr.msra.gmra.mrb[0].mxu1 %vm624_vm7, %v619_v58 }
 0x184   : > { %7391 = vmatprep.mubr.msk.f32.mxu1 %vm624_vm7, %v621_v59  ;;  %7660 = vmatpush3.bf16.msra.mxu1 %v9472_v28  ;;  %v7717_v28 = vpack.c.bf16 %v1462_v24, %v1459_v23  ;;  %v1464_v23 = vld [vmem:[#allocation6 + $0x1b8] sm:$0xff]  ;;  %v1467_v24 = vld [vmem:[#allocation6 + $0x1d0] sm:$0xf] }
 0x185   : > { %719 = vmatprep.mubr.f32.mxu0 %v9197_v0  ;;  %7663 = vmatprep.subr.msk.bf16.mxu1 %vm9460_vm4, %v7661_v57  ;;  %v7711_v27 = vpack.c.bf16 %v1467_v24, %v1464_v23  ;;  %v2354_v23 = vld [vmem:[#allocation6 + $0x308] sm:$0xff]  ;;  %v2357_v24 = vld [vmem:[#allocation6 + $0x320] sm:$0xff] }
 0x186   : > { %v623_v3 = vpop.permute.xlu1 %622  ;;  %7656 = vmatpush1.bf16.msk.msra.mxu0 %vm9460_vm4, %v7654_v62  ;;  %v9564_v12 = vpop.permute.xlu0 %1021  ;;  %v1914_v62 = vld [vmem:[#allocation6 + $0x268] sm:$0xff] }
 0x187   : > { %6741 = vmatmul.mubr.msk.f32.gmra.mrb[4].mxu0 %vm624_vm7, %v621_v59  ;;  %7392 = vmatmul.mubr.msk.f32.gmra.mrb[2].mxu1 %vm624_vm7, %v623_v3 }
 0x188   : > { %7666 = vmatpush3.bf16.msk.msra.mxu1 %vm9460_vm4, %v7661_v57  ;;  %7402 = vmatprep.mubr.msk.f32.mxu1 %vm624_vm7, %v9478_v34  ;;  %v1247_v57 = vld [vmem:[#allocation6 + $0x170] sm:$0xf] }
 0x189   : > { %725 = vmatprep.mubr.f32.mxu0 %v9197_v0  ;;  %7678 = vmatprep.subr.bf16.mxu1 %v7677_v2  ;;  %v7691_v60 = vpack.c.bf16 %v1247_v57, %v1244_v56 }
 0x18a   : > { %7668 = vmatprep.subr.bf16.mxu0 %v7667_v6  ;;  %v9573_v20 = vpop.permute.xlu1 %1023  ;;  %v9580_v25 = vpop.permute.xlu0 %1025  ;;  %v1920_v6 = vld [vmem:[#allocation6 + $0x298] sm:$0xf] }
 0x18b   : > { %6742 = vmatmul.mubr.msk.f32.gmra.mrb[6].mxu0 %vm624_vm7, %v623_v3  ;;  %7403 = vmatmul.mubr.msk.f32.vlgmr.msra.gmra.mrb[0].mxu1 %vm624_vm7, %v9482_v35  ;;  %v7757_v3 = vpack.c.bf16 %v1914_v62, %v1911_v61  ;;  %v7761_v10 = vpack.c.bf16 %v1920_v6, %v1917_v5  ;;  %v1913_v61 = vld [vmem:[#allocation6 + $0x260] sm:$0xff]  ;;  %v1916_v5 = vld [vmem:[#allocation6 + $0x278] sm:$0xff]  ;;  %v1919_v6 = vld [vmem:[#allocation6 + $0x290] sm:$0xf] }
 0x18c   : > { %7405 = vmatprep.mubr.msk.f32.mxu1 %vm624_vm7, %v9484_v36  ;;  %7680 = vmatpush3.bf16.msra.mxu1 %v7677_v2 }
 0x18d   : > { %898 = vmatprep.mubr.f32.mxu0 %v9197_v0  ;;  %7683 = vmatprep.subr.msk.bf16.mxu1 %vm9460_vm4, %v7681_v7 }
 0x18e   : > { %v9591_v29 = vpop.permute.xlu1 %1027 }
 0x18f   : > { %6750 = vmatmul.mubr.msk.f32.vlgmr.msra.gmra.mrb[0].mxu0 %vm624_vm7, %v9478_v34  ;;  %7406 = vmatmul.mubr.msk.f32.gmra.mrb[2].mxu1 %vm624_vm7, %v9490_v37  ;;  %v1241_v34 = vld [vmem:[#allocation6 + $0x140] sm:$0xff] }
 0x190   : > { %7686 = vmatpush3.bf16.msk.msra.mxu1 %vm9460_vm4, %v7681_v7  ;;  %7416 = vmatprep.mubr.msk.f32.mxu1 %vm624_vm7, %v9564_v12  ;;  %v7687_v48 = vpack.c.bf16 %v1241_v34, %v1238_v33  ;;  %v1458_v7 = vld [vmem:[#allocation6 + $0x188] sm:$0xff]  ;;  %v2361_v33 = vld [vmem:[#allocation6 + $0x340] sm:$0xff]  ;;  %v2364_v34 = vld [vmem:[#allocation6 + $0x358] sm:$0xf] }
 0x191   : > { %904 = vmatprep.mubr.f32.mxu0 %v9197_v0  ;;  %7698 = vmatprep.subr.bf16.mxu1 %v7697_v13 }
 0x192   : > { %7670 = vmatpush1.bf16.msra.mxu0 %v7669_v15  ;;  %v9612_v51 = vpop.permute.xlu1 %1471 }
 0x193   : > { %6751 = vmatmul.mubr.msk.f32.gmra.mrb[2].mxu0 %vm624_vm7, %v9482_v35  ;;  %7417 = vmatmul.mubr.msk.f32.vlgmr.msra.gmra.mrb[0].mxu1 %vm624_vm7, %v9573_v20  ;;  %v9603_v35 = vpop.permute.xlu0 %1469 }
 0x194   : > { %7419 = vmatprep.mubr.msk.f32.mxu1 %vm624_vm7, %v9580_v25  ;;  %7700 = vmatpush3.bf16.msra.mxu1 %v7697_v13  ;;  %v7707_v13 = vpack.c.bf16 %v1461_v8, %v1458_v7  ;;  %v7751_v8 = vpack.c.bf16 %v1919_v6, %v1916_v5  ;;  %v6872_v5 = vld [vmem:[%s11638_s8 + $0x2c0] sm:$0xff] }
 0x195   : > { %910 = vmatprep.mubr.f32.mxu0 %v9197_v0  ;;  %7703 = vmatprep.subr.msk.bf16.mxu1 %vm9460_vm4, %v7701_v21 }
 0x196   : > { %7673 = vmatprep.subr.msk.bf16.mxu0 %vm9460_vm4, %v7671_v22  ;;  %v9630_v59 = vpop.permute.xlu1 %1475  ;;  %v2140_v22 = vld [vmem:[#allocation6 + $0x2f8] sm:$0xf] }
 0x197   : > { %6752 = vmatmul.mubr.msk.f32.gmra.mrb[4].mxu0 %vm624_vm7, %v9484_v36  ;;  %7420 = vmatmul.mubr.msk.f32.gmra.mrb[2].mxu1 %vm624_vm7, %v9591_v29  ;;  %v1683_v36 = vld [vmem:[#allocation6 + $0x1f0] sm:$0xff]  ;;  %v9619_v55 = vpop.permute.xlu0 %1473 }
 0x198   : > { %7706 = vmatpush3.bf16.msk.msra.mxu1 %vm9460_vm4, %v7701_v21  ;;  %7430 = vmatprep.mubr.msk.f32.mxu1 %vm624_vm7, %v9497_v38  ;;  %v7737_v52 = vpack.c.bf16 %v1686_v47, %v1683_v36  ;;  %v2137_v21 = vld [vmem:[#allocation6 + $0x2e0] sm:$0xff]  ;;  %v1682_v36 = vld [vmem:[#allocation6 + $0x1e8] sm:$0xff] }
 0x199   : > { %916 = vmatprep.mubr.f32.mxu0 %v9197_v0  ;;  %7718 = vmatprep.subr.bf16.mxu1 %v7717_v28  ;;  %v7781_v26 = vpack.c.bf16 %v2140_v22, %v2137_v21  ;;  %v1685_v47 = vld [vmem:[#allocation6 + $0x200] sm:$0xff]  ;;  %v2135_v21 = vld [vmem:[#allocation6 + $0x2d0] sm:$0xff]  ;;  %v2138_v22 = vld [vmem:[#allocation6 + $0x2e8] sm:$0xf] }
 0x19a   : > { %7676 = vmatpush1.bf16.msk.msra.mxu0 %vm9460_vm4, %v7674_v30  ;;  %v9649_v9 = vpop.permute.xlu1 %1695  ;;  %v1466_v30 = vld [vmem:[#allocation6 + $0x1c8] sm:$0xf] }
 0x19b   : > { %6753 = vmatmul.mubr.msk.f32.gmra.mrb[6].mxu0 %vm624_vm7, %v9490_v37  ;;  %7431 = vmatmul.mubr.msk.f32.vlgmr.msra.gmra.mrb[0].mxu1 %vm624_vm7, %v9502_v39  ;;  %v1689_v37 = vld [vmem:[#allocation6 + $0x220] sm:$0xff]  ;;  %v9638_v2 = vpop.permute.xlu0 %1693 }
 0x19c   : > { %7433 = vmatprep.mubr.msk.f32.mxu1 %vm624_vm7, %v9504_v40  ;;  %7720 = vmatpush3.bf16.msra.mxu1 %v7717_v28  ;;  %v7741_v58 = vpack.c.bf16 %v1692_v54, %v1689_v37  ;;  %v2358_v28 = vld [vmem:[#allocation6 + $0x328] sm:$0xff]  ;;  %v1691_v37 = vld [vmem:[#allocation6 + $0x230] sm:$0xf] }
 0x19d   : > { %1110 = vmatprep.mubr.f32.mxu0 %v9197_v0  ;;  %7723 = vmatprep.subr.msk.bf16.mxu1 %vm9460_vm4, %v7721_v46 }
 0x19e   : > { %7688 = vmatprep.subr.bf16.mxu0 %v7687_v48  ;;  %v9669_v19 = vpop.permute.xlu1 %1699  ;;  %v7801_v48 = vpack.c.bf16 %v2364_v34, %v2361_v33  ;;  %v6859_v33 = vld [vmem:[%s11638_s8 + $0x258] sm:$0xff]  ;;  %v6861_v34 = vld [vmem:[%s11638_s8 + $0x268] sm:$0xff] }
 0x19f   : > { %6761 = vmatmul.mubr.msk.f32.vlgmr.msra.gmra.mrb[0].mxu0 %vm624_vm7, %v9564_v12  ;;  %7434 = vmatmul.mubr.msk.f32.gmra.mrb[2].mxu1 %vm624_vm7, %v9510_v41  ;;  %v2134_v12 = vld [vmem:[#allocation6 + $0x2c8] sm:$0xff]  ;;  %v9658_v15 = vpop.permute.xlu0 %1697 }
 0x1a0   : > { %7726 = vmatpush3.bf16.msk.msra.mxu1 %vm9460_vm4, %v7721_v46  ;;  %7444 = vmatprep.mubr.msk.f32.mxu1 %vm624_vm7, %v9603_v35  ;;  %v7777_v18 = vpack.c.bf16 %v2134_v12, %v2131_v11  ;;  %v2130_v11 = vld [vmem:[#allocation6 + $0x2a8] sm:$0xff]  ;;  %v2133_v12 = vld [vmem:[#allocation6 + $0x2c0] sm:$0xff] }
 0x1a1   : > { %1116 = vmatprep.mubr.f32.mxu0 %v9197_v0  ;;  %7738 = vmatprep.subr.bf16.mxu1 %v7737_v52 }
 0x1a2   : > { %7690 = vmatpush1.bf16.msra.mxu0 %v7689_v53  ;;  %v9686_v31 = vpop.permute.xlu1 %2143  ;;  %v1688_v53 = vld [vmem:[#allocation6 + $0x218] sm:$0xff] }
 0x1a3   : > { %6762 = vmatmul.mubr.msk.f32.gmra.mrb[2].mxu0 %vm624_vm7, %v9573_v20  ;;  %7445 = vmatmul.mubr.msk.f32.vlgmr.msra.gmra.mrb[0].mxu1 %vm624_vm7, %v9612_v51  ;;  %v7709_v20 = vpack.c.bf16 %v1460_v17, %v1457_v16  ;;  %v7731_v57 = vpack.c.bf16 %v1691_v37, %v1688_v53  ;;  %v7767_v16 = vpack.c.bf16 %v2133_v12, %v2130_v11  ;;  %v2136_v17 = vld [vmem:[#allocation6 + $0x2d8] sm:$0xff]  ;;  %v6864_v37 = vld [vmem:[%s11638_s8 + $0x280] sm:$0xff] }
 0x1a4   : > { %7447 = vmatprep.mubr.msk.f32.mxu1 %vm624_vm7, %v9619_v55  ;;  %7740 = vmatpush3.bf16.msra.mxu1 %v7737_v52  ;;  %v1684_v52 = vld [vmem:[#allocation6 + $0x1f8] sm:$0xff]  ;;  %v6876_v12 = vld [vmem:[%s11638_s8 + $0x2e0] sm:$0xff] }
 0x1a5   : > { %1122 = vmatprep.mubr.f32.mxu0 %v9197_v0  ;;  %7743 = vmatprep.subr.msk.bf16.mxu1 %vm9460_vm4, %v7741_v58  ;;  %v7729_v56 = vpack.c.bf16 %v1684_v52, %v1681_v50  ;;  %v2578_v50 = vlaneseq  ;;  %v6862_v53 = vld [vmem:[%s11638_s8 + $0x270] sm:$0xff] }
 0x1a6   : > { %7693 = vmatprep.subr.msk.bf16.mxu0 %vm9460_vm4, %v7691_v60  ;;  %v9706_v49 = vpop.permute.xlu1 %2147  ;;  %v1910_v60 = vld [vmem:[#allocation6 + $0x248] sm:$0xff]  ;;  %v6874_v11 = vld [vmem:[%s11638_s8 + $0x2d0] sm:$0xff] }
 0x1a7   : > { %6763 = vmatmul.mubr.msk.f32.gmra.mrb[4].mxu0 %vm624_vm7, %v9580_v25  ;;  %7448 = vmatmul.mubr.msk.f32.gmra.mrb[2].mxu1 %vm624_vm7, %v9630_v59  ;;  %v9679_v25 = vpop.permute.xlu0 %2141 }
 0x1a8   : > { %7746 = vmatpush3.bf16.msk.msra.mxu1 %vm9460_vm4, %v7741_v58  ;;  %7458 = vmatprep.mubr.msk.f32.mxu1 %vm624_vm7, %v9638_v2  ;;  %v1690_v58 = vld [vmem:[#allocation6 + $0x228] sm:$0xf] }
 0x1a9   : > { %1128 = vmatprep.mubr.f32.mxu0 %v9197_v0  ;;  %7758 = vmatprep.subr.bf16.mxu1 %v7757_v3 }
 0x1aa   : > { %7696 = vmatpush1.bf16.msk.msra.mxu0 %vm9460_vm4, %v7694_v4  ;;  %v9725_v62 = vpop.permute.xlu1 %2367  ;;  %v1912_v4 = vld [vmem:[#allocation6 + $0x258] sm:$0xff] }
 0x1ab   : > { %6764 = vmatmul.mubr.msk.f32.gmra.mrb[6].mxu0 %vm624_vm7, %v9591_v29  ;;  %7459 = vmatmul.mubr.msk.f32.vlgmr.msra.gmra.mrb[0].mxu1 %vm624_vm7, %v9649_v9  ;;  %v1463_v29 = vld [vmem:[#allocation6 + $0x1b0] sm:$0xff]  ;;  %v9695_v46 = vpop.permute.xlu0 %2145 }
 0x1ac   : > { %7461 = vmatprep.mubr.msk.f32.mxu1 %vm624_vm7, %v9658_v15  ;;  %7760 = vmatpush3.bf16.msra.mxu1 %v7757_v3 }
 0x1ad   : > { %1334 = vmatprep.mubr.f32.mxu0 %v9197_v0  ;;  %7763 = vmatprep.subr.msk.bf16.mxu1 %vm9460_vm4, %v7761_v10 }
 0x1ae   : > { %7708 = vmatprep.subr.bf16.mxu0 %v7707_v13  ;;  %v9745_v3 = vpop.permute.xlu1 %2371 }
 0x1af   : > { %6772 = vmatmul.mubr.msk.f32.vlgmr.msra.gmra.mrb[0].mxu0 %vm624_vm7, %v9497_v38  ;;  %7462 = vmatmul.mubr.msk.f32.gmra.mrb[2].mxu1 %vm624_vm7, %v9669_v19  ;;  %v2355_v38 = vld [vmem:[#allocation6 + $0x310] sm:$0xff]  ;;  %v9716_v54 = vpop.permute.xlu0 %2365 }
 0x1b0   : > { %7766 = vmatpush3.bf16.msk.msra.mxu1 %vm9460_vm4, %v7761_v10  ;;  %7472 = vmatprep.mubr.msk.f32.mxu1 %vm624_vm7, %v9517_v42  ;;  %v7797_v32 = vpack.c.bf16 %v2358_v28, %v2355_v38  ;;  %v1915_v10 = vld [vmem:[#allocation6 + $0x270] sm:$0xff] }
 0x1b1   : > { %1340 = vmatprep.mubr.f32.mxu0 %v9197_v0  ;;  %7778 = vmatprep.subr.bf16.mxu1 %v7777_v18  ;;  %v2363_v38 = vld [vmem:[#allocation6 + $0x350] sm:$0xf] }
 0x1b2   : > { %7710 = vmatpush1.bf16.msra.mxu0 %v7709_v20 }
 0x1b3   : > { %6773 = vmatmul.mubr.msk.f32.gmra.mrb[2].mxu0 %vm624_vm7, %v9502_v39  ;;  %7473 = vmatmul.mubr.msk.f32.vlgmr.msra.gmra.mrb[0].mxu1 %vm624_vm7, %v9522_v43  ;;  %v7714_v39 = vpack.c.bf16 %v1466_v30, %v1463_v29  ;;  %v9734_v1 = vpop.permute.xlu0 %2369  ;;  %v2359_v29 = vld [vmem:[#allocation6 + $0x330] sm:$0xff]  ;;  %v2362_v30 = vld [vmem:[#allocation6 + $0x348] sm:$0xf] }
 0x1b4   : > { %7475 = vmatprep.mubr.msk.f32.mxu1 %vm624_vm7, %v9524_v44  ;;  %7780 = vmatpush3.bf16.msra.mxu1 %v7777_v18  ;;  %v2139_v18 = vld [vmem:[#allocation6 + $0x2f0] sm:$0xf] }
 0x1b5   : > { %1346 = vmatprep.mubr.f32.mxu0 %v9197_v0  ;;  %7783 = vmatprep.subr.msk.bf16.mxu1 %vm9460_vm4, %v7781_v26  ;;  %v7771_v20 = vpack.c.bf16 %v2139_v18, %v2136_v17 }
 0x1b6   : > { %7713 = vmatprep.subr.msk.bf16.mxu0 %vm9460_vm4, %v7711_v27  ;;  %v2360_v27 = vld [vmem:[#allocation6 + $0x338] sm:$0xff] }
 0x1b7   : > { %6774 = vmatmul.mubr.msk.f32.gmra.mrb[4].mxu0 %vm624_vm7, %v9504_v40  ;;  %7476 = vmatmul.mubr.msk.f32.gmra.mrb[2].mxu1 %vm624_vm7, %v9530_v45  ;;  %v7727_v40 = vpack.c.bf16 %v1685_v47, %v1682_v36  ;;  %v7791_v28 = vpack.c.bf16 %v2363_v38, %v2360_v27  ;;  %v6858_v36 = vld [vmem:[%s11638_s8 + $0x250] sm:$0xff]  ;;  %v6860_v47 = vld [vmem:[%s11638_s8 + $0x260] sm:$0xff] }
 0x1b8   : > { %7786 = vmatpush3.bf16.msk.msra.mxu1 %vm9460_vm4, %v7781_v26  ;;  %7486 = vmatprep.mubr.msk.f32.mxu1 %vm624_vm7, %v9679_v25  ;;  %v7787_v26 = vpack.c.bf16 %v2357_v24, %v2354_v23 }
 0x1b9   : > { %1352 = vmatprep.mubr.f32.mxu0 %v9197_v0  ;;  %7798 = vmatprep.subr.bf16.mxu1 %v7797_v32 }
 0x1ba   : > { %7716 = vmatpush1.bf16.msk.msra.mxu0 %vm9460_vm4, %v7714_v39 }
 0x1bb   : > { %6775 = vmatmul.mubr.msk.f32.gmra.mrb[6].mxu0 %vm624_vm7, %v9510_v41  ;;  %7487 = vmatmul.mubr.msk.f32.vlgmr.msra.gmra.mrb[0].mxu1 %vm624_vm7, %v9686_v31  ;;  %v1687_v41 = vld [vmem:[#allocation6 + $0x210] sm:$0xff] }
 0x1bc   : > { %7489 = vmatprep.mubr.msk.f32.mxu1 %vm624_vm7, %v9695_v46  ;;  %7800 = vmatpush3.bf16.msra.mxu1 %v7797_v32  ;;  %v7734_v63 = vpack.c.bf16 %v1690_v58, %v1687_v41  ;;  %v6854_v32 = vld [vmem:[%s11638_s8 + $0x230] sm:$0xff]  ;;  %v9857_v41 = vshrl.u32 %v2578_v50, 7 }
 0x1bd   : > { %1558 = vmatprep.mubr.f32.mxu0 %v9197_v0  ;;  %7803 = vmatprep.subr.msk.bf16.mxu1 %vm9460_vm4, %v7801_v48 }
 0x1be   : > { %7728 = vmatprep.subr.bf16.mxu0 %v7727_v40  ;;  %v6865_v40 = vld [vmem:[%s11638_s8 + $0x288] sm:$0xff] }
 0x1bf   : > { %6783 = vmatmul.mubr.msk.f32.vlgmr.msra.gmra.mrb[0].mxu0 %vm624_vm7, %v9603_v35  ;;  %7490 = vmatmul.mubr.msk.f32.gmra.mrb[2].mxu1 %vm624_vm7, %v9706_v49  ;;  %v7747_v35 = vpack.c.bf16 %v1913_v61, %v1910_v60  ;;  %v6866_v60 = vld [vmem:[%s11638_s8 + $0x290] sm:$0xff]  ;;  %v6868_v61 = vld [vmem:[%s11638_s8 + $0x2a0] sm:$0xff] }
 0x1c0   : > { %7806 = vmatpush3.bf16.msk.msra.mxu1 %vm9460_vm4, %v7801_v48  ;;  %7500 = vmatprep.mubr.msk.f32.mxu1 %vm624_vm7, %v9716_v54  ;;  %v7921_v48 = vpack.c.bf16 %v6860_v47, %v6858_v36  ;;  %v6890_v36 = vld [vmem:[%s11638_s8 + $0x350] sm:$0xff]  ;;  %v6892_v47 = vld [vmem:[%s11638_s8 + $0x360] sm:$0xff] }
 0x1c1   : > { %1564 = vmatprep.mubr.f32.mxu0 %v9197_v0  ;;  %7730 = vmatpush1.bf16.msra.mxu0 %v7729_v56  ;;  %v6867_v56 = vld [vmem:[%s11638_s8 + $0x298] sm:$0xff] }
 0x1c2   : > { %7733 = vmatprep.subr.msk.bf16.mxu0 %vm9460_vm4, %v7731_v57  ;;  %v6869_v57 = vld [vmem:[%s11638_s8 + $0x2a8] sm:$0xff] }
 0x1c3   : > { %6784 = vmatmul.mubr.msk.f32.gmra.mrb[2].mxu0 %vm624_vm7, %v9612_v51  ;;  %7501 = vmatmul.mubr.msk.f32.vlgmr.msra.gmra.mrb[0].mxu1 %vm624_vm7, %v9725_v62  ;;  %v1909_v51 = vld [vmem:[#allocation6 + $0x240] sm:$0xff]  ;;  %v7927_v58 = vpack.c.bf16 %v6869_v57, %v6867_v56  ;;  %v9964_v56 = vsub.s32 1, %v9857_v41 }
 0x1c4   : > { %7503 = vmatprep.mubr.msk.f32.mxu1 %vm624_vm7, %v9734_v1  ;;  %1570 = vmatprep.mubr.f32.mxu0 %v9197_v0  ;;  %v7749_v7 = vpack.c.bf16 %v1912_v4, %v1909_v51  ;;  %v9875_v51 = vld [vmem:[%s11632_s2] sm:$0x7]  ;;  %v6870_v4 = vld [vmem:[%s11638_s8 + $0x2b0] sm:$0xff] }
 0x1c5   : > { %7736 = vmatpush1.bf16.msk.msra.mxu0 %vm9460_vm4, %v7734_v63  ;;  %v6871_v63 = vld [vmem:[%s11638_s8 + $0x2b8] sm:$0xff]  ;;  %v7933_v6 = vpack.c.bf16 %v6872_v5, %v6870_v4 }
 0x1c6   : > { %7748 = vmatprep.subr.bf16.mxu0 %v7747_v35  ;;  %v6873_v35 = vld [vmem:[%s11638_s8 + $0x2c8] sm:$0xff] }
 0x1c7   : > { %6785 = vmatmul.mubr.msk.f32.gmra.mrb[4].mxu0 %vm624_vm7, %v9619_v55  ;;  %7504 = vmatmul.mubr.msk.f32.gmra.mrb[2].mxu1 %vm624_vm7, %v9745_v3  ;;  %v1918_v55 = vld [vmem:[#allocation6 + $0x288] sm:$0xf] }
 0x1c8   : > { %1576 = vmatprep.mubr.f32.mxu0 %v9197_v0  ;;  %2686 = vmatprep.mubr.f32.mxu1 %v9197_v0  ;;  %v7754_v13 = vpack.c.bf16 %v1918_v55, %v1915_v10 }
 0x1cb   : > { %6786 = vmatmul.mubr.msk.f32.gmra.mrb[6].mxu0 %vm624_vm7, %v9630_v59  ;;  %v2129_v59 = vld [vmem:[#allocation6 + $0x2a0] sm:$0xff] }
 0x1cc   : > { %1782 = vmatprep.mubr.f32.mxu0 %v9197_v0 }
 0x1cf   : > { %6794 = vmatmul.mubr.msk.f32.vlgmr.msra.gmra.mrb[0].mxu0 %vm624_vm7, %v9638_v2  ;;  %v2132_v2 = vld [vmem:[#allocation6 + $0x2b8] sm:$0xff] }
 0x1d0   : > { %1788 = vmatprep.mubr.f32.mxu0 %v9197_v0  ;;  %7750 = vmatpush1.bf16.msra.mxu0 %v7749_v7  ;;  %v6875_v7 = vld [vmem:[%s11638_s8 + $0x2d8] sm:$0xff] }
 0x1d1   : > { %7753 = vmatprep.subr.msk.bf16.mxu0 %vm9460_vm4, %v7751_v8  ;;  %v6877_v8 = vld [vmem:[%s11638_s8 + $0x2e8] sm:$0xff] }
 0x1d2   : > { %v7935_v55 = vpack.c.bf16 %v6877_v8, %v6875_v7 }
 0x1d3   : > { %6795 = vmatmul.mubr.msk.f32.gmra.mrb[2].mxu0 %vm624_vm7, %v9649_v9  ;;  %v7769_v9 = vpack.c.bf16 %v2132_v2, %v2129_v59  ;;  %v6879_v59 = vld [vmem:[%s11638_s8 + $0x2f8] sm:$0xff]  ;;  %v6881_v2 = vld [vmem:[%s11638_s8 + $0x308] sm:$0xff] }
 0x1d4   : > { %1794 = vmatprep.mubr.f32.mxu0 %v9197_v0  ;;  %7756 = vmatpush1.bf16.msk.msra.mxu0 %vm9460_vm4, %v7754_v13 }
 0x1d5   : > { %7768 = vmatprep.subr.bf16.mxu0 %v7767_v16  ;;  %v7937_v16 = vpack.c.bf16 %v6876_v12, %v6874_v11 }
 0x1d7   : > { %6796 = vmatmul.mubr.msk.f32.gmra.mrb[4].mxu0 %vm624_vm7, %v9658_v15  ;;  %v7774_v15 = vpack.c.bf16 %v2138_v22, %v2135_v21  ;;  %v6878_v21 = vld [vmem:[%s11638_s8 + $0x2f0] sm:$0xff]  ;;  %v6880_v22 = vld [vmem:[%s11638_s8 + $0x300] sm:$0xff] }
 0x1d8   : > { %1800 = vmatprep.mubr.f32.mxu0 %v9197_v0 }
 0x1db   : > { %6797 = vmatmul.mubr.msk.f32.gmra.mrb[6].mxu0 %vm624_vm7, %v9669_v19  ;;  %v2356_v19 = vld [vmem:[#allocation6 + $0x318] sm:$0xff] }
 0x1dc   : > { %2006 = vmatprep.mubr.f32.mxu0 %v9197_v0 }
 0x1df   : > { %6805 = vmatmul.mubr.msk.f32.vlgmr.msra.gmra.mrb[0].mxu0 %vm624_vm7, %v9517_v42  ;;  %v2353_v42 = vld [vmem:[#allocation6 + $0x300] sm:$0xff] }
 0x1e0   : > { %2012 = vmatprep.mubr.f32.mxu0 %v9197_v0  ;;  %7770 = vmatpush1.bf16.msra.mxu0 %v7769_v9  ;;  %v7939_v9 = vpack.c.bf16 %v6881_v2, %v6879_v59  ;;  %v2605_v59 = vld [vmem:[%s11637_s7] sm:$0xff] }
 0x1e1   : > { %7773 = vmatprep.subr.msk.bf16.mxu0 %vm9460_vm4, %v7771_v20  ;;  %v9980_v2 = vld [vmem:[#allocation4] sm:$0xff] }
 0x1e3   : > { %6806 = vmatmul.mubr.msk.f32.gmra.mrb[2].mxu0 %vm624_vm7, %v9522_v43  ;;  %v7789_v43 = vpack.c.bf16 %v2356_v19, %v2353_v42  ;;  %v6885_v42 = vld [vmem:[%s11638_s8 + $0x328] sm:$0xff] }
 0x1e4   : > { %2018 = vmatprep.mubr.f32.mxu0 %v9197_v0  ;;  %7776 = vmatpush1.bf16.msk.msra.mxu0 %vm9460_vm4, %v7774_v15  ;;  %v7941_v15 = vpack.c.bf16 %v6880_v22, %v6878_v21  ;;  %v6844_v21 = vld [vmem:[%s11637_s7 + $0x18] sm:$0x3f] }
 0x1e5   : > { %7788 = vmatprep.subr.bf16.mxu0 %v7787_v26  ;;  %v6883_v26 = vld [vmem:[%s11638_s8 + $0x318] sm:$0xff] }
 0x1e6   : > { %v7943_v38 = vpack.c.bf16 %v6885_v42, %v6883_v26  ;;  %v2948_v26 = vld [vmem:[%s11638_s8 + $0x38] sm:$0xff] }
 0x1e7   : > { %6807 = vmatmul.mubr.msk.f32.gmra.mrb[4].mxu0 %vm624_vm7, %v9524_v44  ;;  %v7794_v44 = vpack.c.bf16 %v2362_v30, %v2359_v29  ;;  %v6884_v29 = vld [vmem:[%s11638_s8 + $0x320] sm:$0xff] }
 0x1e8   : > { %2024 = vmatprep.mubr.f32.mxu0 %v9197_v0 }
 0x1eb   : > { %6808 = vmatmul.mubr.msk.f32.gmra.mrb[6].mxu0 %vm624_vm7, %v9530_v45  ;;  %v6855_v45 = vld [vmem:[%s11638_s8 + $0x238] sm:$0xff] }
 0x1ec   : > { %2230 = vmatprep.mubr.f32.mxu0 %v9197_v0 }
 0x1ef   : > { %6816 = vmatmul.mubr.msk.f32.vlgmr.msra.gmra.mrb[0].mxu0 %vm624_vm7, %v9679_v25  ;;  %v6857_v25 = vld [vmem:[%s11638_s8 + $0x248] sm:$0xff] }
 0x1f0   : > { %2236 = vmatprep.mubr.f32.mxu0 %v9197_v0  ;;  %7790 = vmatpush1.bf16.msra.mxu0 %v7789_v43 }
 0x1f1   : > { %7793 = vmatprep.subr.msk.bf16.mxu0 %vm9460_vm4, %v7791_v28  ;;  %v6882_v28 = vld [vmem:[%s11638_s8 + $0x310] sm:$0xff] }
 0x1f3   : > { %6817 = vmatmul.mubr.msk.f32.gmra.mrb[2].mxu0 %vm624_vm7, %v9686_v31  ;;  %v7915_v31 = vpack.c.bf16 %v6857_v25, %v6855_v45  ;;  %v6887_v45 = vld [vmem:[%s11638_s8 + $0x338] sm:$0xff]  ;;  %v6889_v25 = vld [vmem:[%s11638_s8 + $0x348] sm:$0xff] }
 0x1f4   : > { %2242 = vmatprep.mubr.f32.mxu0 %v9197_v0  ;;  %7796 = vmatpush1.bf16.msk.msra.mxu0 %vm9460_vm4, %v7794_v44  ;;  %v7945_v44 = vpack.c.bf16 %v6884_v29, %v6882_v28  ;;  %v2952_v28 = vld [vmem:[%s11638_s8 + $0x58] sm:$0xff] }
 0x1f5   : > { %7916 = vmatprep.subr.bf16.mxu0 %v7915_v31  ;;  %v7947_v31 = vpack.c.bf16 %v6889_v25, %v6887_v45  ;;  %v2951_v45 = vld [vmem:[%s11638_s8 + $0x50] sm:$0xff]  ;;  %v2954_v25 = vld [vmem:[%s11638_s8 + $0x68] sm:$0xff] }
 0x1f7   : > { %6818 = vmatmul.mubr.msk.f32.gmra.mrb[4].mxu0 %vm624_vm7, %v9695_v46  ;;  %v7919_v46 = vpack.c.bf16 %v6861_v34, %v6859_v33  ;;  %v6891_v33 = vld [vmem:[%s11638_s8 + $0x358] sm:$0xff]  ;;  %v6893_v34 = vld [vmem:[%s11638_s8 + $0x368] sm:$0xff] }
 0x1f8   : > { %2248 = vmatprep.mubr.f32.mxu0 %v9197_v0 }
 0x1fb   : > { %6819 = vmatmul.mubr.msk.f32.gmra.mrb[6].mxu0 %vm624_vm7, %v9706_v49  ;;  %v6863_v49 = vld [vmem:[%s11638_s8 + $0x278] sm:$0xff] }
 0x1fc   : > { %2454 = vmatprep.mubr.f32.mxu0 %v9197_v0  ;;  %v7923_v52 = vpack.c.bf16 %v6865_v40, %v6863_v49  ;;  %v6895_v49 = vld [vmem:[%s11638_s8 + $0x378] sm:$0xff]  ;;  %v6897_v40 = vld [vmem:[%s11638_s8 + $0x388] sm:$0xff] }
 0x1fd   : > { %v7955_v50 = vpack.c.bf16 %v6897_v40, %v6895_v49  ;;  %v2959_v49 = vld [vmem:[%s11638_s8 + $0x90] sm:$0xff]  ;;  %v2962_v40 = vld [vmem:[%s11638_s8 + $0xa8] sm:$0xff] }
 0x1ff   : > { %6827 = vmatmul.mubr.msk.f32.vlgmr.msra.gmra.mrb[0].mxu0 %vm624_vm7, %v9716_v54  ;;  %v7925_v54 = vpack.c.bf16 %v6864_v37, %v6862_v53  ;;  %v6896_v53 = vld [vmem:[%s11638_s8 + $0x380] sm:$0xff] }
 0x200   : > { %2460 = vmatprep.mubr.f32.mxu0 %v9197_v0 }
 0x203   : > { %6828 = vmatmul.mubr.msk.f32.gmra.mrb[2].mxu0 %vm624_vm7, %v9725_v62  ;;  %v7929_v62 = vpack.c.bf16 %v6868_v61, %v6866_v60  ;;  %v2585_v61 = vrot.slane %v9875_v51, %v9964_v56 }
 0x204   : > { %2466 = vmatprep.mubr.f32.mxu0 %v9197_v0 }
 0x207   : > { %6829 = vmatmul.mubr.msk.f32.gmra.mrb[4].mxu0 %vm624_vm7, %v9734_v1  ;;  %v2588_v1 = vsub.s32 2, %v9857_v41 }
 0x208   : > { %2472 = vmatprep.mubr.f32.mxu0 %v9197_v0  ;;  %v6856_v0 = vld [vmem:[%s11638_s8 + $0x240] sm:$0xff] }
 0x209   : > { %v7917_v39 = vpack.c.bf16 %v6856_v0, %v6854_v32  ;;  %v2589_v10 = vrot.slane %v9875_v51, %v2588_v1  ;;  %v6886_v32 = vld [vmem:[%s11638_s8 + $0x330] sm:$0xff]  ;;  %v6888_v0 = vld [vmem:[%s11638_s8 + $0x340] sm:$0xff] }
 0x20b   : > { %6830 = vmatmul.mubr.msk.f32.gmra.mrb[6].mxu0 %vm624_vm7, %v9745_v3  ;;  %v7931_v3 = vpack.c.bf16 %v6873_v35, %v6871_v63 }
 0x20c   : > { %7918 = vmatpush1.bf16.msra.mxu0 %v7917_v39  ;;  %v7949_v39 = vpack.c.bf16 %v6888_v0, %v6886_v32 }
 0x20d   : > { %7920 = vmatprep.subr.bf16.mxu0 %v7919_v46  ;;  %v7951_v46 = vpack.c.bf16 %v6893_v34, %v6891_v33  ;;  %v2955_v33 = vld [vmem:[%s11638_s8 + $0x70] sm:$0xff]  ;;  %v2958_v34 = vld [vmem:[%s11638_s8 + $0x88] sm:$0xff] }
 0x210   : > { %7922 = vmatpush1.bf16.msra.mxu0 %v7921_v48  ;;  %v7953_v48 = vpack.c.bf16 %v6892_v47, %v6890_v36 }
 0x211   : > { %7924 = vmatprep.subr.bf16.mxu0 %v7923_v52  ;;  %v6894_v52 = vld [vmem:[%s11638_s8 + $0x370] sm:$0xff] }
 0x212   : > { %v7957_v37 = vpack.c.bf16 %v6896_v53, %v6894_v52 }
 0x214   : > { %7926 = vmatpush1.bf16.msra.mxu0 %v7925_v54  ;;  %v9961_v54 = vsub.s32 0, %v9857_v41 }
 0x215   : > { %7928 = vmatprep.subr.bf16.mxu0 %v7927_v58 }
 0x216   : > { %v2581_v58 = vrot.slane %v9875_v51, %v9961_v54 }
 0x218   : > { %7930 = vmatpush1.bf16.msra.mxu0 %v7929_v62 }
 0x219   : > { %7932 = vmatprep.subr.bf16.mxu0 %v7931_v3 }
 0x21c   : > { %7934 = vmatpush1.bf16.msra.mxu0 %v7933_v6 }
 0x21d   : > { %7936 = vmatprep.subr.bf16.mxu0 %v7935_v55 }
 0x220   : > { %7938 = vmatpush1.bf16.msra.mxu0 %v7937_v16 }
 0x221   : > { %7940 = vmatprep.subr.bf16.mxu0 %v7939_v9  ;;  %v2942_v9 = vld [vmem:[%s11638_s8 + $0x8] sm:$0xff] }
 0x224   : > { %7942 = vmatpush1.bf16.msra.mxu0 %v7941_v15  ;;  %v2943_v15 = vld [vmem:[%s11638_s8 + $0x10] sm:$0xff] }
 0x225   : > { %7944 = vmatprep.subr.bf16.mxu0 %v7943_v38  ;;  %v2947_v38 = vld [vmem:[%s11638_s8 + $0x30] sm:$0xff] }
 0x228   : > { %7946 = vmatpush1.bf16.msra.mxu0 %v7945_v44  ;;  %v2949_v44 = vld [vmem:[%s11638_s8 + $0x40] sm:$0xff] }
 0x229   : > { %7948 = vmatprep.subr.bf16.mxu0 %v7947_v31  ;;  %v2956_v31 = vld [vmem:[%s11638_s8 + $0x78] sm:$0xff]  ;;  %v7857_v32 = vpack.c.bf16 %v2951_v45, %v2949_v44  ;;  %v6898_v44 = vld [vmem:[%s11638_s8 + $0x390] sm:$0xff]  ;;  %v6900_v45 = vld [vmem:[%s11638_s8 + $0x3a0] sm:$0xff] }
 0x22a   : > { %v7859_v0 = vpack.c.bf16 %v2956_v31, %v2954_v25  ;;  %v7961_v25 = vpack.c.bf16 %v6900_v45, %v6898_v44  ;;  %v2990_v31 = vld [vmem:[%s11638_s8 + $0x188] sm:$0xff] }
 0x22c   : > { %7950 = vmatpush1.bf16.msra.mxu0 %v7949_v39  ;;  %v2953_v39 = vld [vmem:[%s11638_s8 + $0x60] sm:$0xff] }
 0x22d   : > { %7952 = vmatprep.subr.bf16.mxu0 %v7951_v46  ;;  %v2960_v46 = vld [vmem:[%s11638_s8 + $0x98] sm:$0xff]  ;;  %v7861_v36 = vpack.c.bf16 %v2955_v33, %v2953_v39  ;;  %v6905_v33 = vld [vmem:[%s11638_s8 + $0x3c8] sm:$0xff] }
 0x22e   : > { %v7863_v47 = vpack.c.bf16 %v2960_v46, %v2958_v34  ;;  %v2989_v34 = vld [vmem:[%s11638_s8 + $0x180] sm:$0xff]  ;;  %v2991_v46 = vld [vmem:[%s11638_s8 + $0x190] sm:$0xff] }
 0x230   : > { %7954 = vmatpush1.bf16.msra.mxu0 %v7953_v48  ;;  %v2957_v48 = vld [vmem:[%s11638_s8 + $0x80] sm:$0xff] }
 0x231   : > { %7956 = vmatprep.subr.bf16.mxu0 %v7955_v50  ;;  %v2964_v50 = vld [vmem:[%s11638_s8 + $0xb8] sm:$0xff]  ;;  %v7865_v52 = vpack.c.bf16 %v2959_v49, %v2957_v48  ;;  %v6902_v48 = vld [vmem:[%s11638_s8 + $0x3b0] sm:$0xff]  ;;  %v6904_v49 = vld [vmem:[%s11638_s8 + $0x3c0] sm:$0xff] }
 0x232   : > { %v7867_v53 = vpack.c.bf16 %v2964_v50, %v2962_v40  ;;  %v7965_v40 = vpack.c.bf16 %v6904_v49, %v6902_v48  ;;  %v2994_v50 = vld [vmem:[%s11638_s8 + $0x1a8] sm:$0xff] }
 0x234   : > { %7958 = vmatpush1.bf16.msra.mxu0 %v7957_v37  ;;  %v2961_v37 = vld [vmem:[%s11638_s8 + $0xa0] sm:$0xff] }
 0x296   : > { %v7502_v13 = vpop.f32.mrb[0].mxu1 }
 0x297   : > { %v2598_v17 = vadd.f32 %v7502_v13, %v2589_v10  ;;  %v2545_v18 = vpop.f32.mrb[1].mxu1 }
 0x298   : > { %v2595_v20 = vadd.f32 %v2589_v10, %v2545_v18  ;;  %v6843_v18 = vld [vmem:[%s11637_s7 + $0x10] sm:$0xff] }
 0x29a   : > { %v9908_v23 = vpack.c.bf16 %v2598_v17, %v2595_v20  ;;  %v7505_v24 = vpop.f32.mrb[2].mxu1  ;;  %v2606_v17 = vld [vmem:[%s11637_s7 + $0x8] sm:$0x3f]  ;;  %v2944_v20 = vld [vmem:[%s11638_s8 + $0x18] sm:$0xff] }
 0x29b   : > { %v2604_v19 = vadd.f32 %v7505_v24, %v2589_v10  ;;  %v2555_v27 = vpop.f32.mrb[3].mxu1  ;;  %v7847_v22 = vpack.c.bf16 %v2944_v20, %v2942_v9  ;;  %v2941_v24 = vld [vmem:[%s11638_s8] sm:$0xff]  ;;  %v2982_v9 = vld [vmem:[%s11638_s8 + $0x148] sm:$0xff]  ;;  %v2984_v20 = vld [vmem:[%s11638_s8 + $0x158] sm:$0xff] }
 0x29c   : > { %v2601_v43 = vadd.f32 %v2589_v10, %v2555_v27  ;;  %v7849_v42 = vpack.c.bf16 %v2943_v15, %v2941_v24  ;;  %v2945_v27 = vld [vmem:[%s11638_s8 + $0x20] sm:$0xff]  ;;  %v2983_v15 = vld [vmem:[%s11638_s8 + $0x150] sm:$0xff] }
 0x29d   : > { %v7853_v29 = vpack.c.bf16 %v2947_v38, %v2945_v27  ;;  %v2981_v24 = vld [vmem:[%s11638_s8 + $0x140] sm:$0xff]  ;;  %v6901_v38 = vld [vmem:[%s11638_s8 + $0x3a8] sm:$0xff] }
 0x29e   : > { %v9922_v30 = vpack.c.bf16 %v2604_v19, %v2601_v43  ;;  %v2950_v43 = vld [vmem:[%s11638_s8 + $0x48] sm:$0xff] }
 0x2d2   : > { %v2456_v57 = vpop.f32.mrb[0].mxu0 }
 0x2d3   : > { %v2458_v60 = vpop.f32.mrb[1].mxu0  ;;  %v2593_v63 = vadd.f32 %v2581_v58, %v2456_v57  ;;  %v2963_v57 = vld [vmem:[%s11638_s8 + $0xb0] sm:$0xff] }
 0x2d4   : > { %v2594_v3 = vadd.f32 %v2585_v61, %v2458_v60  ;;  %v2968_v60 = vld [vmem:[%s11638_s8 + $0xd8] sm:$0xff] }
 0x2d6   : > { %v2462_v62 = vpop.f32.mrb[2].mxu0 }
 0x2d7   : > { %v2596_v35 = vadd.f32 %v2581_v58, %v2462_v62  ;;  %v2464_v1 = vpop.f32.mrb[3].mxu0 }
 0x2d8   : > { %v2597_v4 = vadd.f32 %v2585_v61, %v2464_v1  ;;  %v2970_v1 = vld [vmem:[%s11638_s8 + $0xe8] sm:$0xff] }
 0x2d9   : > { %v7809_v5 = vpack.c.bf16 %v2596_v35, %v2593_v63  ;;  %v2965_v63 = vld [vmem:[%s11638_s8 + $0xc0] sm:$0xff]  ;;  %v2967_v35 = vld [vmem:[%s11638_s8 + $0xd0] sm:$0xff] }
 0x2da   : > { %v7807_v6 = vpack.c.bf16 %v2597_v4, %v2594_v3  ;;  %v2468_v7 = vpop.f32.mrb[4].mxu0  ;;  %v2972_v3 = vld [vmem:[%s11638_s8 + $0xf8] sm:$0xff]  ;;  %v7873_v4 = vpack.c.bf16 %v2967_v35, %v2965_v63  ;;  %v6906_v63 = vld [vmem:[%s11638_s8 + $0x3d0] sm:$0xff]  ;;  %v6908_v35 = vld [vmem:[%s11638_s8 + $0x3e0] sm:$0xff] }
 0x2db   : > { %v2470_v8 = vpop.f32.mrb[5].mxu0  ;;  %v2599_v10 = vadd.f32 %v2581_v58, %v2468_v7  ;;  %v2971_v7 = vld [vmem:[%s11638_s8 + $0xf0] sm:$0xff] }
 0x2dc   : > { %7808 = vmatprep.subr.bf16.mxu1 %v7807_v6  ;;  %v2600_v12 = vadd.f32 %v2585_v61, %v2470_v8  ;;  %v2974_v8 = vld [vmem:[%s11638_s8 + $0x108] sm:$0xff] }
 0x2dd   : > { %7810 = vmatpush1.bf16.msra.mxu1 %v7809_v5 }
 0x2de   : > { %v2474_v41 = vpop.f32.mrb[6].mxu0 }
 0x2df   : > { %v2602_v55 = vadd.f32 %v2581_v58, %v2474_v41  ;;  %v2476_v11 = vpop.f32.mrb[7].mxu0  ;;  %v2966_v58 = vld [vmem:[%s11638_s8 + $0xc8] sm:$0xff]  ;;  %v2976_v41 = vld [vmem:[%s11638_s8 + $0x118] sm:$0xff] }
 0x2e0   : > { %v2603_v13 = vadd.f32 %v2585_v61, %v2476_v11  ;;  %v7869_v61 = vpack.c.bf16 %v2963_v57, %v2961_v37  ;;  %v7871_v62 = vpack.c.bf16 %v2968_v60, %v2966_v58  ;;  %v2973_v11 = vld [vmem:[%s11638_s8 + $0x100] sm:$0xff]  ;;  %v6909_v57 = vld [vmem:[%s11638_s8 + $0x3e8] sm:$0xff]  ;;  %v2995_v60 = vld [vmem:[%s11638_s8 + $0x1b0] sm:$0xff] }
 0x2e1   : > { %v7814_v16 = vpack.c.bf16 %v2602_v55, %v2599_v10  ;;  %v7879_v55 = vpack.c.bf16 %v2976_v41, %v2974_v8  ;;  %v2993_v58 = vld [vmem:[%s11638_s8 + $0x1a0] sm:$0xff] }
 0x2e2   : > { %v7811_v51 = vpack.c.bf16 %v2603_v13, %v2600_v12  ;;  %v2975_v12 = vld [vmem:[%s11638_s8 + $0x110] sm:$0xff]  ;;  %v2978_v13 = vld [vmem:[%s11638_s8 + $0x128] sm:$0xff]  ;;  %v2997_v41 = vld [vmem:[%s11638_s8 + $0x1c0] sm:$0xff] }
 0x2e4   : > { %7813 = vmatprep.subr.msk.bf16.mxu1 %vm9460_vm4, %v7811_v51 }
 0x2e5   : > { %7816 = vmatpush1.bf16.msk.msra.mxu1 %vm9460_vm4, %v7814_v16 }
 0x2e6   : > { %7818 = vmatprep.subr.bf16.mxu1 %v9908_v23 }
 0x2e8   : > { %6838 = vmatmul.mubr.msk.f32.vlgmr.msra.gmra.mrb[4].mxu1 %vm624_vm7, %v2605_v59 }
 0x2e9   : > { %7820 = vmatpush3.bf16.msra.mxu1 %v9908_v23  ;;  %2692 = vmatprep.mubr.f32.mxu1 %v9980_v2 }
 0x2ea   : > { %7823 = vmatprep.subr.msk.bf16.mxu1 %vm9460_vm4, %v9922_v30 }
 0x2ec   : > { %6839 = vmatmul.mubr.msk.f32.gmra.mrb[6].mxu1 %vm624_vm7, %v2606_v17 }
 0x2ed   : > { %7826 = vmatpush3.bf16.msk.msra.mxu1 %vm9460_vm4, %v9922_v30  ;;  %7514 = vmatprep.mubr.msk.f32.mxu1 %vm624_vm7, %v2605_v59 }
 0x2ee   : > { %7828 = vmatprep.subr.bf16.mxu1 %v7807_v6  ;;  %v2969_v6 = vld [vmem:[%s11638_s8 + $0xe0] sm:$0xff] }
 0x2ef   : > { %v7877_v10 = vpack.c.bf16 %v2971_v7, %v2969_v6  ;;  %v6913_v6 = vld [vmem:[%s11638_s8 + $0x408] sm:$0xff] }
 0x2f0   : > { %7515 = vmatmul.mubr.msk.f32.vlgmr.msra.gmra.mrb[8].mxu1 %vm624_vm7, %v2606_v17  ;;  %v2977_v17 = vld [vmem:[%s11638_s8 + $0x120] sm:$0xff] }
 0x2f1   : > { %7830 = vmatpush1.bf16.msra.mxu1 %v7809_v5  ;;  %2847 = vmatprep.mubr.f32.mxu1 %v9980_v2  ;;  %v7875_v5 = vpack.c.bf16 %v2972_v3, %v2970_v1  ;;  %v2998_v1 = vld [vmem:[%s11638_s8 + $0x1c8] sm:$0xff]  ;;  %v7969_v3 = vpack.c.bf16 %v6908_v35, %v6906_v63  ;;  %v3413_v35 = vld [vmem:[%s11633_s3] sm:$0xff] }
 0x2f2   : > { %7833 = vmatprep.subr.msk.bf16.mxu1 %vm9460_vm4, %v7811_v51  ;;  %v7881_v51 = vpack.c.bf16 %v2975_v12, %v2973_v11  ;;  %v6912_v12 = vld [vmem:[%s11638_s8 + $0x400] sm:$0xff] }
 0x2f5   : > { %7836 = vmatpush1.bf16.msk.msra.mxu1 %vm9460_vm4, %v7814_v16  ;;  %v2980_v16 = vld [vmem:[%s11638_s8 + $0x138] sm:$0xff] }
 0x2f6   : > { %7838 = vmatprep.subr.bf16.mxu1 %v9908_v23  ;;  %v7883_v59 = vpack.c.bf16 %v2980_v16, %v2978_v13  ;;  %v3002_v16 = vld [vmem:[%s11638_s8 + $0x1e8] sm:$0xff] }
 0x2f8   : > { %6847 = vmatmul.mubr.msk.f32.vlgmr.msra.gmra.mrb[10].mxu1 %vm624_vm7, %v6843_v18 }
 0x2f9   : > { %7840 = vmatpush3.bf16.msra.mxu1 %v9908_v23  ;;  %2853 = vmatprep.mubr.f32.mxu1 %v9980_v2  ;;  %v2946_v23 = vld [vmem:[%s11638_s8 + $0x28] sm:$0xff] }
 0x2fa   : > { %7843 = vmatprep.subr.msk.bf16.mxu1 %vm9460_vm4, %v9922_v30  ;;  %v7851_v19 = vpack.c.bf16 %v2948_v26, %v2946_v23  ;;  %v7889_v23 = vpack.c.bf16 %v2983_v15, %v2981_v24  ;;  %v2986_v26 = vld [vmem:[%s11638_s8 + $0x168] sm:$0xff]  ;;  %v6914_v24 = vld [vmem:[%s11638_s8 + $0x410] sm:$0xff]  ;;  %v6916_v15 = vld [vmem:[%s11638_s8 + $0x420] sm:$0xff] }
 0x2fc   : > { %6848 = vmatmul.mubr.msk.f32.gmra.mrb[12].mxu1 %vm624_vm7, %v6844_v21 }
 0x2fd   : > { %7846 = vmatpush3.bf16.msk.msra.mxu1 %vm9460_vm4, %v9922_v30  ;;  %7525 = vmatprep.mubr.msk.f32.mxu1 %vm624_vm7, %v6843_v18  ;;  %v7855_v30 = vpack.c.bf16 %v2952_v28, %v2950_v43  ;;  %v2979_v18 = vld [vmem:[%s11638_s8 + $0x130] sm:$0xff]  ;;  %v2985_v43 = vld [vmem:[%s11638_s8 + $0x160] sm:$0xff] }
 0x2fe   : > { %7848 = vmatprep.subr.bf16.mxu1 %v7847_v22  ;;  %v7887_v22 = vpack.c.bf16 %v2984_v20, %v2982_v9  ;;  %v2987_v28 = vld [vmem:[%s11638_s8 + $0x170] sm:$0xff]  ;;  %v3001_v9 = vld [vmem:[%s11638_s8 + $0x1e0] sm:$0xff] }
 0x2ff   : > { %v3003_v20 = vld [vmem:[%s11638_s8 + $0x1f0] sm:$0xff] }
 0x300   : > { %7526 = vmatmul.mubr.msk.f32.vlgmr.msra.gmra.mrb[14].mxu1 %vm624_vm7, %v6844_v21  ;;  %v7885_v21 = vpack.c.bf16 %v2979_v18, %v2977_v17  ;;  %v6917_v18 = vld [vmem:[%s11638_s8 + $0x428] sm:$0xff]  ;;  %vm6337_vm7 = vcmask 976896  }
 0x301   : > { %7850 = vmatpush1.bf16.msra.mxu1 %v7849_v42  ;;  %v2988_v42 = vld [vmem:[%s11638_s8 + $0x178] sm:$0xff] }
 0x302   : > { %7852 = vmatprep.subr.bf16.mxu1 %v7851_v19  ;;  %v6899_v19 = vld [vmem:[%s11638_s8 + $0x398] sm:$0xff]  ;;  %v7891_v27 = vpack.c.bf16 %v2988_v42, %v2986_v26  ;;  %v3006_v26 = vld [vmem:[%s11638_s8 + $0x208] sm:$0xff] }
 0x303   : > { %v3008_v42 = vld [vmem:[%s11638_s8 + $0x218] sm:$0xff] }
 0x305   : > { %7854 = vmatpush1.bf16.msra.mxu1 %v7853_v29  ;;  %v7959_v29 = vpack.c.bf16 %v6901_v38, %v6899_v19  ;;  %v6919_v19 = vld [vmem:[%s11638_s8 + $0x438] sm:$0xff]  ;;  %v6921_v38 = vld [vmem:[%s11638_s8 + $0x448] sm:$0xff] }
 0x306   : > { %7856 = vmatprep.subr.bf16.mxu1 %v7855_v30  ;;  %v7893_v30 = vpack.c.bf16 %v2987_v28, %v2985_v43  ;;  %v7979_v43 = vpack.c.bf16 %v6921_v38, %v6919_v19  ;;  %v3431_v19 = vld [vmem:[%s11633_s3 + $0x90] sm:$0xff]  ;;  %v3434_v38 = vld [vmem:[%s11633_s3 + $0xa8] sm:$0xff] }
 0x307   : > { %7960 = vmatprep.subr.bf16.mxu0 %v7959_v29 }
 0x308   : > { %7962 = vmatpush1.bf16.msra.mxu0 %v7961_v25 }
 0x309   : > { %7858 = vmatpush1.bf16.msra.mxu1 %v7857_v32  ;;  %v2992_v32 = vld [vmem:[%s11638_s8 + $0x198] sm:$0xff] }
 0x30a   : > { %7860 = vmatprep.subr.bf16.mxu1 %v7859_v0  ;;  %v6903_v0 = vld [vmem:[%s11638_s8 + $0x3b8] sm:$0xff]  ;;  %v7895_v39 = vpack.c.bf16 %v2992_v32, %v2990_v31  ;;  %v3005_v31 = vld [vmem:[%s11638_s8 + $0x200] sm:$0xff]  ;;  %v3007_v32 = vld [vmem:[%s11638_s8 + $0x210] sm:$0xff] }
 0x30d   : > { %7862 = vmatpush1.bf16.msra.mxu1 %v7861_v36  ;;  %v7963_v36 = vpack.c.bf16 %v6905_v33, %v6903_v0  ;;  %v6918_v0 = vld [vmem:[%s11638_s8 + $0x430] sm:$0xff] }
 0x30e   : > { %7864 = vmatprep.subr.bf16.mxu1 %v7863_v47  ;;  %v7897_v47 = vpack.c.bf16 %v2991_v46, %v2989_v34 }
 0x30f   : > { %7964 = vmatprep.subr.bf16.mxu0 %v7963_v36 }
 0x310   : > { %7966 = vmatpush1.bf16.msra.mxu0 %v7965_v40  ;;  %v3010_v40 = vld [vmem:[%s11638_s8 + $0x228] sm:$0xff] }
 0x311   : > { %7866 = vmatpush1.bf16.msra.mxu1 %v7865_v52  ;;  %v2996_v52 = vld [vmem:[%s11638_s8 + $0x1b8] sm:$0xff] }
 0x312   : > { %7868 = vmatprep.subr.bf16.mxu1 %v7867_v53  ;;  %v6907_v53 = vld [vmem:[%s11638_s8 + $0x3d8] sm:$0xff]  ;;  %v7899_v37 = vpack.c.bf16 %v2996_v52, %v2994_v50 }
 0x313   : > { %v6923_v50 = vld [vmem:[%s11638_s8 + $0x458] sm:$0xff] }
 0x315   : > { %7870 = vmatpush1.bf16.msra.mxu1 %v7869_v61  ;;  %v7967_v61 = vpack.c.bf16 %v6909_v57, %v6907_v53  ;;  %v3416_v57 = vld [vmem:[%s11633_s3 + $0x18] sm:$0xff] }
 0x316   : > { %7872 = vmatprep.subr.bf16.mxu1 %v7871_v62  ;;  %v7901_v62 = vpack.c.bf16 %v2995_v60, %v2993_v58  ;;  %v3009_v60 = vld [vmem:[%s11638_s8 + $0x220] sm:$0xff] }
 0x317   : > { %7968 = vmatprep.subr.bf16.mxu0 %v7967_v61 }
 0x318   : > { %7970 = vmatpush1.bf16.msra.mxu0 %v7969_v3 }
 0x319   : > { %7874 = vmatpush1.bf16.msra.mxu1 %v7873_v4  ;;  %v3000_v4 = vld [vmem:[%s11638_s8 + $0x1d8] sm:$0xff] }
 0x31a   : > { %7876 = vmatprep.subr.bf16.mxu1 %v7875_v5  ;;  %v6911_v5 = vld [vmem:[%s11638_s8 + $0x3f8] sm:$0xff]  ;;  %v7903_v7 = vpack.c.bf16 %v3000_v4, %v2998_v1  ;;  %v3415_v1 = vld [vmem:[%s11633_s3 + $0x10] sm:$0xff] }
 0x31b   : > { %v7971_v8 = vpack.c.bf16 %v6913_v6, %v6911_v5  ;;  %v3418_v5 = vld [vmem:[%s11633_s3 + $0x28] sm:$0xff]  ;;  %v3420_v6 = vld [vmem:[%s11633_s3 + $0x38] sm:$0xff] }
 0x31d   : > { %7878 = vmatpush1.bf16.msra.mxu1 %v7877_v10  ;;  %v2999_v10 = vld [vmem:[%s11638_s8 + $0x1d0] sm:$0xff]  ;;  %7972 = vmatprep.subr.bf16.mxu0 %v7971_v8  ;;  %v8013_v8 = vpack.c.bf16 %v3415_v1, %v3413_v35 }
 0x31e   : > { %7880 = vmatprep.subr.bf16.mxu1 %v7879_v55  ;;  %v6910_v55 = vld [vmem:[%s11638_s8 + $0x3f0] sm:$0xff]  ;;  %v7905_v11 = vpack.c.bf16 %v2999_v10, %v2997_v41  ;;  %v8015_v41 = vpack.c.bf16 %v3420_v6, %v3418_v5  ;;  %v3417_v10 = vld [vmem:[%s11633_s3 + $0x20] sm:$0xff]  ;;  %v6929_v5 = vld [vmem:[%s11633_s3 + $0x108] sm:$0xff] }
 0x31f   : > { %v7973_v13 = vpack.c.bf16 %v6912_v12, %v6910_v55  ;;  %v3419_v55 = vld [vmem:[%s11633_s3 + $0x30] sm:$0xff]  ;;  %v3424_v12 = vld [vmem:[%s11633_s3 + $0x58] sm:$0xff] }
 0x321   : > { %7882 = vmatpush1.bf16.msra.mxu1 %v7881_v51  ;;  %v3004_v51 = vld [vmem:[%s11638_s8 + $0x1f8] sm:$0xff]  ;;  %7974 = vmatpush1.bf16.msra.mxu0 %v7973_v13  ;;  %v8017_v13 = vpack.c.bf16 %v3419_v55, %v3417_v10  ;;  %v6926_v55 = vld [vmem:[%s11633_s3 + $0xf0] sm:$0xff] }
 0x322   : > { %7884 = vmatprep.subr.bf16.mxu1 %v7883_v59  ;;  %v6915_v59 = vld [vmem:[%s11638_s8 + $0x418] sm:$0xff]  ;;  %v7907_v17 = vpack.c.bf16 %v3004_v51, %v3002_v16  ;;  %v3421_v51 = vld [vmem:[%s11633_s3 + $0x40] sm:$0xff] }
 0x325   : > { %7886 = vmatpush1.bf16.msra.mxu1 %v7885_v21  ;;  %v7975_v21 = vpack.c.bf16 %v6917_v18, %v6915_v59  ;;  %v3423_v59 = vld [vmem:[%s11633_s3 + $0x50] sm:$0xff]  ;;  %v3428_v18 = vld [vmem:[%s11633_s3 + $0x78] sm:$0xff] }
 0x326   : > { %7888 = vmatprep.subr.bf16.mxu1 %v7887_v22  ;;  %v7909_v22 = vpack.c.bf16 %v3003_v20, %v3001_v9  ;;  %v8021_v9 = vpack.c.bf16 %v3423_v59, %v3421_v51 }
 0x327   : > { %7976 = vmatprep.subr.bf16.mxu0 %v7975_v21  ;;  %v3425_v21 = vld [vmem:[%s11633_s3 + $0x60] sm:$0xff] }
 0x329   : > { %7890 = vmatpush1.bf16.msra.mxu1 %v7889_v23  ;;  %v7977_v23 = vpack.c.bf16 %v6916_v15, %v6914_v24  ;;  %v3430_v24 = vld [vmem:[%s11633_s3 + $0x88] sm:$0xff]  ;;  %v3432_v15 = vld [vmem:[%s11633_s3 + $0x98] sm:$0xff] }
 0x32a   : > { %7892 = vmatprep.subr.bf16.mxu1 %v7891_v27  ;;  %v7911_v27 = vpack.c.bf16 %v3008_v42, %v3006_v26  ;;  %v8027_v26 = vpack.c.bf16 %v3432_v15, %v3430_v24  ;;  %v3429_v42 = vld [vmem:[%s11633_s3 + $0x80] sm:$0xff]  ;;  %v6931_v24 = vld [vmem:[%s11633_s3 + $0x118] sm:$0xff]  ;;  %v6933_v15 = vld [vmem:[%s11633_s3 + $0x128] sm:$0xff] }
 0x32b   : > { %7978 = vmatpush1.bf16.msra.mxu0 %v7977_v23 }
 0x32c   : > { %7980 = vmatprep.subr.bf16.mxu0 %v7979_v43  ;;  %v3436_v43 = vld [vmem:[%s11633_s3 + $0xb8] sm:$0xff] }
 0x32d   : > { %7894 = vmatpush1.bf16.msra.mxu1 %v7893_v30 }
 0x32e   : > { %7896 = vmatprep.subr.bf16.mxu1 %v7895_v39  ;;  %v6920_v39 = vld [vmem:[%s11638_s8 + $0x440] sm:$0xff] }
 0x32f   : > { %v7981_v48 = vpack.c.bf16 %v6920_v39, %v6918_v0  ;;  %v3439_v0 = vld [vmem:[%s11633_s3 + $0xd0] sm:$0xff] }
 0x331   : > { %7898 = vmatpush1.bf16.msra.mxu1 %v7897_v47  ;;  %v7913_v47 = vpack.c.bf16 %v3007_v32, %v3005_v31  ;;  %v3437_v32 = vld [vmem:[%s11633_s3 + $0xc0] sm:$0xff] }
 0x332   : > { %7900 = vmatprep.subr.bf16.mxu1 %v7899_v37  ;;  %v3414_v37 = vld [vmem:[%s11633_s3 + $0x8] sm:$0xff]  ;;  %v8037_v39 = vpack.c.bf16 %v3439_v0, %v3437_v32 }
 0x333   : > { %v8011_v63 = vpack.c.bf16 %v3416_v57, %v3414_v37 }
 0x335   : > { %7902 = vmatpush1.bf16.msra.mxu1 %v7901_v62  ;;  %v6922_v62 = vld [vmem:[%s11638_s8 + $0x450] sm:$0xff] }
 0x336   : > { %7904 = vmatprep.subr.bf16.mxu1 %v7903_v7 }
 0x339   : > { %7906 = vmatpush1.bf16.msra.mxu1 %v7905_v11  ;;  %v3422_v11 = vld [vmem:[%s11633_s3 + $0x48] sm:$0xff] }
 0x33a   : > { %7908 = vmatprep.subr.bf16.mxu1 %v7907_v17  ;;  %v8019_v16 = vpack.c.bf16 %v3424_v12, %v3422_v11  ;;  %v3426_v17 = vld [vmem:[%s11633_s3 + $0x68] sm:$0xff]  ;;  %v6928_v11 = vld [vmem:[%s11633_s3 + $0x100] sm:$0xff] }
 0x33b   : > { %v8023_v20 = vpack.c.bf16 %v3428_v18, %v3426_v17  ;;  %v7985_v51 = vpack.c.bf16 %v6928_v11, %v6926_v55  ;;  %v6968_v18 = vld [vmem:[%s11633_s3 + $0x220] sm:$0xff]  ;;  %v6985_v55 = vld [vmem:[%s11633_s3 + $0x2a8] sm:$0xff] }
 0x33d   : > { %7910 = vmatpush1.bf16.msra.mxu1 %v7909_v22  ;;  %v3427_v22 = vld [vmem:[%s11633_s3 + $0x70] sm:$0xff] }
 0x33e   : > { %7912 = vmatprep.subr.bf16.mxu1 %v7911_v27  ;;  %v8025_v23 = vpack.c.bf16 %v3427_v22, %v3425_v21  ;;  %v8029_v27 = vpack.c.bf16 %v3431_v19, %v3429_v42  ;;  %v6973_v22 = vld [vmem:[%s11633_s3 + $0x248] sm:$0xff]  ;;  %v7987_v42 = vpack.c.bf16 %v6933_v15, %v6931_v24  ;;  %v6930_v19 = vld [vmem:[%s11633_s3 + $0x110] sm:$0xff]  ;;  %v6947_v15 = vld [vmem:[%s11633_s3 + $0x198] sm:$0xff] }
 0x3bb   : > { %v2688_v28 = vpop.f32.mrb[4].mxu1 }
 0x3bc   : > { %v2690_v29 = vpop.f32.mrb[5].mxu1 }
 0x3bf   : > { %v2694_v30 = vpop.f32.mrb[6].mxu1 }
 0x3c0   : > { %v2696_v44 = vpop.f32.mrb[7].mxu1 }
 0x3c3   : > { %v7516_v45 = vpop.f32.mrb[8].mxu1 }
 0x3c4   : > { %v2765_v25 = vpop.f32.mrb[9].mxu1 }
 0x3cb   : > { %v2849_v33 = vpop.f32.mrb[10].mxu1 }
 0x3cc   : > { %v2935_v34 = vmax.f32 %v2688_v28, %v2849_v33  ;;  %v2851_v46 = vpop.f32.mrb[11].mxu1  ;;  %v8031_v28 = vpack.c.bf16 %v3436_v43, %v3434_v38  ;;  %v3442_v33 = vld [vmem:[%s11633_s3 + $0xe8] sm:$0xff] }
 0x3cd   : > { %v2936_v36 = vmax.f32 %v2690_v29, %v2851_v46  ;;  %v3433_v29 = vld [vmem:[%s11633_s3 + $0xa0] sm:$0xff]  ;;  %v6961_v46 = vld [vmem:[%s11633_s3 + $0x1e8] sm:$0xff] }
 0x3cf   : > { %v2855_v49 = vpop.f32.mrb[12].mxu1  ;;  %3082 = vmatprep.mubr.f32.mxu1 %v2936_v36  ;;  %3307 = vmatprep.mubr.f32.mxu0 %v2936_v36  ;;  %v6963_v36 = vld [vmem:[%s11633_s3 + $0x1f8] sm:$0xff] }
 0x3d0   : > { %v2938_v52 = vmax.f32 %v2694_v30, %v2855_v49  ;;  %v2857_v53 = vpop.f32.mrb[13].mxu1  ;;  %3083 = vmatmul.mubr.f32.vlgmr.msra.gmra.mrb[16].mxu1 %v2935_v34  ;;  %3308 = vmatmul.mubr.f32.vlgmr.msra.gmra.mrb[8].mxu0 %v2935_v34  ;;  %v3435_v30 = vld [vmem:[%s11633_s3 + $0xb0] sm:$0xff]  ;;  %v3441_v34 = vld [vmem:[%s11633_s3 + $0xe0] sm:$0xff] }
 0x3d1   : > { %v2939_v58 = vmax.f32 %v2696_v44, %v2857_v53  ;;  %7914 = vmatpush1.bf16.msra.mxu1 %v7913_v47  ;;  %7982 = vmatpush1.bf16.msra.mxu0 %v7981_v48  ;;  %v8033_v44 = vpack.c.bf16 %v3435_v30, %v3433_v29  ;;  %v8039_v47 = vpack.c.bf16 %v6963_v36, %v6961_v46  ;;  %v6960_v48 = vld [vmem:[%s11633_s3 + $0x1e0] sm:$0xff]  ;;  %v6962_v49 = vld [vmem:[%s11633_s3 + $0x1f0] sm:$0xff]  ;;  %v6967_v53 = vld [vmem:[%s11633_s3 + $0x218] sm:$0xff] }
 0x3d2   : > { %3099 = vmatprep.subr.mxu1 %v3010_v40  ;;  %3324 = vmatprep.subr.mxu0 %v6923_v50  ;;  %v6974_v30 = vld [vmem:[%s11633_s3 + $0x250] sm:$0xff]  ;;  %v6936_v36 = vld [vmem:[%s11633_s3 + $0x140] sm:$0xff] }
 0x3d3   : > { %v7527_v61 = vpop.f32.mrb[14].mxu1  ;;  %3088 = vmatprep.mubr.f32.mxu1 %v2939_v58  ;;  %3313 = vmatprep.mubr.f32.mxu0 %v2939_v58  ;;  %v6934_v46 = vld [vmem:[%s11633_s3 + $0x130] sm:$0xff] }
 0x3d4   : > { %v2940_v3 = vmax.f32 %v7516_v45, %v7527_v61  ;;  %v2926_v4 = vpop.f32.mrb[15].mxu1  ;;  %3089 = vmatmul.mubr.f32.gmra.mrb[18].mxu1 %v2938_v52  ;;  %3314 = vmatmul.mubr.f32.gmra.mrb[10].mxu0 %v2938_v52  ;;  %v3438_v45 = vld [vmem:[%s11633_s3 + $0xc8] sm:$0xff]  ;;  %v8041_v61 = vpack.c.bf16 %v6962_v49, %v6960_v48  ;;  %v6978_v49 = vld [vmem:[%s11633_s3 + $0x270] sm:$0xff] }
 0x3d5   : > { %v2937_v7 = vmax.f32 %v2765_v25, %v2926_v4  ;;  %3100 = vmatpush1.msra.mxu1 %v3009_v60  ;;  %3159 = vmatprep.mubr.f32.mxu1 %v9980_v2  ;;  %v3440_v25 = vld [vmem:[%s11633_s3 + $0xd8] sm:$0xff]  ;;  %v6965_v52 = vld [vmem:[%s11633_s3 + $0x208] sm:$0xff] }
 0x3d6   : > { %3325 = vmatpush1.msra.mxu0 %v6922_v62  ;;  %3384 = vmatprep.mubr.f32.mxu0 %v9980_v2  ;;  %v8035_v31 = vpack.c.bf16 %v3440_v25, %v3438_v45  ;;  %v6964_v62 = vld [vmem:[%s11633_s3 + $0x200] sm:$0xff]  ;;  %v8043_v1 = vpack.c.bf16 %v6967_v53, %v6965_v52  ;;  %v6927_v4 = vld [vmem:[%s11633_s3 + $0xf8] sm:$0xff]  ;;  %v6937_v45 = vld [vmem:[%s11633_s3 + $0x148] sm:$0xff] }
 0x3d7   : > { %8012 = vmatprep.subr.bf16.mxu1 %v8011_v63  ;;  %v6966_v63 = vld [vmem:[%s11633_s3 + $0x210] sm:$0xff]  ;;  %v7983_v10 = vpack.c.bf16 %v6929_v5, %v6927_v4  ;;  %v6977_v25 = vld [vmem:[%s11633_s3 + $0x268] sm:$0xff]  ;;  %v6983_v53 = vld [vmem:[%s11633_s3 + $0x298] sm:$0xff] }
 0x3d8   : > { %6852 = vmatmul.mubr.msk.f32.vlgmr.msra.gmra.mrb[16].mxu1 %vm3011_vm8, %v2937_v7  ;;  %6924 = vmatmul.mubr.msk.f32.vlgmr.msra.gmra.mrb[8].mxu0 %vm3011_vm8, %v2937_v7  ;;  %v8045_v17 = vpack.c.bf16 %v6966_v63, %v6964_v62  ;;  %v6982_v4 = vld [vmem:[%s11633_s3 + $0x290] sm:$0xff] }
 0x3d9   : > { %3165 = vmatprep.mubr.f32.mxu1 %v9980_v2  ;;  %3390 = vmatprep.mubr.f32.mxu0 %v9980_v2 }
 0x3da   : > { %8014 = vmatpush1.bf16.msra.mxu1 %v8013_v8  ;;  %7984 = vmatprep.subr.bf16.mxu0 %v7983_v10 }
 0x3db   : > { %8016 = vmatprep.subr.bf16.mxu1 %v8015_v41  ;;  %v6971_v41 = vld [vmem:[%s11633_s3 + $0x238] sm:$0xff]  ;;  %7986 = vmatpush1.bf16.msra.mxu0 %v7985_v51 }
 0x3dc   : > { %6853 = vmatmul.mubr.msk.f32.gmra.mrb[18].mxu1 %vm3011_vm8, %v2940_v3  ;;  %6925 = vmatmul.mubr.msk.f32.gmra.mrb[10].mxu0 %vm3011_vm8, %v2940_v3  ;;  %v6969_v3 = vld [vmem:[%s11633_s3 + $0x228] sm:$0xff]  ;;  %vm6612_vm8 = vcmask 73728  }
 0x3dd   : > { %3641 = vmatprep.mubr.f32.mxu1 %v9980_v2  ;;  %3560 = vmatprep.mubr.f32.mxu0 %v9980_v2  ;;  %v8047_v21 = vpack.c.bf16 %v6971_v41, %v6969_v3  ;;  %v6980_v3 = vld [vmem:[%s11633_s3 + $0x280] sm:$0xff]  ;;  %v6938_v41 = vld [vmem:[%s11633_s3 + $0x150] sm:$0xff] }
 0x3de   : > { %8018 = vmatpush1.bf16.msra.mxu1 %v8017_v13  ;;  %7988 = vmatprep.subr.bf16.mxu0 %v7987_v42  ;;  %v8061_v51 = vpack.c.bf16 %v6982_v4, %v6980_v3  ;;  %v6946_v42 = vld [vmem:[%s11633_s3 + $0x190] sm:$0xff]  ;;  %v6998_v4 = vld [vmem:[%s11633_s3 + $0x300] sm:$0xff] }
 0x3df   : > { %8020 = vmatprep.subr.bf16.mxu1 %v8019_v16  ;;  %v6996_v3 = vld [vmem:[%s11633_s3 + $0x2f0] sm:$0xff] }
 0x3e2   : > { %8022 = vmatpush1.bf16.msra.mxu1 %v8021_v9  ;;  %v6970_v9 = vld [vmem:[%s11633_s3 + $0x230] sm:$0xff] }
 0x3e3   : > { %8024 = vmatprep.subr.bf16.mxu1 %v8023_v20  ;;  %v8049_v43 = vpack.c.bf16 %v6970_v9, %v6968_v18  ;;  %v6944_v18 = vld [vmem:[%s11633_s3 + $0x180] sm:$0xff] }
 0x3e6   : > { %8026 = vmatpush1.bf16.msra.mxu1 %v8025_v23 }
 0x3e7   : > { %8028 = vmatprep.subr.bf16.mxu1 %v8027_v26  ;;  %v6975_v26 = vld [vmem:[%s11633_s3 + $0x258] sm:$0xff] }
 0x3e8   : > { %v8051_v29 = vpack.c.bf16 %v6975_v26, %v6973_v22 }
 0x3ea   : > { %8030 = vmatpush1.bf16.msra.mxu1 %v8029_v27  ;;  %v6932_v27 = vld [vmem:[%s11633_s3 + $0x120] sm:$0xff] }
 0x3eb   : > { %8032 = vmatprep.subr.bf16.mxu1 %v8031_v28  ;;  %v7989_v38 = vpack.c.bf16 %v6932_v27, %v6930_v19  ;;  %v6972_v28 = vld [vmem:[%s11633_s3 + $0x240] sm:$0xff] }
 0x3ec   : > { %v6948_v19 = vld [vmem:[%s11633_s3 + $0x1a0] sm:$0xff] }
 0x3ed   : > { %7990 = vmatpush1.bf16.msra.mxu0 %v7989_v38  ;;  %v6951_v38 = vld [vmem:[%s11633_s3 + $0x1b8] sm:$0xff] }
 0x3ee   : > { %8034 = vmatpush1.bf16.msra.mxu1 %v8033_v44  ;;  %v6935_v44 = vld [vmem:[%s11633_s3 + $0x138] sm:$0xff] }
 0x3ef   : > { %8036 = vmatprep.subr.bf16.mxu1 %v8035_v31  ;;  %v6979_v31 = vld [vmem:[%s11633_s3 + $0x278] sm:$0xff]  ;;  %v7991_v32 = vpack.c.bf16 %v6937_v45, %v6935_v44  ;;  %v8005_v44 = vpack.c.bf16 %v6948_v19, %v6946_v42  ;;  %v7008_v19 = vld [vmem:[%s11633_s3 + $0x350] sm:$0xff] }
 0x3f0   : > { %v8055_v48 = vpack.c.bf16 %v6979_v31, %v6977_v25  ;;  %v6950_v31 = vld [vmem:[%s11633_s3 + $0x1b0] sm:$0xff] }
 0x3f1   : > { %7992 = vmatprep.subr.bf16.mxu0 %v7991_v32  ;;  %v6952_v32 = vld [vmem:[%s11633_s3 + $0x1c0] sm:$0xff] }
 0x3f2   : > { %8038 = vmatpush1.bf16.msra.mxu1 %v8037_v39  ;;  %v6976_v39 = vld [vmem:[%s11633_s3 + $0x260] sm:$0xff] }
 0x3f3   : > { %3605 = vmatprep.subr.mxu1 %v3442_v33 }
 0x3f6   : > { %3606 = vmatpush1.msra.mxu1 %v3441_v34  ;;  %v8053_v34 = vpack.c.bf16 %v6974_v30, %v6972_v28  ;;  %v6989_v28 = vld [vmem:[%s11633_s3 + $0x2c8] sm:$0xff] }
 0x3f7   : > { %8040 = vmatprep.subr.bf16.mxu1 %v8039_v47  ;;  %v6995_v30 = vld [vmem:[%s11633_s3 + $0x2e8] sm:$0xff] }
 0x4ab   : > { %v3161_v40 = vpop.f32.mrb[16].mxu1  ;;  %v3386_v50 = vpop.f32.mrb[8].mxu0 }
 0x4ac   : > { %v3397_v37 = vmax.f32 %v3161_v40, %v3386_v50  ;;  %v3163_v57 = vpop.f32.mrb[17].mxu1  ;;  %v3388_v58 = vpop.f32.mrb[9].mxu0  ;;  %v6981_v40 = vld [vmem:[%s11633_s3 + $0x288] sm:$0xff] }
 0x4ad   : > { %v3398_v60 = vmax.f32 %v3163_v57, %v3388_v58 }
 0x4ae   : > { %v10431_v35 = vmax.f32 %v3397_v37, 0.0  ;;  %v7993_v37 = vpack.c.bf16 %v6936_v36, %v6934_v46 }
 0x4af   : > { %v3402_v6 = vmax.f32 %v3398_v60, 0.0  ;;  %v3167_v7 = vpop.f32.mrb[18].mxu1  ;;  %v3392_v8 = vpop.f32.mrb[10].mxu0 }
 0x4b0   : > { %3405 = vst [vmem:[#allocation3] sm:$0xff] %v10431_v35  ;;  %v3399_v12 = vmax.f32 %v3167_v7, %v3392_v8  ;;  %v3169_v13 = vpop.f32.mrb[19].mxu1  ;;  %v3394_v16 = vpop.f32.mrb[11].mxu0  ;;  %3685 = vrot.lane.b32.xlu0 %v10431_v35, %s9202_s17  ;;  %6958 = vmatmul.mubr.msk.f32.vlgmr.msra.gmra.mrb[20].mxu1 %vm3491_vm9, %v10431_v35  ;;  %v6939_v7 = vld [vmem:[%s11633_s3 + $0x158] sm:$0xff]  ;;  %v6941_v8 = vld [vmem:[%s11633_s3 + $0x168] sm:$0xff] }
 0x4b1   : > { %3407 = vst.msk [vmem:[#allocation3 + $0x8] sm:$0xff] %vm3406_vm10, %v3402_v6  ;;  %v3400_v59 = vmax.f32 %v3169_v13, %v3394_v16  ;;  %3647 = vmatprep.mubr.f32.mxu1 %v9980_v2  ;;  %8042 = vmatpush1.bf16.msra.mxu1 %v8041_v61  ;;  %v8059_v6 = vpack.c.bf16 %v6983_v53, %v6981_v40  ;;  %v6943_v16 = vld [vmem:[%s11633_s3 + $0x178] sm:$0xff] }
 0x4b2   : > { %v3403_v20 = vmax.f32 %v3399_v12, 0.0  ;;  %8044 = vmatprep.subr.bf16.mxu1 %v8043_v1  ;;  %v8057_v1 = vpack.c.bf16 %v6978_v49, %v6976_v39  ;;  %7994 = vmatpush1.bf16.msra.mxu0 %v7993_v37  ;;  %v7995_v11 = vpack.c.bf16 %v6941_v8, %v6939_v7  ;;  %v6940_v12 = vld [vmem:[%s11633_s3 + $0x160] sm:$0xff]  ;;  %v7003_v7 = vld [vmem:[%s11633_s3 + $0x328] sm:$0xff] }
 0x4b3   : > { %v3404_v23 = vmax.f32 %v3400_v59, 0.0  ;;  %v7997_v13 = vpack.c.bf16 %v6940_v12, %v6938_v41  ;;  %v6945_v59 = vld [vmem:[%s11633_s3 + $0x188] sm:$0xff]  ;;  %v10681_v41 = vld [vmem:[#allocation4] sm:$0xff] }
 0x4b4   : > { %3408 = vst [vmem:[#allocation3 + $0x10] sm:$0x3f] %v3403_v20  ;;  %v6984_v20 = vld [vmem:[%s11633_s3 + $0x2a0] sm:$0xff]  ;;  %7996 = vmatprep.subr.bf16.mxu0 %v7995_v11  ;;  %v7999_v22 = vpack.c.bf16 %v6945_v59, %v6943_v16  ;;  %v7000_v11 = vld [vmem:[%s11633_s3 + $0x310] sm:$0xff]  ;;  %v7005_v16 = vld [vmem:[%s11633_s3 + $0x338] sm:$0xff] }
 0x4b5   : > { %3410 = vst.msk [vmem:[#allocation3 + $0x18] sm:$0x3f] %vm3409_vm11, %v3404_v23  ;;  %8046 = vmatpush1.bf16.msra.mxu1 %v8045_v17  ;;  %v6942_v17 = vld [vmem:[%s11633_s3 + $0x170] sm:$0xff]  ;;  %v6949_v23 = vld [vmem:[%s11633_s3 + $0x1a8] sm:$0xff]  ;;  %v7002_v12 = vld [vmem:[%s11633_s3 + $0x320] sm:$0xff] }
 0x4b6   : > { %8048 = vmatprep.subr.bf16.mxu1 %v8047_v21  ;;  %v6986_v21 = vld [vmem:[%s11633_s3 + $0x2b0] sm:$0xff]  ;;  %7998 = vmatpush1.bf16.msra.mxu0 %v7997_v13  ;;  %v8001_v24 = vpack.c.bf16 %v6944_v18, %v6942_v17  ;;  %v8003_v26 = vpack.c.bf16 %v6949_v23, %v6947_v15  ;;  %v8077_v17 = vpack.c.bf16 %v7002_v12, %v7000_v11 }
 0x4b7   : > { %v3905_v33 = vld [vmem:[#allocation3] sm:$0xfe]  ;;  %8000 = vmatprep.subr.bf16.mxu0 %v7999_v22  ;;  %v8065_v27 = vpack.c.bf16 %v6986_v21, %v6984_v20  ;;  %v7004_v20 = vld [vmem:[%s11633_s3 + $0x330] sm:$0xff]  ;;  %v7009_v22 = vld [vmem:[%s11633_s3 + $0x358] sm:$0xff] }
 0x4b8   : > { %v10500_v0 = vld [vmem:[#allocation3 + $0x8] sm:$0xff]  ;;  %v3944_v58 = vrot.slane %v3905_v33, 1  ;;  %v4295_v33 = vld [vmem:[#allocation3] sm:$0xfc]  ;;  %v7030_v11 = vld [vmem:[%s11633_s3 + $0x3f0] sm:$0xff] }
 0x4b9   : > { %3687 = vrot.lane.b32.xlu1 %v10500_v0, %s9202_s17  ;;  %8050 = vmatpush1.bf16.msra.mxu1 %v8049_v43  ;;  %v3906_v47 = vld [vmem:[#allocation3 + $0x8] sm:$0xfe]  ;;  %v4334_v40 = vrot.slane %v4295_v33, 2  ;;  %v7006_v21 = vld [vmem:[%s11633_s3 + $0x340] sm:$0xff] }
 0x4ba   : > { %8052 = vmatprep.subr.bf16.mxu1 %v8051_v29  ;;  %v3947_v62 = vrot.slane %v3906_v47, 1  ;;  %v6953_v43 = vld [vmem:[%s11633_s3 + $0x1c8] sm:$0xff]  ;;  %v6993_v29 = vld [vmem:[%s11633_s3 + $0x2d8] sm:$0xff]  ;;  %8002 = vmatpush1.bf16.msra.mxu0 %v8001_v24  ;;  %v8081_v23 = vpack.c.bf16 %v7006_v21, %v7004_v20 }
 0x4bb   : > { %v10519_v50 = vld [vmem:[#allocation3 + $0x10] sm:$0xf]  ;;  %8004 = vmatprep.subr.bf16.mxu0 %v8003_v26  ;;  %v8007_v25 = vpack.c.bf16 %v6953_v43, %v6951_v38  ;;  %v8067_v46 = vpack.c.bf16 %v6995_v30, %v6993_v29  ;;  %v4296_v47 = vld [vmem:[#allocation3 + $0x8] sm:$0xfc]  ;;  %v7013_v38 = vld [vmem:[%s11633_s3 + $0x378] sm:$0xff] }
 0x4bc   : > { %v3907_v52 = vld [vmem:[#allocation3 + $0x10] sm:$0x1f]  ;;  %3689 = vrot.lane.b32.xlu0 %v10519_v50, %s9202_s17  ;;  %6959 = vmatmul.mubr.msk.f32.gmra.mrb[22].mxu1 %vm3491_vm9, %v10519_v50  ;;  %v10528_v57 = vld [vmem:[#allocation3 + $0x18] sm:$0xf]  ;;  %v4337_v53 = vrot.slane %v4296_v47, 2  ;;  %v7011_v24 = vld [vmem:[%s11633_s3 + $0x368] sm:$0xff] }
 0x4bd   : > { %v10530_v60 = vrot.slane %v3907_v52, 1  ;;  %v3908_v61 = vld [vmem:[#allocation3 + $0x18] sm:$0x1f]  ;;  %3691 = vrot.lane.b32.xlu1 %v10528_v57, %s9202_s17  ;;  %8054 = vmatpush1.bf16.msra.mxu1 %v8053_v34  ;;  %v4297_v45 = vld [vmem:[#allocation3 + $0x10] sm:$0x3f]  ;;  %v6988_v34 = vld [vmem:[%s11633_s3 + $0x2c0] sm:$0xff]  ;;  %v8083_v42 = vpack.c.bf16 %v7011_v24, %v7009_v22 }
 0x4be   : > { %v10534_v63 = vrot.slane %v3908_v61, 1  ;;  %8056 = vmatprep.subr.bf16.mxu1 %v8055_v48  ;;  %3764 = vmatprep.mubr.f32.mxu1 %v9980_v2  ;;  %v6987_v2 = vld [vmem:[%s11633_s3 + $0x2b8] sm:$0xff]  ;;  %v4335_v36 = vrot.slane %v4297_v45, 2  ;;  %v8009_v48 = vpack.c.bf16 %v6952_v32, %v6950_v31  ;;  %v7015_v43 = vld [vmem:[%s11633_s3 + $0x388] sm:$0xff]  ;;  %v7012_v45 = vld [vmem:[%s11633_s3 + $0x370] sm:$0xff] }
 0x4bf   : > { %v3946_v5 = vsel %vm3816_vm12, %v3944_v58, %v10530_v60  ;;  %v8063_v9 = vpack.c.bf16 %v6987_v2, %v6985_v55  ;;  %v4298_v39 = vld [vmem:[#allocation3 + $0x18] sm:$0x3f]  ;;  %8006 = vmatpush1.bf16.msra.mxu0 %v8005_v44  ;;  %v8087_v44 = vpack.c.bf16 %v7015_v43, %v7013_v38  ;;  %v7016_v47 = vld [vmem:[%s11633_s3 + $0x390] sm:$0xff]  ;;  %v7032_v22 = vld [vmem:[%s11633_s3 + $0x400] sm:$0xff] }
 0x4c0   : > { %v3949_v10 = vsel %vm3816_vm12, %v3947_v62, %v10534_v63  ;;  %3950 = vrot.lane.b32.xlu0 %v3946_v5, %s9203_s15  ;;  %v4338_v49 = vrot.slane %v4298_v39, 2  ;;  %8008 = vmatprep.subr.bf16.mxu0 %v8007_v25  ;;  %v6955_v52 = vld [vmem:[%s11633_s3 + $0x1d8] sm:$0xff]  ;;  %v4336_v37 = vsel %vm4206_vm13, %v4334_v40, %v4335_v36  ;;  %v7014_v25 = vld [vmem:[%s11633_s3 + $0x380] sm:$0xff]  ;;  %v7019_v39 = vld [vmem:[%s11633_s3 + $0x3a8] sm:$0xff] }
 0x4c1   : > { %3952 = vrot.lane.b32.xlu1 %v3949_v10, %s9203_s15  ;;  %8058 = vmatpush1.bf16.msra.mxu1 %v8057_v1  ;;  %v7017_v32 = vld [vmem:[%s11633_s3 + $0x398] sm:$0xff]  ;;  %v7034_v24 = vld [vmem:[%s11633_s3 + $0x410] sm:$0xff]  ;;  %v7036_v43 = vld [vmem:[%s11633_s3 + $0x420] sm:$0xff] }
 0x4c2   : > { %8060 = vmatprep.subr.bf16.mxu1 %v8059_v6  ;;  %v4339_v58 = vsel %vm4206_vm13, %v4337_v53, %v4338_v49  ;;  %v7001_v6 = vld [vmem:[%s11633_s3 + $0x318] sm:$0xff]  ;;  %v3782_v53 = vld [vmem:[#allocation3 + $0x10] sm:$0x1f] }
 0x4c3   : > { %8010 = vmatpush1.bf16.msra.mxu0 %v8009_v48  ;;  %v8075_v2 = vpack.c.bf16 %v7003_v7, %v7001_v6  ;;  %v7018_v48 = vld [vmem:[%s11633_s3 + $0x3a0] sm:$0xff] }
 0x4c4   : > { %3954 = vrot.lane.b32.xlu0 %v10530_v60, %s9203_s15  ;;  %3524 = vmatprep.subr.mxu0 %v6955_v52  ;;  %v8093_v52 = vpack.c.bf16 %v7018_v48, %v7016_v47 }
 0x4c5   : > { %3956 = vrot.lane.b32.xlu1 %v10534_v63, %s9203_s15  ;;  %8062 = vmatpush1.bf16.msra.mxu1 %v8061_v51  ;;  %v7007_v51 = vld [vmem:[%s11633_s3 + $0x348] sm:$0xff] }
 0x4c6   : > { %8064 = vmatprep.subr.bf16.mxu1 %v8063_v9  ;;  %v8079_v9 = vpack.c.bf16 %v7007_v51, %v7005_v16  ;;  %v7033_v16 = vld [vmem:[%s11633_s3 + $0x408] sm:$0xff]  ;;  %v7035_v51 = vld [vmem:[%s11633_s3 + $0x418] sm:$0xff] }
 0x4c7   : > { %v8103_v21 = vpack.c.bf16 %v7035_v51, %v7033_v16  ;;  %v7067_v16 = vld [vmem:[%s11633_s3 + $0x508] sm:$0xff] }
 0x4c8   : > { %4076 = vrot.lane.b32.xlu0 %v3946_v5, %s9202_s17 }
 0x4c9   : > { %4078 = vrot.lane.b32.xlu1 %v3949_v10, %s9202_s17  ;;  %8066 = vmatpush1.bf16.msra.mxu1 %v8065_v27  ;;  %v8073_v10 = vpack.c.bf16 %v6998_v4, %v6996_v3  ;;  %v7010_v27 = vld [vmem:[%s11633_s3 + $0x360] sm:$0xff]  ;;  %v7031_v3 = vld [vmem:[%s11633_s3 + $0x3f8] sm:$0xff] }
 0x4ca   : > { %3728 = vmatprep.subr.mxu1 %v6989_v28  ;;  %v8085_v29 = vpack.c.bf16 %v7010_v27, %v7008_v19  ;;  %v7039_v19 = vld [vmem:[%s11633_s3 + $0x438] sm:$0xff]  ;;  %v8105_v27 = vpack.c.bf16 %v7034_v24, %v7032_v22 }
 0x4cc   : > { %4080 = vrot.lane.b32.xlu0 %v10530_v60, %s9202_s17  ;;  %v6954_v60 = vld [vmem:[%s11633_s3 + $0x1d0] sm:$0xff] }
 0x4cd   : > { %4082 = vrot.lane.b32.xlu1 %v10534_v63, %s9202_s17  ;;  %3729 = vmatpush1.msra.mxu1 %v6988_v34  ;;  %v8089_v34 = vpack.c.bf16 %v7014_v25, %v7012_v45  ;;  %v7043_v45 = vld [vmem:[%s11633_s3 + $0x458] sm:$0xff] }
 0x4ce   : > { %8068 = vmatprep.subr.bf16.mxu1 %v8067_v46  ;;  %3525 = vmatpush1.msra.mxu0 %v6954_v60  ;;  %v7021_v60 = vld [vmem:[%s11633_s3 + $0x3b8] sm:$0xff] }
 0x4d0   : > { %4340 = vrot.lane.b32.xlu0 %v4336_v37, %s9203_s15 }
 0x4d1   : > { %4342 = vrot.lane.b32.xlu1 %v4339_v58, %s9203_s15 }
 0x4d4   : > { %4344 = vrot.lane.b32.xlu0 %v4335_v36, %s9203_s15 }
 0x4d5   : > { %4346 = vrot.lane.b32.xlu1 %v4338_v49, %s9203_s15 }
 0x4d8   : > { %3480 = vrot.lane.b32.xlu0 %v10431_v35, %s9203_s15  ;;  %v6992_v35 = vld [vmem:[%s11633_s3 + $0x2d0] sm:$0xff] }
 0x4d9   : > { %3482 = vrot.lane.b32.xlu1 %v10500_v0, %s9203_s15  ;;  %v6994_v0 = vld [vmem:[%s11633_s3 + $0x2e0] sm:$0xff] }
 0x4da   : > { %v8069_v62 = vpack.c.bf16 %v6994_v0, %v6992_v35  ;;  %v7025_v35 = vld [vmem:[%s11633_s3 + $0x3c8] sm:$0xff]  ;;  %v7027_v0 = vld [vmem:[%s11633_s3 + $0x3d8] sm:$0xff] }
 0x4db   : > { %v8095_v6 = vpack.c.bf16 %v7027_v0, %v7025_v35  ;;  %v7048_v0 = vld [vmem:[%s11633_s3 + $0x480] sm:$0xff] }
 0x4dc   : > { %4466 = vrot.lane.b32.xlu0 %v4336_v37, %s9202_s17 }
 0x4dd   : > { %3486 = vrot.lane.b32.xlu1 %v10528_v57, %s9203_s15  ;;  %v6997_v57 = vld [vmem:[%s11633_s3 + $0x2f8] sm:$0xff] }
 0x4e0   : > { %3484 = vrot.lane.b32.xlu0 %v10519_v50, %s9203_s15  ;;  %v6999_v50 = vld [vmem:[%s11633_s3 + $0x308] sm:$0xff]  ;;  %s11686_s15 = sld [smem:[#allocation25_spill]] }
 0x4e1   : > { %4468 = vrot.lane.b32.xlu1 %v4339_v58, %s9202_s17  ;;  %v8071_v1 = vpack.c.bf16 %v6999_v50, %v6997_v57  ;;  %v3781_v57 = vld [vmem:[#allocation3] sm:$0xfe] }
 0x4e2   : > { %v7024_v50 = vld [vmem:[%s11633_s3 + $0x3c0] sm:$0xff]  ;;  %v3817_v7 = vrot.slane %v3781_v57, 1  ;;  %v7050_v57 = vld [vmem:[%s11633_s3 + $0x490] sm:$0xff] }
 0x4e4   : > { %4470 = vrot.lane.b32.xlu0 %v4335_v36, %s9202_s17  ;;  %v8091_v36 = vpack.c.bf16 %v7019_v39, %v7017_v32 }
 0x4e5   : > { %4472 = vrot.lane.b32.xlu1 %v4338_v49, %s9202_s17 }
 0x4e6   : > { %p11689_p3 = scmp.ne.s32.totalorder %s11686_s15, 0 }
 0x4e8   : > { %p9113_p4 = pnand %p9112_p2, %p11689_p3 }
 0x4ea   : > { %p9114_p7 = pneg %p9113_p4 }
 0x522   : > { %v3686_v61 = vpop.permute.xlu0 %3685 }
 0x52b   : > { %v3688_v63 = vpop.permute.xlu1 %3687 }
 0x52c   : > { %v3694_v5 = vsel %vm3693_vm14, %v3686_v61, %v3688_v63  ;;  %v7026_v61 = vld [vmem:[%s11633_s3 + $0x3d0] sm:$0xff] }
 0x52d   : > { %6990 = vmatmul.mubr.msk.f32.vlgmr.msra.gmra.mrb[20].mxu1 %vm3491_vm9, %v3694_v5  ;;  %v7020_v5 = vld [vmem:[%s11633_s3 + $0x3b0] sm:$0xff] }
 0x52e   : > { %8070 = vmatpush1.bf16.msra.mxu1 %v8069_v62  ;;  %v3690_v8 = vpop.permute.xlu0 %3689  ;;  %3770 = vmatprep.mubr.f32.mxu1 %v10681_v41  ;;  %v3818_v62 = vrot.slane %v3782_v53, 1  ;;  %v7049_v53 = vld [vmem:[%s11633_s3 + $0x488] sm:$0xff] }
 0x52f   : > { %v3692_v55 = vpop.permute.xlu1 %3691  ;;  %8072 = vmatprep.subr.bf16.mxu1 %v8071_v1  ;;  %v7029_v1 = vld [vmem:[%s11633_s3 + $0x3e8] sm:$0xff] }
 0x530   : > { %v3695_v13 = vsel %vm3693_vm14, %v3690_v8, %v3692_v55  ;;  %v8099_v55 = vpack.c.bf16 %v7031_v3, %v7029_v1  ;;  %v3819_v12 = vsel %vm3816_vm12, %v3817_v7, %v3818_v62  ;;  %v7056_v1 = vld [vmem:[%s11633_s3 + $0x4b0] sm:$0xff]  ;;  %v7058_v3 = vld [vmem:[%s11633_s3 + $0x4c0] sm:$0xff] }
 0x531   : > { %6991 = vmatmul.mubr.msk.f32.gmra.mrb[22].mxu1 %vm3491_vm9, %v3695_v13 }
 0x532   : > { %8074 = vmatpush1.bf16.msra.mxu1 %v8073_v10  ;;  %v10698_v59 = vpop.permute.xlu0 %3950  ;;  %3888 = vmatprep.mubr.f32.mxu1 %v10681_v41  ;;  %v8097_v10 = vpack.c.bf16 %v7026_v61, %v7024_v50  ;;  %v8121_v50 = vpack.c.bf16 %v7050_v57, %v7048_v0  ;;  %v7053_v61 = vld [vmem:[%s11633_s3 + $0x4a8] sm:$0xff]  ;;  %v7095_v0 = vld [vmem:[%s11633_s3 + $0x5d8] sm:$0xff]  ;;  %v7084_v57 = vld [vmem:[%s11633_s3 + $0x590] sm:$0xff] }
 0x533   : > { %v10701_v18 = vpop.permute.xlu1 %3952  ;;  %8076 = vmatprep.subr.bf16.mxu1 %v8075_v2  ;;  %v7028_v2 = vld [vmem:[%s11633_s3 + $0x3e0] sm:$0xff] }
 0x534   : > { %v8101_v20 = vpack.c.bf16 %v7030_v11, %v7028_v2  ;;  %v7060_v2 = vld [vmem:[%s11633_s3 + $0x4d0] sm:$0xff]  ;;  %v7062_v11 = vld [vmem:[%s11633_s3 + $0x4e0] sm:$0xff] }
 0x535   : > { %v8129_v51 = vpack.c.bf16 %v7062_v11, %v7060_v2 }
 0x536   : > { %8078 = vmatpush1.bf16.msra.mxu1 %v8077_v17  ;;  %v10715_v15 = vpop.permute.xlu0 %3954 }
 0x537   : > { %v10717_v26 = vpop.permute.xlu1 %3956  ;;  %8080 = vmatprep.subr.bf16.mxu1 %v8079_v9 }
 0x53a   : > { %8082 = vmatpush1.bf16.msra.mxu1 %v8081_v23  ;;  %v4077_v28 = vpop.permute.xlu0 %4076 }
 0x53b   : > { %v4079_v30 = vpop.permute.xlu1 %4078  ;;  %8084 = vmatprep.subr.bf16.mxu1 %v8083_v42  ;;  %v7037_v42 = vld [vmem:[%s11633_s3 + $0x428] sm:$0xff] }
 0x53c   : > { %v10738_v31 = vsel %vm3693_vm14, %v4077_v28, %v4079_v30  ;;  %v8107_v38 = vpack.c.bf16 %v7039_v19, %v7037_v42  ;;  %v7038_v28 = vld [vmem:[%s11633_s3 + $0x430] sm:$0xff]  ;;  %v7073_v42 = vld [vmem:[%s11633_s3 + $0x538] sm:$0xff]  ;;  %v7075_v19 = vld [vmem:[%s11633_s3 + $0x548] sm:$0xff] }
 0x53d   : > { %v8109_v32 = vpack.c.bf16 %v7038_v28, %v7036_v43  ;;  %v7072_v43 = vld [vmem:[%s11633_s3 + $0x530] sm:$0xff]  ;;  %v7074_v28 = vld [vmem:[%s11633_s3 + $0x540] sm:$0xff] }
 0x53e   : > { %8086 = vmatpush1.bf16.msra.mxu1 %v8085_v29  ;;  %v4081_v33 = vpop.permute.xlu0 %4080 }
 0x53f   : > { %v4083_v46 = vpop.permute.xlu1 %4082  ;;  %8088 = vmatprep.subr.bf16.mxu1 %v8087_v44  ;;  %v7041_v44 = vld [vmem:[%s11633_s3 + $0x448] sm:$0xff] }
 0x540   : > { %v10753_v49 = vsel %vm3693_vm14, %v4081_v33, %v4083_v46  ;;  %v8111_v39 = vpack.c.bf16 %v7043_v45, %v7041_v44  ;;  %v7040_v33 = vld [vmem:[%s11633_s3 + $0x440] sm:$0xff]  ;;  %v7045_v46 = vld [vmem:[%s11633_s3 + $0x468] sm:$0xff]  ;;  %v8141_v44 = vpack.c.bf16 %v7074_v28, %v7072_v43  ;;  %v7114_v43 = vld [vmem:[%s11633_s3 + $0x670] sm:$0xff] }
 0x542   : > { %8090 = vmatpush1.bf16.msra.mxu1 %v8089_v34  ;;  %v4341_v40 = vpop.permute.xlu0 %4340  ;;  %v7042_v34 = vld [vmem:[%s11633_s3 + $0x450] sm:$0xff] }
 0x543   : > { %v4343_v37 = vpop.permute.xlu1 %4342  ;;  %8092 = vmatprep.subr.bf16.mxu1 %v8091_v36  ;;  %v7047_v36 = vld [vmem:[%s11633_s3 + $0x478] sm:$0xff]  ;;  %v8113_v47 = vpack.c.bf16 %v7042_v34, %v7040_v33  ;;  %v7083_v33 = vld [vmem:[%s11633_s3 + $0x588] sm:$0xff] }
 0x544   : > { %v10756_v58 = vsel %vm3488_vm15, %v4341_v40, %v4343_v37  ;;  %v8115_v48 = vpack.c.bf16 %v7047_v36, %v7045_v46  ;;  %v7044_v40 = vld [vmem:[%s11633_s3 + $0x460] sm:$0xff]  ;;  %v7051_v37 = vld [vmem:[%s11633_s3 + $0x498] sm:$0xff]  ;;  %v7080_v36 = vld [vmem:[%s11633_s3 + $0x570] sm:$0xff] }
 0x545   : > { %v8119_v35 = vpack.c.bf16 %v7051_v37, %v7049_v53  ;;  %v7091_v53 = vld [vmem:[%s11633_s3 + $0x5b8] sm:$0xff]  ;;  %v7088_v37 = vld [vmem:[%s11633_s3 + $0x5a0] sm:$0xff] }
 0x546   : > { %8094 = vmatpush1.bf16.msra.mxu1 %v8093_v52  ;;  %v4345_v63 = vpop.permute.xlu0 %4344  ;;  %v7046_v52 = vld [vmem:[%s11633_s3 + $0x470] sm:$0xff] }
 0x547   : > { %v4347_v4 = vpop.permute.xlu1 %4346  ;;  %3852 = vmatprep.subr.mxu1 %v7021_v60  ;;  %v8117_v60 = vpack.c.bf16 %v7046_v52, %v7044_v40  ;;  %v7085_v40 = vld [vmem:[%s11633_s3 + $0x598] sm:$0xff]  ;;  %v7089_v52 = vld [vmem:[%s11633_s3 + $0x5a8] sm:$0xff] }
 0x548   : > { %v10783_v8 = vsel %vm3488_vm15, %v4345_v63, %v4347_v4  ;;  %v7059_v63 = vld [vmem:[%s11633_s3 + $0x4c8] sm:$0xff]  ;;  %v7061_v4 = vld [vmem:[%s11633_s3 + $0x4d8] sm:$0xff] }
 0x54a   : > { %3853 = vmatpush1.msra.mxu1 %v7020_v5  ;;  %v3481_v13 = vpop.permute.xlu0 %3480  ;;  %v7063_v5 = vld [vmem:[%s11633_s3 + $0x4e8] sm:$0xff] }
 0x54b   : > { %7022 = vmatmul.mubr.msk.f32.vlgmr.msra.gmra.mrb[20].mxu1 %vm3491_vm9, %v3819_v12  ;;  %8096 = vmatprep.subr.bf16.mxu1 %v8095_v6  ;;  %v3483_v17 = vpop.permute.xlu1 %3482  ;;  %v7052_v6 = vld [vmem:[%s11633_s3 + $0x4a0] sm:$0xff]  ;;  %v3958_v12 = vsel %vm3488_vm15, %v10698_v59, %v10701_v18  ;;  %v7064_v59 = vld [vmem:[%s11633_s3 + $0x4f0] sm:$0xff] }
 0x54c   : > { %8098 = vmatpush1.bf16.msra.mxu1 %v8097_v10  ;;  %v3489_v9 = vsel %vm3488_vm15, %v3481_v13, %v3483_v17  ;;  %3894 = vmatprep.mubr.f32.mxu1 %v10681_v41  ;;  %v8125_v10 = vpack.c.bf16 %v7058_v3, %v7056_v1  ;;  %v7065_v13 = vld [vmem:[%s11633_s3 + $0x4f8] sm:$0xff]  ;;  %v7066_v18 = vld [vmem:[%s11633_s3 + $0x500] sm:$0xff]  ;;  %v7094_v1 = vld [vmem:[%s11633_s3 + $0x5d0] sm:$0xff] }
 0x54d   : > { %6956 = vmatmul.mubr.msk.f32.vlgmr.msra.gmra.mrb[12].mxu0 %vm3491_vm9, %v3489_v9  ;;  %8100 = vmatprep.subr.bf16.mxu1 %v8099_v55  ;;  %v8127_v55 = vpack.c.bf16 %v7063_v5, %v7061_v4  ;;  %v8131_v17 = vpack.c.bf16 %v7067_v16, %v7065_v13  ;;  %v3959_v9 = vsel %vm3488_vm15, %v10715_v15, %v10717_v26  ;;  %v7068_v15 = vld [vmem:[%s11633_s3 + $0x510] sm:$0xff]  ;;  %v7070_v26 = vld [vmem:[%s11633_s3 + $0x520] sm:$0xff]  ;;  %v7097_v3 = vld [vmem:[%s11633_s3 + $0x5e8] sm:$0xff] }
 0x54e   : > { %v10808_v23 = vpop.permute.xlu0 %4466  ;;  %3566 = vmatprep.mubr.f32.mxu0 %v10681_v41  ;;  %v8133_v22 = vpack.c.bf16 %v7066_v18, %v7064_v59  ;;  %v7099_v4 = vld [vmem:[%s11633_s3 + $0x5f8] sm:$0xff]  ;;  %v7102_v13 = vld [vmem:[%s11633_s3 + $0x610] sm:$0xff]  ;;  %v7105_v16 = vld [vmem:[%s11633_s3 + $0x628] sm:$0xff] }
 0x54f   : > { %7023 = vmatmul.mubr.msk.f32.gmra.mrb[22].mxu1 %vm3491_vm9, %v3818_v62  ;;  %v3487_v29 = vpop.permute.xlu1 %3486  ;;  %v7057_v62 = vld [vmem:[%s11633_s3 + $0x4b8] sm:$0xff]  ;;  %v7104_v59 = vld [vmem:[%s11633_s3 + $0x620] sm:$0xff]  ;;  %v7106_v18 = vld [vmem:[%s11633_s3 + $0x630] sm:$0xff] }
 0x550   : > { %8102 = vmatpush1.bf16.msra.mxu1 %v8101_v20  ;;  %4028 = vmatprep.mubr.f32.mxu1 %v10681_v41  ;;  %v8123_v7 = vpack.c.bf16 %v7059_v63, %v7057_v62  ;;  %v7069_v20 = vld [vmem:[%s11633_s3 + $0x518] sm:$0xff]  ;;  %v7092_v63 = vld [vmem:[%s11633_s3 + $0x5c0] sm:$0xff] }
 0x551   : > { %8104 = vmatprep.subr.bf16.mxu1 %v8103_v21  ;;  %v7071_v21 = vld [vmem:[%s11633_s3 + $0x528] sm:$0xff]  ;;  %v8157_v5 = vpack.c.bf16 %v7094_v1, %v7092_v63  ;;  %v7133_v63 = vld [vmem:[%s11633_s3 + $0x6f8] sm:$0xff] }
 0x552   : > { %v3485_v30 = vpop.permute.xlu0 %3484  ;;  %v8135_v24 = vpack.c.bf16 %v7071_v21, %v7069_v20  ;;  %v7111_v20 = vld [vmem:[%s11633_s3 + $0x658] sm:$0xff]  ;;  %v8169_v21 = vpack.c.bf16 %v7106_v18, %v7104_v59  ;;  %v7135_v1 = vld [vmem:[%s11633_s3 + $0x708] sm:$0xff] }
 0x553   : > { %v3490_v25 = vsel %vm3488_vm15, %v3485_v30, %v3487_v29  ;;  %v7077_v29 = vld [vmem:[%s11633_s3 + $0x558] sm:$0xff]  ;;  %v7079_v30 = vld [vmem:[%s11633_s3 + $0x568] sm:$0xff] }
 0x554   : > { %8106 = vmatpush1.bf16.msra.mxu1 %v8105_v27  ;;  %6957 = vmatmul.mubr.msk.f32.gmra.mrb[14].mxu0 %vm3491_vm9, %v3490_v25  ;;  %v8137_v27 = vpack.c.bf16 %v7070_v26, %v7068_v15  ;;  %v8143_v45 = vpack.c.bf16 %v7079_v30, %v7077_v29  ;;  %v7076_v25 = vld [vmem:[%s11633_s3 + $0x550] sm:$0xff]  ;;  %v7113_v26 = vld [vmem:[%s11633_s3 + $0x668] sm:$0xff]  ;;  %v7145_v59 = vld [vmem:[%s11633_s3 + $0x758] sm:$0xff] }
 0x555   : > { %8108 = vmatprep.subr.bf16.mxu1 %v8107_v38  ;;  %4651 = vmatprep.mubr.f32.mxu0 %v10681_v41  ;;  %v8139_v38 = vpack.c.bf16 %v7075_v19, %v7073_v42  ;;  %v7110_v15 = vld [vmem:[%s11633_s3 + $0x650] sm:$0xff]  ;;  %v7115_v42 = vld [vmem:[%s11633_s3 + $0x678] sm:$0xff]  ;;  %v7117_v30 = vld [vmem:[%s11633_s3 + $0x688] sm:$0xff] }
 0x556   : > { %v4172_v29 = vld [vmem:[#allocation3 + $0x10] sm:$0x3f]  ;;  %v7147_v18 = vld [vmem:[%s11633_s3 + $0x768] sm:$0xff] }
 0x558   : > { %8110 = vmatpush1.bf16.msra.mxu1 %v8109_v32  ;;  %v7078_v32 = vld [vmem:[%s11633_s3 + $0x560] sm:$0xff] }
 0x559   : > { %8112 = vmatprep.subr.bf16.mxu1 %v8111_v39  ;;  %v7081_v39 = vld [vmem:[%s11633_s3 + $0x578] sm:$0xff]  ;;  %v8145_v34 = vpack.c.bf16 %v7078_v32, %v7076_v25  ;;  %v4171_v25 = vld [vmem:[#allocation3] sm:$0xfc]  ;;  %v7120_v32 = vld [vmem:[%s11633_s3 + $0x690] sm:$0xff] }
 0x55a   : > { %v8147_v46 = vpack.c.bf16 %v7083_v33, %v7081_v39  ;;  %v7122_v39 = vld [vmem:[%s11633_s3 + $0x6a0] sm:$0xff]  ;;  %v4208_v33 = vrot.slane %v4172_v29, 2 }
 0x55c   : > { %8114 = vmatpush1.bf16.msra.mxu1 %v8113_v47  ;;  %v7082_v47 = vld [vmem:[%s11633_s3 + $0x580] sm:$0xff] }
 0x55d   : > { %8116 = vmatprep.subr.bf16.mxu1 %v8115_v48  ;;  %v8149_v48 = vpack.c.bf16 %v7082_v47, %v7080_v36  ;;  %v7116_v36 = vld [vmem:[%s11633_s3 + $0x680] sm:$0xff] }
 0x560   : > { %8118 = vmatpush1.bf16.msra.mxu1 %v8117_v60  ;;  %v7090_v60 = vld [vmem:[%s11633_s3 + $0x5b0] sm:$0xff] }
 0x561   : > { %8120 = vmatprep.subr.bf16.mxu1 %v8119_v35  ;;  %v7093_v35 = vld [vmem:[%s11633_s3 + $0x5c8] sm:$0xff] }
 0x562   : > { %v8155_v62 = vpack.c.bf16 %v7095_v0, %v7093_v35  ;;  %v7129_v35 = vld [vmem:[%s11633_s3 + $0x6d8] sm:$0xff]  ;;  %v7131_v0 = vld [vmem:[%s11633_s3 + $0x6e8] sm:$0xff] }
 0x564   : > { %8122 = vmatpush1.bf16.msra.mxu1 %v8121_v50  ;;  %v8151_v50 = vpack.c.bf16 %v7091_v53, %v7089_v52  ;;  %v7124_v53 = vld [vmem:[%s11633_s3 + $0x6b0] sm:$0xff] }
 0x565   : > { %3992 = vmatprep.subr.mxu1 %v7053_v61  ;;  %v8153_v61 = vpack.c.bf16 %v7090_v60, %v7088_v37  ;;  %v7126_v37 = vld [vmem:[%s11633_s3 + $0x6c0] sm:$0xff] }
 0x568   : > { %3993 = vmatpush1.msra.mxu1 %v7052_v6  ;;  %v8159_v6 = vpack.c.bf16 %v7099_v4, %v7097_v3  ;;  %v8191_v4 = vpack.c.bf16 %v7135_v1, %v7133_v63  ;;  %v7172_v1 = vld [vmem:[%s11633_s3 + $0x820] sm:$0xff] }
 0x569   : > { %7054 = vmatmul.mubr.msk.f32.vlgmr.msra.gmra.mrb[20].mxu1 %vm3491_vm9, %v3958_v12  ;;  %8124 = vmatprep.subr.bf16.mxu1 %v8123_v7  ;;  %v7096_v7 = vld [vmem:[%s11633_s3 + $0x5e0] sm:$0xff] }
 0x56a   : > { %8126 = vmatpush1.bf16.msra.mxu1 %v8125_v10  ;;  %4034 = vmatprep.mubr.f32.mxu1 %v10681_v41  ;;  %v7098_v10 = vld [vmem:[%s11633_s3 + $0x5f0] sm:$0xff]  ;;  %v7100_v12 = vld [vmem:[%s11633_s3 + $0x600] sm:$0xff] }
 0x56b   : > { %8128 = vmatprep.subr.bf16.mxu1 %v8127_v55  ;;  %v7101_v55 = vld [vmem:[%s11633_s3 + $0x608] sm:$0xff]  ;;  %v8161_v2 = vpack.c.bf16 %v7098_v10, %v7096_v7  ;;  %v7137_v7 = vld [vmem:[%s11633_s3 + $0x718] sm:$0xff] }
 0x56c   : > { %v7139_v10 = vld [vmem:[%s11633_s3 + $0x728] sm:$0xff] }
 0x56d   : > { %7055 = vmatmul.mubr.msk.f32.gmra.mrb[22].mxu1 %vm3491_vm9, %v3959_v9  ;;  %v7109_v9 = vld [vmem:[%s11633_s3 + $0x648] sm:$0xff] }
 0x56e   : > { %8130 = vmatpush1.bf16.msra.mxu1 %v8129_v51  ;;  %4154 = vmatprep.mubr.f32.mxu1 %v10681_v41  ;;  %v8165_v51 = vpack.c.bf16 %v7102_v13, %v7100_v12  ;;  %v7141_v12 = vld [vmem:[%s11633_s3 + $0x738] sm:$0xff]  ;;  %v7143_v13 = vld [vmem:[%s11633_s3 + $0x748] sm:$0xff] }
 0x56f   : > { %8132 = vmatprep.subr.bf16.mxu1 %v8131_v17 }
 0x572   : > { %8134 = vmatpush1.bf16.msra.mxu1 %v8133_v22  ;;  %v8171_v22 = vpack.c.bf16 %v7111_v20, %v7109_v9  ;;  %v8203_v20 = vpack.c.bf16 %v7147_v18, %v7145_v59 }
 0x573   : > { %8136 = vmatprep.subr.bf16.mxu1 %v8135_v24  ;;  %v7108_v24 = vld [vmem:[%s11633_s3 + $0x640] sm:$0xff] }
 0x574   : > { %v8173_v19 = vpack.c.bf16 %v7110_v15, %v7108_v24  ;;  %v7149_v15 = vld [vmem:[%s11633_s3 + $0x778] sm:$0xff] }
 0x576   : > { %8138 = vmatpush1.bf16.msra.mxu1 %v8137_v27  ;;  %v8175_v27 = vpack.c.bf16 %v7115_v42, %v7113_v26  ;;  %v7153_v26 = vld [vmem:[%s11633_s3 + $0x788] sm:$0xff]  ;;  %v7155_v42 = vld [vmem:[%s11633_s3 + $0x798] sm:$0xff] }
 0x577   : > { %8140 = vmatprep.subr.bf16.mxu1 %v8139_v38  ;;  %v7112_v38 = vld [vmem:[%s11633_s3 + $0x660] sm:$0xff]  ;;  %v8207_v29 = vpack.c.bf16 %v7155_v42, %v7153_v26 }
 0x578   : > { %v8177_v28 = vpack.c.bf16 %v7114_v43, %v7112_v38  ;;  %v7157_v38 = vld [vmem:[%s11633_s3 + $0x7a8] sm:$0xff]  ;;  %v7159_v43 = vld [vmem:[%s11633_s3 + $0x7b8] sm:$0xff] }
 0x57a   : > { %8142 = vmatpush1.bf16.msra.mxu1 %v8141_v44  ;;  %v7121_v44 = vld [vmem:[%s11633_s3 + $0x698] sm:$0xff] }
 0x57b   : > { %8144 = vmatprep.subr.bf16.mxu1 %v8143_v45  ;;  %v7123_v45 = vld [vmem:[%s11633_s3 + $0x6a8] sm:$0xff] }
 0x57c   : > { %v8179_v47 = vpack.c.bf16 %v7123_v45, %v7121_v44  ;;  %v8211_v44 = vpack.c.bf16 %v7159_v43, %v7157_v38  ;;  %v7156_v45 = vld [vmem:[%s11633_s3 + $0x7a0] sm:$0xff] }
 0x57e   : > { %8146 = vmatpush1.bf16.msra.mxu1 %v8145_v34  ;;  %v7125_v34 = vld [vmem:[%s11633_s3 + $0x6b8] sm:$0xff] }
 0x57f   : > { %8148 = vmatprep.subr.bf16.mxu1 %v8147_v46  ;;  %v7127_v46 = vld [vmem:[%s11633_s3 + $0x6c8] sm:$0xff] }
 0x580   : > { %v8183_v52 = vpack.c.bf16 %v7127_v46, %v7125_v34  ;;  %v7160_v46 = vld [vmem:[%s11633_s3 + $0x7c0] sm:$0xff] }
 0x582   : > { %8150 = vmatpush1.bf16.msra.mxu1 %v8149_v48  ;;  %v4207_v48 = vrot.slane %v4171_v25, 2  ;;  %v7158_v25 = vld [vmem:[%s11633_s3 + $0x7b0] sm:$0xff] }
 0x583   : > { %4118 = vmatprep.subr.mxu1 %v7085_v40  ;;  %v8181_v40 = vpack.c.bf16 %v7122_v39, %v7120_v32  ;;  %v7161_v32 = vld [vmem:[%s11633_s3 + $0x7c8] sm:$0xff]  ;;  %v7163_v39 = vld [vmem:[%s11633_s3 + $0x7d8] sm:$0xff] }
 0x584   : > { %v4209_v60 = vsel %vm4206_vm13, %v4207_v48, %v4208_v33  ;;  %v8215_v34 = vpack.c.bf16 %v7163_v39, %v7161_v32  ;;  %v4736_v32 = vld [vmem:[#allocation11] sm:$0xff]  ;;  %v4737_v39 = vld [vmem:[#allocation11 + $0x8] sm:$0xff] }
 0x586   : > { %4119 = vmatpush1.msra.mxu1 %v7084_v57  ;;  %v8185_v57 = vpack.c.bf16 %v7126_v37, %v7124_v53  ;;  %v7166_v53 = vld [vmem:[%s11633_s3 + $0x7f0] sm:$0xff]  ;;  %v7169_v37 = vld [vmem:[%s11633_s3 + $0x808] sm:$0xff] }
 0x587   : > { %7086 = vmatmul.mubr.msk.f32.vlgmr.msra.gmra.mrb[20].mxu1 %vm3491_vm9, %v10738_v31  ;;  %8152 = vmatprep.subr.bf16.mxu1 %v8151_v50  ;;  %v7103_v31 = vld [vmem:[%s11633_s3 + $0x618] sm:$0xff]  ;;  %v8187_v50 = vpack.c.bf16 %v7131_v0, %v7129_v35  ;;  %v7168_v0 = vld [vmem:[%s11633_s3 + $0x800] sm:$0xff] }
 0x588   : > { %8154 = vmatpush1.bf16.msra.mxu1 %v8153_v61  ;;  %4160 = vmatprep.mubr.f32.mxu1 %v10681_v41  ;;  %v8163_v11 = vpack.c.bf16 %v7103_v31, %v7101_v55  ;;  %v7128_v61 = vld [vmem:[%s11633_s3 + $0x6d0] sm:$0xff]  ;;  %v8195_v31 = vpack.c.bf16 %v7139_v10, %v7137_v7  ;;  %v7176_v10 = vld [vmem:[%s11633_s3 + $0x840] sm:$0xff] }
 0x589   : > { %8156 = vmatprep.subr.bf16.mxu1 %v8155_v62  ;;  %v7130_v62 = vld [vmem:[%s11633_s3 + $0x6e0] sm:$0xff] }
 0x58a   : > { %v8189_v3 = vpack.c.bf16 %v7130_v62, %v7128_v61  ;;  %v7175_v61 = vld [vmem:[%s11633_s3 + $0x838] sm:$0xff] }
 0x58b   : > { %7087 = vmatmul.mubr.msk.f32.gmra.mrb[22].mxu1 %vm3491_vm9, %v10753_v49  ;;  %v7107_v49 = vld [vmem:[%s11633_s3 + $0x638] sm:$0xff] }
 0x58c   : > { %8158 = vmatpush1.bf16.msra.mxu1 %v8157_v5  ;;  %4278 = vmatprep.mubr.f32.mxu1 %v10681_v41  ;;  %v8167_v17 = vpack.c.bf16 %v7107_v49, %v7105_v16  ;;  %v7132_v5 = vld [vmem:[%s11633_s3 + $0x6f0] sm:$0xff]  ;;  %v8199_v49 = vpack.c.bf16 %v7143_v13, %v7141_v12  ;;  %v7180_v12 = vld [vmem:[%s11633_s3 + $0x860] sm:$0xff] }
 0x58d   : > { %8160 = vmatprep.subr.bf16.mxu1 %v8159_v6  ;;  %v7134_v6 = vld [vmem:[%s11633_s3 + $0x700] sm:$0xff] }
 0x58e   : > { %v8193_v55 = vpack.c.bf16 %v7134_v6, %v7132_v5  ;;  %v7179_v5 = vld [vmem:[%s11633_s3 + $0x858] sm:$0xff] }
 0x590   : > { %8162 = vmatpush1.bf16.msra.mxu1 %v8161_v2  ;;  %v7136_v2 = vld [vmem:[%s11633_s3 + $0x710] sm:$0xff] }
 0x591   : > { %8164 = vmatprep.subr.bf16.mxu1 %v8163_v11  ;;  %v7138_v11 = vld [vmem:[%s11633_s3 + $0x720] sm:$0xff] }
 0x592   : > { %v8197_v16 = vpack.c.bf16 %v7138_v11, %v7136_v2  ;;  %v7181_v2 = vld [vmem:[%s11633_s3 + $0x868] sm:$0xff]  ;;  %v4469_v11 = vpop.permute.xlu1 %4468 }
 0x593   : > { %v4474_v13 = vsel %vm3693_vm14, %v10808_v23, %v4469_v11  ;;  %v4561_v23 = vld [vmem:[%s11634_s4] sm:$0x3] }
 0x594   : > { %8166 = vmatpush1.bf16.msra.mxu1 %v8165_v51  ;;  %v7140_v51 = vld [vmem:[%s11633_s3 + $0x730] sm:$0xff]  ;;  %v4570_v26 = vrot.slane %v4561_v23, %v9964_v56 }
 0x595   : > { %8168 = vmatprep.subr.bf16.mxu1 %v8167_v17  ;;  %v7142_v17 = vld [vmem:[%s11633_s3 + $0x740] sm:$0xff] }
 0x596   : > { %v8201_v9 = vpack.c.bf16 %v7142_v17, %v7140_v51 }
 0x598   : > { %8170 = vmatpush1.bf16.msra.mxu1 %v8169_v21  ;;  %v7144_v21 = vld [vmem:[%s11633_s3 + $0x750] sm:$0xff] }
 0x599   : > { %8172 = vmatprep.subr.bf16.mxu1 %v8171_v22  ;;  %v7146_v22 = vld [vmem:[%s11633_s3 + $0x760] sm:$0xff] }
 0x59a   : > { %v8205_v24 = vpack.c.bf16 %v7146_v22, %v7144_v21 }
 0x59c   : > { %8174 = vmatpush1.bf16.msra.mxu1 %v8173_v19  ;;  %v7152_v19 = vld [vmem:[%s11633_s3 + $0x780] sm:$0xff] }
 0x59d   : > { %8176 = vmatprep.subr.bf16.mxu1 %v8175_v27  ;;  %v7154_v27 = vld [vmem:[%s11633_s3 + $0x790] sm:$0xff] }
 0x5a0   : > { %8178 = vmatpush1.bf16.msra.mxu1 %v8177_v28  ;;  %v7148_v28 = vld [vmem:[%s11633_s3 + $0x770] sm:$0xff] }
 0x5a1   : > { %4242 = vmatprep.subr.mxu1 %v7117_v30  ;;  %v8209_v30 = vpack.c.bf16 %v7154_v27, %v7152_v19 }
 0x5a4   : > { %4243 = vmatpush1.msra.mxu1 %v7116_v36  ;;  %v7162_v36 = vld [vmem:[%s11633_s3 + $0x7d0] sm:$0xff] }
 0x5a5   : > { %7118 = vmatmul.mubr.msk.f32.vlgmr.msra.gmra.mrb[20].mxu1 %vm3491_vm9, %v4209_v60  ;;  %8180 = vmatprep.subr.bf16.mxu1 %v8179_v47  ;;  %v7165_v47 = vld [vmem:[%s11633_s3 + $0x7e8] sm:$0xff]  ;;  %v8217_v48 = vpack.c.bf16 %v7162_v36, %v7160_v46  ;;  %v9204_v46 = vmov 0.0|0.0   ;;  %v4738_v36 = vld [vmem:[#allocation11 + $0x10] sm:$0xff] }
 0x5a6   : > { %8182 = vmatpush1.bf16.msra.mxu1 %v8181_v40  ;;  %4284 = vmatprep.mubr.f32.mxu1 %v10681_v41 }
 0x5a7   : > { %8184 = vmatprep.subr.bf16.mxu1 %v8183_v52  ;;  %v7164_v52 = vld [vmem:[%s11633_s3 + $0x7e0] sm:$0xff] }
 0x5a8   : > { %v8221_v60 = vpack.c.bf16 %v7166_v53, %v7164_v52  ;;  %v4743_v52 = vld [vmem:[#allocation11 + $0x38] sm:$0xff] }
 0x5a9   : > { %7119 = vmatmul.mubr.msk.f32.gmra.mrb[22].mxu1 %vm3491_vm9, %v4208_v33  ;;  %v8213_v33 = vpack.c.bf16 %v7158_v25, %v7156_v45  ;;  %v4577_v25 = vld [vmem:[%s11639_s9] sm:$0x3f] }
 0x5aa   : > { %8186 = vmatpush1.bf16.msra.mxu1 %v8185_v57  ;;  %4418 = vmatprep.mubr.f32.mxu1 %v10681_v41  ;;  %v7170_v57 = vld [vmem:[%s11633_s3 + $0x810] sm:$0xff] }
 0x5ab   : > { %8188 = vmatprep.subr.bf16.mxu1 %v8187_v50  ;;  %v7173_v50 = vld [vmem:[%s11633_s3 + $0x828] sm:$0xff]  ;;  %v8225_v62 = vpack.c.bf16 %v7170_v57, %v7168_v0  ;;  %v4747_v0 = vld [vmem:[#allocation11 + $0x58] sm:$0xff] }
 0x5ac   : > { %v8227_v63 = vpack.c.bf16 %v7175_v61, %v7173_v50  ;;  %v4748_v50 = vld [vmem:[#allocation11 + $0x60] sm:$0xff]  ;;  %v4749_v61 = vld [vmem:[#allocation11 + $0x68] sm:$0xff] }
 0x5ae   : > { %8190 = vmatpush1.bf16.msra.mxu1 %v8189_v3  ;;  %v7174_v3 = vld [vmem:[%s11633_s3 + $0x830] sm:$0xff] }
 0x5af   : > { %8192 = vmatprep.subr.bf16.mxu1 %v8191_v4  ;;  %v7177_v4 = vld [vmem:[%s11633_s3 + $0x848] sm:$0xff]  ;;  %v8229_v6 = vpack.c.bf16 %v7174_v3, %v7172_v1  ;;  %v4751_v1 = vld [vmem:[#allocation11 + $0x78] sm:$0xff] }
 0x5b0   : > { %v8231_v7 = vpack.c.bf16 %v7179_v5, %v7177_v4  ;;  %v4752_v4 = vld [vmem:[#allocation11 + $0x80] sm:$0xff]  ;;  %v4753_v5 = vld [vmem:[#allocation11 + $0x88] sm:$0xff] }
 0x5b2   : > { %8194 = vmatpush1.bf16.msra.mxu1 %v8193_v55  ;;  %v7178_v55 = vld [vmem:[%s11633_s3 + $0x850] sm:$0xff] }
 0x5b3   : > { %8196 = vmatprep.subr.bf16.mxu1 %v8195_v31  ;;  %v8233_v31 = vpack.c.bf16 %v7178_v55, %v7176_v10  ;;  %v4755_v10 = vld [vmem:[#allocation11 + $0x98] sm:$0xff] }
 0x5b6   : > { %8198 = vmatpush1.bf16.msra.mxu1 %v8197_v16  ;;  %v4471_v16 = vpop.permute.xlu0 %4470 }
 0x5b7   : > { %8200 = vmatprep.subr.bf16.mxu1 %v8199_v49  ;;  %v4473_v49 = vpop.permute.xlu1 %4472 }
 0x5b8   : > { %v4475_v51 = vsel %vm3693_vm14, %v4471_v16, %v4473_v49  ;;  %v4760_v49 = vld [vmem:[#allocation11 + $0xc0] sm:$0xff] }
 0x5ba   : > { %8202 = vmatpush1.bf16.msra.mxu1 %v8201_v9 }
 0x5bb   : > { %8204 = vmatprep.subr.bf16.mxu1 %v8203_v20 }
 0x5be   : > { %8206 = vmatpush1.bf16.msra.mxu1 %v8205_v24 }
 0x5bf   : > { %4382 = vmatprep.subr.mxu1 %v7149_v15  ;;  %v4566_v15 = vrot.slane %v4561_v23, %v9961_v54  ;;  %v4765_v23 = vld [vmem:[#allocation11 + $0xe8] sm:$0xff] }
 0x5c2   : > { %4383 = vmatpush1.msra.mxu1 %v7148_v28 }
 0x5c3   : > { %7150 = vmatmul.mubr.msk.f32.vlgmr.msra.gmra.mrb[20].mxu1 %vm3491_vm9, %v10756_v58  ;;  %8208 = vmatprep.subr.bf16.mxu1 %v8207_v29  ;;  %v7167_v58 = vld [vmem:[%s11633_s3 + $0x7f8] sm:$0xff] }
 0x5c4   : > { %8210 = vmatpush1.bf16.msra.mxu1 %v8209_v30  ;;  %4424 = vmatprep.mubr.f32.mxu1 %v10681_v41  ;;  %v8219_v40 = vpack.c.bf16 %v7167_v58, %v7165_v47  ;;  %v4739_v47 = vld [vmem:[#allocation11 + $0x18] sm:$0xff] }
 0x5c5   : > { %8212 = vmatprep.subr.bf16.mxu1 %v8211_v44  ;;  %v8251_v58 = vpack.c.bf16 %v4739_v47, %v4738_v36  ;;  %v4850_v36 = vld [vmem:[#allocation11 + $0x138] sm:$0xff] }
 0x5c7   : > { %7151 = vmatmul.mubr.msk.f32.gmra.mrb[22].mxu1 %vm3491_vm9, %v10783_v8  ;;  %v7171_v8 = vld [vmem:[%s11633_s3 + $0x818] sm:$0xff] }
 0x5c8   : > { %8214 = vmatpush1.bf16.msra.mxu1 %v8213_v33  ;;  %4544 = vmatprep.mubr.f32.mxu1 %v10681_v41  ;;  %v8223_v35 = vpack.c.bf16 %v7171_v8, %v7169_v37  ;;  %v7187_v33 = vld [vmem:[%s11639_s9 + $0x8] sm:$0x3f] }
 0x5c9   : > { %8216 = vmatprep.subr.bf16.mxu1 %v8215_v34  ;;  %v8248_v34 = vpack.c.bf16 %v4737_v39, %v4736_v32  ;;  %v4744_v37 = vld [vmem:[#allocation11 + $0x40] sm:$0xff]  ;;  %v4745_v8 = vld [vmem:[#allocation11 + $0x48] sm:$0xff] }
 0x5ca   : > { %v4847_v32 = vld [vmem:[#allocation11 + $0x120] sm:$0xff]  ;;  %v4848_v39 = vld [vmem:[#allocation11 + $0x128] sm:$0xff] }
 0x5cc   : > { %8218 = vmatpush1.bf16.msra.mxu1 %v8217_v48  ;;  %v4741_v48 = vld [vmem:[#allocation11 + $0x28] sm:$0xff] }
 0x5cd   : > { %8220 = vmatprep.subr.bf16.mxu1 %v8219_v40  ;;  %v4742_v40 = vld [vmem:[#allocation11 + $0x30] sm:$0xff] }
 0x5ce   : > { %v8257_v53 = vpack.c.bf16 %v4743_v52, %v4742_v40  ;;  %v4854_v40 = vld [vmem:[#allocation11 + $0x158] sm:$0xff] }
 0x5d0   : > { %8222 = vmatpush1.bf16.msra.mxu1 %v8221_v60  ;;  %v8260_v60 = vpack.c.bf16 %v4745_v8, %v4744_v37  ;;  %v4856_v37 = vld [vmem:[#allocation11 + $0x168] sm:$0xff] }
 0x5d1   : > { %8224 = vmatprep.subr.bf16.mxu1 %v8223_v35  ;;  %v4746_v35 = vld [vmem:[#allocation11 + $0x50] sm:$0xff] }
 0x5d2   : > { %v8263_v57 = vpack.c.bf16 %v4747_v0, %v4746_v35  ;;  %v4858_v35 = vld [vmem:[#allocation11 + $0x178] sm:$0xff] }
 0x5d4   : > { %8226 = vmatpush1.bf16.msra.mxu1 %v8225_v62  ;;  %v8266_v62 = vpack.c.bf16 %v4749_v61, %v4748_v50  ;;  %v4860_v50 = vld [vmem:[#allocation11 + $0x188] sm:$0xff] }
 0x5d5   : > { %8228 = vmatprep.subr.bf16.mxu1 %v8227_v63  ;;  %v4750_v63 = vld [vmem:[#allocation11 + $0x70] sm:$0xff] }
 0x5d6   : > { %v8269_v3 = vpack.c.bf16 %v4751_v1, %v4750_v63  ;;  %v4862_v63 = vld [vmem:[#allocation11 + $0x198] sm:$0xff] }
 0x5d8   : > { %8230 = vmatpush1.bf16.msra.mxu1 %v8229_v6  ;;  %v8272_v6 = vpack.c.bf16 %v4753_v5, %v4752_v4  ;;  %v4864_v4 = vld [vmem:[#allocation11 + $0x1a8] sm:$0xff] }
 0x5d9   : > { %8232 = vmatprep.subr.bf16.mxu1 %v8231_v7  ;;  %v4754_v7 = vld [vmem:[#allocation11 + $0x90] sm:$0xff] }
 0x5da   : > { %v8275_v55 = vpack.c.bf16 %v4755_v10, %v4754_v7  ;;  %v4866_v7 = vld [vmem:[#allocation11 + $0x1b8] sm:$0xff] }
 0x5dc   : > { %8234 = vmatpush1.bf16.msra.mxu1 %v8233_v31  ;;  %v4756_v31 = vld [vmem:[#allocation11 + $0xa0] sm:$0xff] }
 0x5dd   : > { %4508 = vmatprep.subr.mxu1 %v7181_v2  ;;  %v4757_v2 = vld [vmem:[#allocation11 + $0xa8] sm:$0xff] }
 0x5de   : > { %v8278_v11 = vpack.c.bf16 %v4757_v2, %v4756_v31  ;;  %v4868_v31 = vld [vmem:[#allocation11 + $0x1c8] sm:$0xff] }
 0x5e0   : > { %4509 = vmatpush1.msra.mxu1 %v7180_v12  ;;  %v4758_v12 = vld [vmem:[#allocation11 + $0xb0] sm:$0xff] }
 0x5e1   : > { %7182 = vmatmul.mubr.msk.f32.vlgmr.msra.gmra.mrb[20].mxu1 %vm3491_vm9, %v4474_v13  ;;  %v4759_v13 = vld [vmem:[#allocation11 + $0xb8] sm:$0xff] }
 0x5e2   : > { %4550 = vmatprep.mubr.f32.mxu1 %v10681_v41  ;;  %v8281_v16 = vpack.c.bf16 %v4759_v13, %v4758_v12  ;;  %v4870_v12 = vld [vmem:[#allocation11 + $0x1d8] sm:$0xff] }
 0x5e5   : > { %7183 = vmatmul.mubr.msk.f32.gmra.mrb[22].mxu1 %vm3491_vm9, %v4475_v51  ;;  %v4761_v51 = vld [vmem:[#allocation11 + $0xc8] sm:$0xff] }
 0x5e6   : > { %6046 = vmatprep.mubr.f32.mxu1 %v10681_v41 }
 0x620   : > { %v3562_v17 = vpop.f32.mrb[12].mxu0 }
 0x621   : > { %v3564_v59 = vpop.f32.mrb[13].mxu0 }
 0x627   : > { %v3568_v18 = vpop.f32.mrb[14].mxu0 }
 0x628   : > { %v3570_v9 = vpop.f32.mrb[15].mxu0 }
 0x6b4   : > { %v4546_v20 = vpop.f32.mrb[20].mxu1 }
 0x6b5   : > { %v8742_v21 = vadd.f32 %v4546_v20, %v3562_v17  ;;  %v4548_v22 = vpop.f32.mrb[21].mxu1  ;;  %v8284_v17 = vpack.c.bf16 %v4761_v51, %v4760_v49  ;;  %v4764_v20 = vld [vmem:[#allocation11 + $0xe0] sm:$0xff] }
 0x6b6   : > { %v8743_v24 = vadd.f32 %v4548_v22, %v3564_v59  ;;  %v4762_v59 = vld [vmem:[#allocation11 + $0xd0] sm:$0xff] }
 0x6b7   : > { %v4573_v43 = vadd.f32 %v8742_v21, %v4566_v15  ;;  %v8290_v21 = vpack.c.bf16 %v4765_v23, %v4764_v20  ;;  %v4989_v23 = vld [vmem:[#allocation9 + $0xf8] sm:$0xff] }
 0x6b8   : > { %v4552_v42 = vpop.f32.mrb[22].mxu1  ;;  %v4574_v29 = vadd.f32 %v8743_v24, %v4570_v26 }
 0x6b9   : > { %v8744_v19 = vadd.f32 %v4552_v42, %v3568_v18  ;;  %v4554_v27 = vpop.f32.mrb[23].mxu1  ;;  %v4763_v18 = vld [vmem:[#allocation11 + $0xd8] sm:$0xff] }
 0x6ba   : > { %v8745_v38 = vadd.f32 %v4554_v27, %v3570_v9  ;;  %v8287_v9 = vpack.c.bf16 %v4763_v18, %v4762_v59 }
 0x6bb   : > { %v4575_v28 = vadd.f32 %v8744_v19, %v4566_v15  ;;  %v4841_v15 = vld [vmem:[#allocation11 + $0xf0] sm:$0xff] }
 0x6bc   : > { %v4576_v30 = vadd.f32 %v8745_v38, %v4570_v26  ;;  %v4842_v26 = vld [vmem:[#allocation11 + $0xf8] sm:$0xff] }
 0x6bd   : > { %v8238_v44 = vpack.c.bf16 %v4575_v28, %v4573_v43  ;;  %v8293_v43 = vpack.c.bf16 %v4842_v26, %v4841_v15  ;;  %v4843_v28 = vld [vmem:[#allocation11 + $0x100] sm:$0xff]  ;;  %v4990_v15 = vld [vmem:[#allocation9 + $0x100] sm:$0xff]  ;;  %v4993_v26 = vld [vmem:[#allocation9 + $0x118] sm:$0xff] }
 0x6be   : > { %v8235_v45 = vpack.c.bf16 %v4576_v30, %v4574_v29  ;;  %v4844_v29 = vld [vmem:[#allocation11 + $0x108] sm:$0xff] }
 0x6bf   : > { %v8296_v30 = vpack.c.bf16 %v4844_v29, %v4843_v28  ;;  %v4997_v28 = vld [vmem:[#allocation9 + $0x138] sm:$0xff]  ;;  %v4999_v29 = vld [vmem:[#allocation9 + $0x148] sm:$0xff] }
 0x6c0   : > { %8237 = vmatprep.subr.msk.bf16.mxu0 %vm9460_vm4, %v8235_v45 }
 0x6c1   : > { %8240 = vmatpush1.bf16.msk.msra.mxu0 %vm9460_vm4, %v8238_v44 }
 0x6c2   : > { %8243 = vmatprep.subr.msk.bf16.mxu0 %vm9460_vm4, %v8235_v45  ;;  %v4846_v45 = vld [vmem:[#allocation11 + $0x118] sm:$0xff] }
 0x6c4   : > { %7186 = vmatmul.mubr.msk.f32.vlgmr.msra.gmra.mrb[16].mxu0 %vm3406_vm10, %v4577_v25 }
 0x6c5   : > { %8246 = vmatpush1.bf16.msk.msra.mxu0 %vm9460_vm4, %v8238_v44  ;;  %4727 = vmatprep.mubr.f32.mxu0 %v10681_v41  ;;  %v8254_v41 = vpack.c.bf16 %v4741_v48, %v4740_v14  ;;  %v4845_v44 = vld [vmem:[#allocation11 + $0x110] sm:$0xff]  ;;  %v4852_v14 = vld [vmem:[#allocation11 + $0x148] sm:$0xff]  ;;  %vm5206_vm4 = vcmask 719872  }
 0x6c6   : > { %8247 = vmatprep.subr.bf16.mxu0 %v9204_v46  ;;  %v8299_v25 = vpack.c.bf16 %v4846_v45, %v4845_v44  ;;  %v8345_v44 = vpack.c.bf16 %v4999_v29, %v4997_v28  ;;  %v4996_v45 = vld [vmem:[#allocation9 + $0x130] sm:$0xff] }
 0x6c8   : > { %7190 = vmatmul.mubr.msk.f32.vlgmr.msra.gmra.mrb[18].mxu0 %vm3406_vm10, %v7187_v33  ;;  %v8302_v33 = vpack.c.bf16 %v4848_v39, %v4847_v32  ;;  %v5001_v32 = vld [vmem:[#allocation9 + $0x158] sm:$0xff]  ;;  %v5003_v39 = vld [vmem:[#allocation9 + $0x168] sm:$0xff] }
 0x6c9   : > { %8249 = vmatpush1.bf16.msra.mxu0 %v8248_v34  ;;  %v4849_v34 = vld [vmem:[#allocation11 + $0x130] sm:$0xff] }
 0x6ca   : > { %8250 = vmatprep.subr.bf16.mxu0 %v9204_v46  ;;  %v8305_v47 = vpack.c.bf16 %v4850_v36, %v4849_v34  ;;  %v8349_v34 = vpack.c.bf16 %v5003_v39, %v5001_v32  ;;  %v5000_v36 = vld [vmem:[#allocation9 + $0x150] sm:$0xff] }
 0x6cd   : > { %8252 = vmatpush1.bf16.msra.mxu0 %v8251_v58  ;;  %v4851_v58 = vld [vmem:[#allocation11 + $0x140] sm:$0xff] }
 0x6ce   : > { %8253 = vmatprep.subr.bf16.mxu0 %v9204_v46  ;;  %v8308_v48 = vpack.c.bf16 %v4852_v14, %v4851_v58  ;;  %v5005_v58 = vld [vmem:[#allocation9 + $0x178] sm:$0xff]  ;;  %v5007_v14 = vld [vmem:[#allocation9 + $0x188] sm:$0xff] }
 0x6d1   : > { %8255 = vmatpush1.bf16.msra.mxu0 %v8254_v41  ;;  %v4853_v41 = vld [vmem:[#allocation11 + $0x150] sm:$0xff] }
 0x6d2   : > { %8256 = vmatprep.subr.bf16.mxu0 %v9204_v46  ;;  %v8311_v52 = vpack.c.bf16 %v4854_v40, %v4853_v41  ;;  %v8353_v41 = vpack.c.bf16 %v5007_v14, %v5005_v58  ;;  %v5004_v40 = vld [vmem:[#allocation9 + $0x170] sm:$0xff] }
 0x6d5   : > { %8258 = vmatpush1.bf16.msra.mxu0 %v8257_v53  ;;  %v4855_v53 = vld [vmem:[#allocation11 + $0x160] sm:$0xff] }
 0x6d6   : > { %8259 = vmatprep.subr.bf16.mxu0 %v9204_v46  ;;  %v8314_v8 = vpack.c.bf16 %v4856_v37, %v4855_v53  ;;  %v5009_v53 = vld [vmem:[#allocation9 + $0x198] sm:$0xff]  ;;  %v5011_v37 = vld [vmem:[#allocation9 + $0x1a8] sm:$0xff] }
 0x6d9   : > { %8261 = vmatpush1.bf16.msra.mxu0 %v8260_v60  ;;  %v4857_v60 = vld [vmem:[#allocation11 + $0x170] sm:$0xff] }
 0x6da   : > { %8262 = vmatprep.subr.bf16.mxu0 %v9204_v46  ;;  %v8317_v0 = vpack.c.bf16 %v4858_v35, %v4857_v60  ;;  %v8357_v60 = vpack.c.bf16 %v5011_v37, %v5009_v53  ;;  %v5008_v35 = vld [vmem:[#allocation9 + $0x190] sm:$0xff] }
 0x6dd   : > { %8264 = vmatpush1.bf16.msra.mxu0 %v8263_v57  ;;  %v4859_v57 = vld [vmem:[#allocation11 + $0x180] sm:$0xff] }
 0x6de   : > { %8265 = vmatprep.subr.bf16.mxu0 %v9204_v46  ;;  %v8320_v61 = vpack.c.bf16 %v4860_v50, %v4859_v57  ;;  %v5013_v57 = vld [vmem:[#allocation9 + $0x1b8] sm:$0xff]  ;;  %v5015_v50 = vld [vmem:[#allocation9 + $0x1c8] sm:$0xff] }
 0x6e1   : > { %8267 = vmatpush1.bf16.msra.mxu0 %v8266_v62  ;;  %v4861_v62 = vld [vmem:[#allocation11 + $0x190] sm:$0xff] }
 0x6e2   : > { %8268 = vmatprep.subr.bf16.mxu0 %v9204_v46  ;;  %v8323_v1 = vpack.c.bf16 %v4862_v63, %v4861_v62  ;;  %v8361_v62 = vpack.c.bf16 %v5015_v50, %v5013_v57  ;;  %v5012_v63 = vld [vmem:[#allocation9 + $0x1b0] sm:$0xff] }
 0x6e5   : > { %8270 = vmatpush1.bf16.msra.mxu0 %v8269_v3  ;;  %v4863_v3 = vld [vmem:[#allocation11 + $0x1a0] sm:$0xff] }
 0x6e6   : > { %8271 = vmatprep.subr.bf16.mxu0 %v9204_v46  ;;  %v8326_v5 = vpack.c.bf16 %v4864_v4, %v4863_v3  ;;  %v5017_v4 = vld [vmem:[#allocation9 + $0x1d8] sm:$0xff] }
 0x6e9   : > { %8273 = vmatpush1.bf16.msra.mxu0 %v8272_v6  ;;  %v4865_v6 = vld [vmem:[#allocation11 + $0x1b0] sm:$0xff] }
 0x6ea   : > { %8274 = vmatprep.subr.bf16.mxu0 %v9204_v46  ;;  %v8329_v10 = vpack.c.bf16 %v4866_v7, %v4865_v6  ;;  %v4957_v6 = vld [vmem:[#allocation9 + $0x8] sm:$0xff]  ;;  %v4959_v7 = vld [vmem:[#allocation9 + $0x18] sm:$0xff] }
 0x6ed   : > { %8276 = vmatpush1.bf16.msra.mxu0 %v8275_v55  ;;  %v4867_v55 = vld [vmem:[#allocation11 + $0x1c0] sm:$0xff] }
 0x6ee   : > { %8277 = vmatprep.subr.bf16.mxu0 %v9204_v46  ;;  %v8332_v2 = vpack.c.bf16 %v4868_v31, %v4867_v55 }
 0x6f1   : > { %8279 = vmatpush1.bf16.msra.mxu0 %v8278_v11  ;;  %v4869_v11 = vld [vmem:[#allocation11 + $0x1d0] sm:$0xff] }
 0x6f2   : > { %8280 = vmatprep.subr.bf16.mxu0 %v9204_v46  ;;  %v8335_v13 = vpack.c.bf16 %v4870_v12, %v4869_v11 }
 0x6f5   : > { %8282 = vmatpush1.bf16.msra.mxu0 %v8281_v16  ;;  %v11322_v16 = vld [vmem:[#allocation4] sm:$0xff] }
 0x6f6   : > { %8283 = vmatprep.subr.bf16.mxu0 %v9204_v46  ;;  %4945 = vst.msk [vmem:[#allocation4 + $0x8] sm:$0xff] %vm4944_vm1, %v11322_v16 }
 0x6f9   : > { %8285 = vmatpush1.bf16.msra.mxu0 %v8284_v17 }
 0x6fa   : > { %8286 = vmatprep.subr.bf16.mxu0 %v9204_v46 }
 0x6fd   : > { %8288 = vmatpush1.bf16.msra.mxu0 %v8287_v9 }
 0x6fe   : > { %8289 = vmatprep.subr.bf16.mxu0 %v9204_v46 }
 0x701   : > { %8291 = vmatpush1.bf16.msra.mxu0 %v8290_v21  ;;  %v4991_v21 = vld [vmem:[#allocation9 + $0x108] sm:$0xff] }
 0x702   : > { %8292 = vmatprep.subr.bf16.mxu0 %v9204_v46 }
 0x797   : > { %v4653_v22 = vpop.f32.mrb[16].mxu0 }
 0x798   : > { %v4655_v24 = vpop.f32.mrb[17].mxu0 }
 0x79b   : > { %v4729_v42 = vpop.f32.mrb[18].mxu0 }
 0x79c   : > { %v11302_v19 = vmax.f32 %v4653_v22, %v4729_v42  ;;  %v4731_v27 = vpop.f32.mrb[19].mxu0  ;;  %v4988_v22 = vld [vmem:[#allocation9 + $0xf0] sm:$0xff]  ;;  %v4995_v42 = vld [vmem:[#allocation9 + $0x128] sm:$0xff] }
 0x79d   : > { %v4735_v38 = vmax.f32 %v4655_v24, %v4731_v27  ;;  %v8337_v24 = vpack.c.bf16 %v4991_v21, %v4989_v23  ;;  %v8341_v27 = vpack.c.bf16 %v4995_v42, %v4993_v26  ;;  %v4961_v23 = vld [vmem:[#allocation9 + $0x28] sm:$0xff]  ;;  %v4963_v21 = vld [vmem:[#allocation9 + $0x38] sm:$0xff]  ;;  %v4960_v42 = vld [vmem:[#allocation9 + $0x20] sm:$0xff] }
 0x79e   : > { %v8369_v26 = vpack.c.bf16 %v4963_v21, %v4961_v23  ;;  %v5185_v23 = vld [vmem:[#allocation9 + $0x248] sm:$0xff]  ;;  %v5187_v21 = vld [vmem:[#allocation9 + $0x258] sm:$0xff] }
 0x79f   : > { %7191 = vmatprep.mubr.msk.f32.mxu0 %vm4766_vm0, %v4735_v38 }
 0x7a0   : > { %4835 = vmatmul.mubr.f32.vlgmr.msra.gmra.mrb[20].mxu0 %v11302_v19 }
 0x7a1   : > { %8294 = vmatpush1.bf16.msra.mxu0 %v8293_v43  ;;  %7192 = vmatprep.mubr.msk.f32.mxu0 %vm4766_vm0, %v4735_v38  ;;  %v4992_v38 = vld [vmem:[#allocation9 + $0x110] sm:$0xff]  ;;  %v4994_v43 = vld [vmem:[#allocation9 + $0x120] sm:$0xff] }
 0x7a2   : > { %8295 = vmatprep.subr.bf16.mxu0 %v9204_v46 }
 0x7a5   : > { %8297 = vmatpush1.bf16.msra.mxu0 %v8296_v30  ;;  %v8343_v30 = vpack.c.bf16 %v4994_v43, %v4992_v38  ;;  %v4965_v38 = vld [vmem:[#allocation9 + $0x48] sm:$0xff]  ;;  %v4967_v43 = vld [vmem:[#allocation9 + $0x58] sm:$0xff] }
 0x7a6   : > { %8298 = vmatprep.subr.bf16.mxu0 %v9204_v46  ;;  %v8373_v29 = vpack.c.bf16 %v4967_v43, %v4965_v38  ;;  %v5188_v38 = vld [vmem:[#allocation9 + $0x260] sm:$0xff]  ;;  %v5190_v43 = vld [vmem:[#allocation9 + $0x270] sm:$0xff] }
 0x7a9   : > { %8300 = vmatpush1.bf16.msra.mxu0 %v8299_v25  ;;  %v4998_v25 = vld [vmem:[#allocation9 + $0x140] sm:$0xff] }
 0x7aa   : > { %8301 = vmatprep.subr.bf16.mxu0 %v9204_v46 }
 0x7ad   : > { %8303 = vmatpush1.bf16.msra.mxu0 %v8302_v33  ;;  %v8347_v33 = vpack.c.bf16 %v4998_v25, %v4996_v45  ;;  %v4969_v45 = vld [vmem:[#allocation9 + $0x68] sm:$0xff]  ;;  %v4971_v25 = vld [vmem:[#allocation9 + $0x78] sm:$0xff] }
 0x7ae   : > { %8304 = vmatprep.subr.bf16.mxu0 %v9204_v46  ;;  %v8377_v39 = vpack.c.bf16 %v4971_v25, %v4969_v45  ;;  %v5192_v45 = vld [vmem:[#allocation9 + $0x280] sm:$0xff]  ;;  %v5194_v25 = vld [vmem:[#allocation9 + $0x290] sm:$0xff] }
 0x7b1   : > { %8306 = vmatpush1.bf16.msra.mxu0 %v8305_v47  ;;  %v5002_v47 = vld [vmem:[#allocation9 + $0x160] sm:$0xff] }
 0x7b2   : > { %8307 = vmatprep.subr.bf16.mxu0 %v9204_v46 }
 0x7b5   : > { %8309 = vmatpush1.bf16.msra.mxu0 %v8308_v48  ;;  %v8351_v48 = vpack.c.bf16 %v5002_v47, %v5000_v36  ;;  %v4973_v36 = vld [vmem:[#allocation9 + $0x88] sm:$0xff]  ;;  %v4975_v47 = vld [vmem:[#allocation9 + $0x98] sm:$0xff] }
 0x7b6   : > { %8310 = vmatprep.subr.bf16.mxu0 %v9204_v46  ;;  %v8381_v14 = vpack.c.bf16 %v4975_v47, %v4973_v36  ;;  %v5196_v36 = vld [vmem:[#allocation9 + $0x2a0] sm:$0xff]  ;;  %v5198_v47 = vld [vmem:[#allocation9 + $0x2b0] sm:$0xff] }
 0x7b9   : > { %8312 = vmatpush1.bf16.msra.mxu0 %v8311_v52  ;;  %v5006_v52 = vld [vmem:[#allocation9 + $0x180] sm:$0xff] }
 0x7ba   : > { %8313 = vmatprep.subr.bf16.mxu0 %v9204_v46 }
 0x7bd   : > { %8315 = vmatpush1.bf16.msra.mxu0 %v8314_v8  ;;  %v8355_v8 = vpack.c.bf16 %v5006_v52, %v5004_v40  ;;  %v4977_v40 = vld [vmem:[#allocation9 + $0xa8] sm:$0xff]  ;;  %v4979_v52 = vld [vmem:[#allocation9 + $0xb8] sm:$0xff] }
 0x7be   : > { %8316 = vmatprep.subr.bf16.mxu0 %v9204_v46  ;;  %v8385_v37 = vpack.c.bf16 %v4979_v52, %v4977_v40  ;;  %v5285_v40 = vld [vmem:[#allocation9 + $0x2d0] sm:$0xff]  ;;  %v5287_v52 = vld [vmem:[#allocation9 + $0x2e0] sm:$0xff] }
 0x7c1   : > { %8318 = vmatpush1.bf16.msra.mxu0 %v8317_v0  ;;  %v5010_v0 = vld [vmem:[#allocation9 + $0x1a0] sm:$0xff] }
 0x7c2   : > { %8319 = vmatprep.subr.bf16.mxu0 %v9204_v46 }
 0x7c5   : > { %8321 = vmatpush1.bf16.msra.mxu0 %v8320_v61  ;;  %v8359_v61 = vpack.c.bf16 %v5010_v0, %v5008_v35  ;;  %v4981_v35 = vld [vmem:[#allocation9 + $0xc8] sm:$0xff]  ;;  %v4983_v0 = vld [vmem:[#allocation9 + $0xd8] sm:$0xff] }
 0x7c6   : > { %8322 = vmatprep.subr.bf16.mxu0 %v9204_v46  ;;  %v8389_v50 = vpack.c.bf16 %v4983_v0, %v4981_v35  ;;  %v5200_v35 = vld [vmem:[#allocation9 + $0x2c0] sm:$0xff] }
 0x7c9   : > { %8324 = vmatpush1.bf16.msra.mxu0 %v8323_v1  ;;  %v5014_v1 = vld [vmem:[#allocation9 + $0x1c0] sm:$0xff] }
 0x7ca   : > { %8325 = vmatprep.subr.bf16.mxu0 %v9204_v46  ;;  %v8363_v3 = vpack.c.bf16 %v5014_v1, %v5012_v63  ;;  %v4985_v1 = vld [vmem:[#allocation9 + $0xe8] sm:$0xff] }
 0x7cd   : > { %8327 = vmatpush1.bf16.msra.mxu0 %v8326_v5  ;;  %v5016_v5 = vld [vmem:[#allocation9 + $0x1d0] sm:$0xff] }
 0x7ce   : > { %8328 = vmatprep.subr.bf16.mxu0 %v9204_v46 }
 0x7d1   : > { %8330 = vmatpush1.bf16.msra.mxu0 %v8329_v10  ;;  %v8365_v10 = vpack.c.bf16 %v4959_v7, %v4957_v6  ;;  %v5174_v6 = vld [vmem:[#allocation9 + $0x1f0] sm:$0xff]  ;;  %v5177_v7 = vld [vmem:[#allocation9 + $0x208] sm:$0xff] }
 0x7d2   : > { %8331 = vmatprep.subr.bf16.mxu0 %v9204_v46 }
 0x7d5   : > { %8333 = vmatpush1.bf16.msra.mxu0 %v8332_v2 }
 0x7d6   : > { %8334 = vmatprep.subr.bf16.mxu0 %v9204_v46 }
 0x7d9   : > { %8336 = vmatpush1.bf16.msra.mxu0 %v8335_v13 }
 0x7da   : > { %8338 = vmatprep.subr.bf16.mxu0 %v8337_v24 }
 0x7dc   : > { %4936 = vmatmul.mubr.f32.vlgmr.msra.gmra.mrb[22].mxu0 %v11302_v19  ;;  %v8339_v19 = vpack.c.bf16 %v4990_v15, %v4988_v22 }
 0x7dd   : > { %5091 = vmatprep.mubr.f32.mxu0 %v11322_v16 }
 0x7de   : > { %8340 = vmatpush1.bf16.msra.mxu0 %v8339_v19  ;;  %v4962_v19 = vld [vmem:[#allocation9 + $0x30] sm:$0xff] }
 0x7df   : > { %8342 = vmatprep.subr.bf16.mxu0 %v8341_v27  ;;  %v8371_v28 = vpack.c.bf16 %v4962_v19, %v4960_v42  ;;  %v5189_v42 = vld [vmem:[#allocation9 + $0x268] sm:$0xff]  ;;  %v5191_v19 = vld [vmem:[#allocation9 + $0x278] sm:$0xff] }
 0x7e2   : > { %8344 = vmatpush1.bf16.msra.mxu0 %v8343_v30  ;;  %v4964_v30 = vld [vmem:[#allocation9 + $0x40] sm:$0xff] }
 0x7e3   : > { %8346 = vmatprep.subr.bf16.mxu0 %v8345_v44  ;;  %v4966_v44 = vld [vmem:[#allocation9 + $0x50] sm:$0xff] }
 0x7e4   : > { %v8375_v32 = vpack.c.bf16 %v4966_v44, %v4964_v30  ;;  %v8411_v30 = vpack.c.bf16 %v5190_v43, %v5188_v38  ;;  %v5311_v38 = vld [vmem:[#allocation9 + $0x3a0] sm:$0xff] }
 0x7e6   : > { %8348 = vmatpush1.bf16.msra.mxu0 %v8347_v33  ;;  %v4968_v33 = vld [vmem:[#allocation9 + $0x60] sm:$0xff] }
 0x7e7   : > { %8350 = vmatprep.subr.bf16.mxu0 %v8349_v34  ;;  %v4970_v34 = vld [vmem:[#allocation9 + $0x70] sm:$0xff] }
 0x7e8   : > { %v8379_v58 = vpack.c.bf16 %v4970_v34, %v4968_v33  ;;  %v8415_v33 = vpack.c.bf16 %v5194_v25, %v5192_v45  ;;  %v5397_v45 = vld [vmem:[#allocation9 + $0x3d0] sm:$0xff] }
 0x7ea   : > { %8352 = vmatpush1.bf16.msra.mxu0 %v8351_v48  ;;  %v4972_v48 = vld [vmem:[#allocation9 + $0x80] sm:$0xff] }
 0x7eb   : > { %8354 = vmatprep.subr.bf16.mxu0 %v8353_v41  ;;  %v4974_v41 = vld [vmem:[#allocation9 + $0x90] sm:$0xff] }
 0x7ec   : > { %v8383_v53 = vpack.c.bf16 %v4974_v41, %v4972_v48  ;;  %v5286_v48 = vld [vmem:[#allocation9 + $0x2d8] sm:$0xff]  ;;  %v5288_v41 = vld [vmem:[#allocation9 + $0x2e8] sm:$0xff] }
 0x7ed   : > { %v8421_v0 = vpack.c.bf16 %v5288_v41, %v5286_v48  ;;  %v5401_v48 = vld [vmem:[#allocation9 + $0x3f0] sm:$0xff]  ;;  %v5404_v41 = vld [vmem:[#allocation9 + $0x408] sm:$0xff] }
 0x7ee   : > { %8356 = vmatpush1.bf16.msra.mxu0 %v8355_v8  ;;  %v4976_v8 = vld [vmem:[#allocation9 + $0xa0] sm:$0xff] }
 0x7ef   : > { %8358 = vmatprep.subr.bf16.mxu0 %v8357_v60  ;;  %v4978_v60 = vld [vmem:[#allocation9 + $0xb0] sm:$0xff] }
 0x7f0   : > { %v8387_v57 = vpack.c.bf16 %v4978_v60, %v4976_v8 }
 0x7f2   : > { %8360 = vmatpush1.bf16.msra.mxu0 %v8359_v61  ;;  %v4980_v61 = vld [vmem:[#allocation9 + $0xc0] sm:$0xff] }
 0x7f3   : > { %8362 = vmatprep.subr.bf16.mxu0 %v8361_v62  ;;  %v4982_v62 = vld [vmem:[#allocation9 + $0xd0] sm:$0xff] }
 0x7f4   : > { %v8391_v63 = vpack.c.bf16 %v4982_v62, %v4980_v61  ;;  %v5289_v61 = vld [vmem:[#allocation9 + $0x2f0] sm:$0xff]  ;;  %v5291_v62 = vld [vmem:[#allocation9 + $0x300] sm:$0xff] }
 0x7f6   : > { %8364 = vmatpush1.bf16.msra.mxu0 %v8363_v3  ;;  %v5173_v3 = vld [vmem:[#allocation9 + $0x1e8] sm:$0xff] }
 0x7f7   : > { %5055 = vmatprep.subr.mxu0 %v5017_v4  ;;  %v5175_v4 = vld [vmem:[#allocation9 + $0x1f8] sm:$0xff] }
 0x7fa   : > { %5056 = vmatpush1.msra.mxu0 %v5016_v5  ;;  %v5172_v5 = vld [vmem:[#allocation9 + $0x1e0] sm:$0xff] }
 0x7fb   : > { %8366 = vmatprep.subr.bf16.mxu0 %v8365_v10  ;;  %v5179_v10 = vld [vmem:[#allocation9 + $0x218] sm:$0xff] }
 0x873   : > { %v4836_v49 = vpop.f32.mrb[20].mxu0 }
 0x874   : > { %v4838_v51 = vpop.f32.mrb[21].mxu0 }
 0x8af   : > { %v4937_v17 = vpop.f32.mrb[22].mxu0 }
 0x8b0   : > { %v4941_v59 = vmax.f32 %v4836_v49, %v4937_v17  ;;  %v4939_v18 = vpop.f32.mrb[23].mxu0 }
 0x8b2   : > { %v4942_v9 = vmax.f32 %v4941_v59, 0.0 }
 0x8b4   : > { %v4947_v20 = vrot.slane %v4942_v9, 7  ;;  %v4956_v9 = vld [vmem:[#allocation9] sm:$0xff] }
 0x8b6   : > { %4948 = vrot.lane.b32.xlu0 %v4947_v20, %s9205_s29  ;;  %v4958_v20 = vld [vmem:[#allocation9 + $0x10] sm:$0xff] }
 0x8b7   : > { %v8367_v22 = vpack.c.bf16 %v4958_v20, %v4956_v9  ;;  %v5180_v9 = vld [vmem:[#allocation9 + $0x220] sm:$0xff]  ;;  %v5182_v20 = vld [vmem:[#allocation9 + $0x230] sm:$0xff] }
 0x928   : > { %v4949_v55 = vpop.permute.xlu0 %4948 }
 0x929   : > { %4952 = vst.msk [vmem:[#allocation4] sm:$0x7e] %vm4951_vm2, %v4949_v55 }
 0x92a   : > { %4954 = vst.msk [vmem:[#allocation4 + $0x8] sm:$0x7e] %vm4953_vm3, %v4949_v55  ;;  %v4984_v55 = vld [vmem:[#allocation9 + $0xe0] sm:$0xff] }
 0x930   : > { %v11326_v2 = vld [vmem:[#allocation4] sm:$0x3f] }
 0x931   : > { %v4986_v31 = vld [vmem:[#allocation4 + $0x8] sm:$0x3f]  ;;  %5020 = vrot.lane.b32.xlu1 %v11326_v2, %s9202_s17  ;;  %v5392_v12 = vld [vmem:[#allocation4] sm:$0x7e] }
 0x932   : > { %5022 = vrot.lane.b32.xlu0 %v4986_v31, %s9202_s17  ;;  %v5393_v11 = vld [vmem:[#allocation4 + $0x8] sm:$0x7e]  ;;  %v5427_v49 = vrot.slane %v5392_v12, 1  ;;  %v5729_v17 = vld [vmem:[#allocation4] sm:$0xfc]  ;;  %v8397_v12 = vpack.c.bf16 %v5179_v10, %v5177_v7  ;;  %v5295_v7 = vld [vmem:[#allocation9 + $0x320] sm:$0xff] }
 0x933   : > { %v5428_v13 = vrot.slane %v5393_v11, 1  ;;  %v5730_v51 = vld [vmem:[#allocation4 + $0x8] sm:$0xfc]  ;;  %v5764_v18 = vrot.slane %v5729_v17, 2  ;;  %v8395_v11 = vpack.c.bf16 %v5174_v6, %v5172_v5  ;;  %v5283_v25 = vld [vmem:[#allocation4] sm:$0x7e] }
 0x934   : > { %v5765_v59 = vrot.slane %v5730_v51, 2  ;;  %v5181_v51 = vld [vmem:[#allocation9 + $0x228] sm:$0xff]  ;;  %v5183_v17 = vld [vmem:[#allocation9 + $0x238] sm:$0xff]  ;;  %v5293_v6 = vld [vmem:[#allocation9 + $0x310] sm:$0xff] }
 0x935   : > { %5202 = vrot.lane.b32.xlu1 %v11326_v2, %s9206_s25  ;;  %v5298_v10 = vld [vmem:[#allocation9 + $0x338] sm:$0xff] }
 0x936   : > { %5204 = vrot.lane.b32.xlu0 %v4986_v31, %s9206_s25  ;;  %v8393_v31 = vpack.c.bf16 %v5175_v4, %v5173_v3  ;;  %v5296_v3 = vld [vmem:[#allocation9 + $0x328] sm:$0xff]  ;;  %v8427_v4 = vpack.c.bf16 %v5291_v62, %v5289_v61  ;;  %v5409_v61 = vld [vmem:[#allocation9 + $0x430] sm:$0xff] }
 0x937   : > { %v5412_v62 = vld [vmem:[#allocation9 + $0x448] sm:$0xff] }
 0x939   : > { %5429 = vrot.lane.b32.xlu1 %v5427_v49, %s9202_s17 }
 0x93a   : > { %5431 = vrot.lane.b32.xlu0 %v5428_v13, %s9202_s17 }
 0x93d   : > { %5540 = vrot.lane.b32.xlu1 %v5427_v49, %s9206_s25  ;;  %v5178_v49 = vld [vmem:[#allocation9 + $0x210] sm:$0xff] }
 0x93e   : > { %5542 = vrot.lane.b32.xlu0 %v5428_v13, %s9206_s25  ;;  %v5176_v13 = vld [vmem:[#allocation9 + $0x200] sm:$0xff] }
 0x941   : > { %5766 = vrot.lane.b32.xlu1 %v5764_v18, %s9202_s17 }
 0x942   : > { %5768 = vrot.lane.b32.xlu0 %v5765_v59, %s9202_s17  ;;  %s7244_s17 = sshll.u32 %s9310_s22, 4  ;;  %s9208_s22 = smov [#allocation14]  }
 0x943   : > { %s11588_s23 = scalar_lea.hbm %s11688_s30, %s7244_s17  ;;  %s9115_s14 = sshll.u32 %s9208_s22, 4  ;;  %s9116_s14 = int_to_ptr.vmem [resolvable:$false] %s9115_s14 }
 0x944   : > { %s9117_s28 = scalar_lea.vmem %s9116_s14, 32  ;;  %p9118_p8 = scmp.lt.s32.totalorder %s11590_s26, %s9116_s14 }
 0x945   : > { %5877 = vrot.lane.b32.xlu1 %v5764_v18, %s9206_s25  ;;  %v8401_v18 = vpack.c.bf16 %v5183_v17, %v5181_v51  ;;  %v5304_v51 = vld [vmem:[#allocation9 + $0x368] sm:$0xff]  ;;  %p9119_p11 = scmp.lt.s32.totalorder %s9117_s28, %s9111_s16 }
 0x946   : > { %5879 = vrot.lane.b32.xlu0 %v5765_v59, %s9206_s25  ;;  %v8399_v59 = vpack.c.bf16 %v5178_v49, %v5176_v13  ;;  %v5299_v13 = vld [vmem:[#allocation9 + $0x340] sm:$0xff]  ;;  %v5302_v49 = vld [vmem:[#allocation9 + $0x358] sm:$0xff]  ;;  %s11687_s25 = sld [smem:[#allocation28_spill]] }
 0x947   : > { %p9120_p13 = por %p9119_p11, %p9118_p8 }
 0x949   : > { %p9121_p5 = pnand %p9120_p13, %p9114_p7 }
 0x9a3   : > { %v5021_v15 = vpop.permute.xlu1 %5020 }
 0x9a4   : > { %v5023_v24 = vpop.permute.xlu0 %5022 }
 0x9a5   : > { %v5024_v27 = vsel %vm3693_vm14, %v5021_v15, %v5023_v24  ;;  %v8405_v24 = vpack.c.bf16 %v5187_v21, %v5185_v23  ;;  %v5184_v15 = vld [vmem:[#allocation9 + $0x240] sm:$0xff]  ;;  %v5308_v23 = vld [vmem:[#allocation9 + $0x388] sm:$0xff] }
 0x9a6   : > { %7193 = vmatmul.mubr.msk.f32.vlgmr.msra.gmra.mrb[24].mxu0 %vm3491_vm9, %v5024_v27  ;;  %v8409_v27 = vpack.c.bf16 %v5191_v19, %v5189_v42  ;;  %v5312_v42 = vld [vmem:[#allocation9 + $0x3a8] sm:$0xff] }
 0x9a7   : > { %8368 = vmatpush1.bf16.msra.mxu0 %v8367_v22  ;;  %5164 = vmatprep.mubr.f32.mxu0 %v11322_v16  ;;  %v8403_v22 = vpack.c.bf16 %v5182_v20, %v5180_v9  ;;  %v5203_v60 = vpop.permute.xlu1 %5202  ;;  %v5303_v9 = vld [vmem:[#allocation9 + $0x360] sm:$0xff]  ;;  %v5306_v20 = vld [vmem:[#allocation9 + $0x378] sm:$0xff] }
 0x9a8   : > { %8370 = vmatprep.subr.bf16.mxu0 %v8369_v26  ;;  %v5186_v26 = vld [vmem:[#allocation9 + $0x250] sm:$0xff]  ;;  %v5205_v8 = vpop.permute.xlu0 %5204 }
 0x9ab   : > { %8372 = vmatpush1.bf16.msra.mxu0 %v8371_v28  ;;  %v5193_v28 = vld [vmem:[#allocation9 + $0x288] sm:$0xff] }
 0x9ac   : > { %8374 = vmatprep.subr.bf16.mxu0 %v8373_v29  ;;  %v5195_v29 = vld [vmem:[#allocation9 + $0x298] sm:$0xff] }
 0x9ad   : > { %v8413_v44 = vpack.c.bf16 %v5195_v29, %v5193_v28  ;;  %v5314_v28 = vld [vmem:[#allocation9 + $0x3b8] sm:$0xff]  ;;  %v5396_v29 = vld [vmem:[#allocation9 + $0x3c8] sm:$0xff] }
 0x9af   : > { %8376 = vmatpush1.bf16.msra.mxu0 %v8375_v32  ;;  %v5197_v32 = vld [vmem:[#allocation9 + $0x2a8] sm:$0xff] }
 0x9b0   : > { %8378 = vmatprep.subr.bf16.mxu0 %v8377_v39  ;;  %v5199_v39 = vld [vmem:[#allocation9 + $0x2b8] sm:$0xff] }
 0x9b1   : > { %v8417_v34 = vpack.c.bf16 %v5199_v39, %v5197_v32  ;;  %v5400_v32 = vld [vmem:[#allocation9 + $0x3e8] sm:$0xff]  ;;  %v5402_v39 = vld [vmem:[#allocation9 + $0x3f8] sm:$0xff] }
 0x9b3   : > { %8380 = vmatpush1.bf16.msra.mxu0 %v8379_v58  ;;  %v8419_v58 = vpack.c.bf16 %v5198_v47, %v5196_v36  ;;  %v5316_v47 = vrot.slane %v5283_v25, 1 }
 0x9b4   : > { %8382 = vmatprep.subr.bf16.mxu0 %v8381_v14  ;;  %v5201_v14 = vld [vmem:[#allocation9 + $0x2c8] sm:$0xff] }
 0x9b7   : > { %8384 = vmatpush1.bf16.msra.mxu0 %v8383_v53  ;;  %v5290_v53 = vld [vmem:[#allocation9 + $0x2f8] sm:$0xff] }
 0x9b8   : > { %8386 = vmatprep.subr.bf16.mxu0 %v8385_v37  ;;  %v5292_v37 = vld [vmem:[#allocation9 + $0x308] sm:$0xff] }
 0x9bb   : > { %8388 = vmatpush1.bf16.msra.mxu0 %v8387_v57  ;;  %v8423_v57 = vpack.c.bf16 %v5287_v52, %v5285_v40  ;;  %v5406_v40 = vld [vmem:[#allocation9 + $0x418] sm:$0xff] }
 0x9bc   : > { %8390 = vmatprep.subr.bf16.mxu0 %v8389_v50  ;;  %v8425_v50 = vpack.c.bf16 %v5292_v37, %v5290_v53  ;;  %v8457_v53 = vpack.c.bf16 %v5406_v40, %v5404_v41  ;;  %v5403_v37 = vld [vmem:[#allocation9 + $0x400] sm:$0xff]  ;;  %v5529_v41 = vld [vmem:[#allocation9 + $0x548] sm:$0xff] }
 0x9bf   : > { %8392 = vmatpush1.bf16.msra.mxu0 %v8391_v63  ;;  %v5207_v63 = vsel %vm5206_vm4, %v5203_v60, %v5205_v8  ;;  %v5405_v8 = vld [vmem:[#allocation9 + $0x410] sm:$0xff]  ;;  %v5408_v60 = vld [vmem:[#allocation9 + $0x428] sm:$0xff] }
 0x9c0   : > { %5128 = vmatprep.subr.mxu0 %v4985_v1  ;;  %v5294_v1 = vld [vmem:[#allocation9 + $0x318] sm:$0xff] }
 0x9c1   : > { %v8429_v5 = vpack.c.bf16 %v5296_v3, %v5294_v1 }
 0x9c3   : > { %5129 = vmatpush1.msra.mxu0 %v4984_v55  ;;  %v5300_v55 = vld [vmem:[#allocation9 + $0x348] sm:$0xff] }
 0x9c4   : > { %7194 = vmatmul.mubr.msk.f32.vlgmr.msra.gmra.mrb[24].mxu0 %vm3491_vm9, %v11326_v2  ;;  %8394 = vmatprep.subr.bf16.mxu0 %v8393_v31  ;;  %v8407_v2 = vpack.c.bf16 %v5186_v26, %v5184_v15  ;;  %v8431_v31 = vpack.c.bf16 %v5295_v7, %v5293_v6  ;;  %v5307_v15 = vld [vmem:[#allocation9 + $0x380] sm:$0xff]  ;;  %v5310_v26 = vld [vmem:[#allocation9 + $0x398] sm:$0xff]  ;;  %v5416_v6 = vld [vmem:[#allocation9 + $0x468] sm:$0xff] }
 0x9c5   : > { %8396 = vmatpush1.bf16.msra.mxu0 %v8395_v11  ;;  %5274 = vmatprep.mubr.f32.mxu0 %v11322_v16  ;;  %v8433_v11 = vpack.c.bf16 %v5300_v55, %v5298_v10  ;;  %v5418_v7 = vld [vmem:[#allocation9 + $0x478] sm:$0xff] }
 0x9c6   : > { %8398 = vmatprep.subr.bf16.mxu0 %v8397_v12  ;;  %v5297_v12 = vld [vmem:[#allocation9 + $0x330] sm:$0xff]  ;;  %v8469_v55 = vpack.c.bf16 %v5418_v7, %v5416_v6  ;;  %v5539_v6 = vld [vmem:[#allocation9 + $0x598] sm:$0xff]  ;;  %v5623_v7 = vld [vmem:[#allocation9 + $0x5a8] sm:$0xff] }
 0x9c7   : > { %v8435_v17 = vpack.c.bf16 %v5299_v13, %v5297_v12  ;;  %v5420_v12 = vld [vmem:[#allocation9 + $0x488] sm:$0xff]  ;;  %v5422_v13 = vld [vmem:[#allocation9 + $0x498] sm:$0xff] }
 0x9c9   : > { %8400 = vmatpush1.bf16.msra.mxu0 %v8399_v59  ;;  %v8437_v59 = vpack.c.bf16 %v5304_v51, %v5302_v49  ;;  %v8473_v51 = vpack.c.bf16 %v5422_v13, %v5420_v12  ;;  %v5629_v12 = vld [vmem:[#allocation9 + $0x5d8] sm:$0xff] }
 0x9ca   : > { %8402 = vmatprep.subr.bf16.mxu0 %v8401_v18  ;;  %v5301_v18 = vld [vmem:[#allocation9 + $0x350] sm:$0xff] }
 0x9cb   : > { %v8439_v21 = vpack.c.bf16 %v5303_v9, %v5301_v18  ;;  %v5424_v9 = vld [vmem:[#allocation9 + $0x4a8] sm:$0xff] }
 0x9cd   : > { %8404 = vmatpush1.bf16.msra.mxu0 %v8403_v22  ;;  %v8441_v22 = vpack.c.bf16 %v5308_v23, %v5306_v20  ;;  %v5511_v20 = vld [vmem:[#allocation9 + $0x4b8] sm:$0xff]  ;;  %v5513_v23 = vld [vmem:[#allocation9 + $0x4c8] sm:$0xff] }
 0x9ce   : > { %8406 = vmatprep.subr.bf16.mxu0 %v8405_v24  ;;  %v5305_v24 = vld [vmem:[#allocation9 + $0x370] sm:$0xff] }
 0x9cf   : > { %v8443_v19 = vpack.c.bf16 %v5307_v15, %v5305_v24  ;;  %v5515_v24 = vld [vmem:[#allocation9 + $0x4d8] sm:$0xff]  ;;  %v5517_v15 = vld [vmem:[#allocation9 + $0x4e8] sm:$0xff] }
 0x9d1   : > { %8408 = vmatpush1.bf16.msra.mxu0 %v8407_v2  ;;  %v8445_v2 = vpack.c.bf16 %v5312_v42, %v5310_v26  ;;  %v5432_v26 = vpop.permute.xlu0 %5431  ;;  %v5430_v42 = vpop.permute.xlu1 %5429 }
 0x9d2   : > { %8410 = vmatprep.subr.bf16.mxu0 %v8409_v27  ;;  %v5309_v27 = vld [vmem:[#allocation9 + $0x390] sm:$0xff] }
 0x9d3   : > { %v8447_v43 = vpack.c.bf16 %v5311_v38, %v5309_v27  ;;  %v8481_v38 = vpack.c.bf16 %v5517_v15, %v5515_v24 }
 0x9d5   : > { %8412 = vmatpush1.bf16.msra.mxu0 %v8411_v30  ;;  %v5398_v30 = vld [vmem:[#allocation9 + $0x3d8] sm:$0xff]  ;;  %v5543_v13 = vpop.permute.xlu0 %5542 }
 0x9d6   : > { %8414 = vmatprep.subr.bf16.mxu0 %v8413_v44  ;;  %v5395_v44 = vld [vmem:[#allocation9 + $0x3c0] sm:$0xff] }
 0x9d7   : > { %v8451_v36 = vpack.c.bf16 %v5397_v45, %v5395_v44  ;;  %v5521_v44 = vld [vmem:[#allocation9 + $0x508] sm:$0xff] }
 0x9d9   : > { %8416 = vmatpush1.bf16.msra.mxu0 %v8415_v33  ;;  %v5313_v33 = vld [vmem:[#allocation9 + $0x3b0] sm:$0xff] }
 0x9da   : > { %8418 = vmatprep.subr.bf16.mxu0 %v8417_v34  ;;  %v8449_v34 = vpack.c.bf16 %v5398_v30, %v5396_v29  ;;  %v5433_v29 = vsel %vm3693_vm14, %v5430_v42, %v5432_v26  ;;  %v5519_v30 = vld [vmem:[#allocation9 + $0x4f8] sm:$0xff]  ;;  %v5630_v26 = vld [vmem:[#allocation9 + $0x5e0] sm:$0xff]  ;;  %v5632_v42 = vld [vmem:[#allocation9 + $0x5f0] sm:$0xff] }
 0x9db   : > { %v8485_v25 = vpack.c.bf16 %v5521_v44, %v5519_v30  ;;  %v5641_v30 = vld [vmem:[#allocation9 + $0x638] sm:$0xff] }
 0x9dd   : > { %8420 = vmatpush1.bf16.msra.mxu0 %v8419_v58  ;;  %v8453_v58 = vpack.c.bf16 %v5402_v39, %v5400_v32  ;;  %v5518_v32 = vld [vmem:[#allocation9 + $0x4f0] sm:$0xff]  ;;  %v5520_v39 = vld [vmem:[#allocation9 + $0x500] sm:$0xff] }
 0x9de   : > { %5238 = vmatprep.subr.mxu0 %v5201_v14  ;;  %v5399_v14 = vld [vmem:[#allocation9 + $0x3e0] sm:$0xff] }
 0x9df   : > { %v8455_v52 = vpack.c.bf16 %v5401_v48, %v5399_v14  ;;  %v5524_v14 = vld [vmem:[#allocation9 + $0x520] sm:$0xff]  ;;  %v5527_v48 = vld [vmem:[#allocation9 + $0x538] sm:$0xff] }
 0x9e1   : > { %5239 = vmatpush1.msra.mxu0 %v5200_v35  ;;  %v5410_v35 = vld [vmem:[#allocation9 + $0x438] sm:$0xff] }
 0x9e2   : > { %7195 = vmatmul.mubr.msk.f32.vlgmr.msra.gmra.mrb[24].mxu0 %vm3491_vm9, %v5207_v63  ;;  %8422 = vmatprep.subr.bf16.mxu0 %v8421_v0  ;;  %v8459_v0 = vpack.c.bf16 %v5405_v8, %v5403_v37  ;;  %v5414_v63 = vld [vmem:[#allocation9 + $0x458] sm:$0xff]  ;;  %v5528_v37 = vld [vmem:[#allocation9 + $0x540] sm:$0xff] }
 0x9e3   : > { %8424 = vmatpush1.bf16.msra.mxu0 %v8423_v57  ;;  %5383 = vmatprep.mubr.f32.mxu0 %v11322_v16  ;;  %v8461_v57 = vpack.c.bf16 %v5410_v35, %v5408_v60  ;;  %v8465_v3 = vpack.c.bf16 %v5414_v63, %v5412_v62  ;;  %v5531_v8 = vld [vmem:[#allocation9 + $0x558] sm:$0xff]  ;;  %v5533_v60 = vld [vmem:[#allocation9 + $0x568] sm:$0xff] }
 0x9e4   : > { %8426 = vmatprep.subr.bf16.mxu0 %v8425_v50  ;;  %v5407_v50 = vld [vmem:[#allocation9 + $0x420] sm:$0xff]  ;;  %v5537_v62 = vld [vmem:[#allocation9 + $0x588] sm:$0xff] }
 0x9e5   : > { %v8463_v1 = vpack.c.bf16 %v5409_v61, %v5407_v50  ;;  %v5532_v50 = vld [vmem:[#allocation9 + $0x560] sm:$0xff]  ;;  %v5535_v61 = vld [vmem:[#allocation9 + $0x578] sm:$0xff] }
 0x9e7   : > { %8428 = vmatpush1.bf16.msra.mxu0 %v8427_v4  ;;  %v5411_v4 = vld [vmem:[#allocation9 + $0x440] sm:$0xff] }
 0x9e8   : > { %8430 = vmatprep.subr.bf16.mxu0 %v8429_v5  ;;  %v5413_v5 = vld [vmem:[#allocation9 + $0x450] sm:$0xff] }
 0x9e9   : > { %v8467_v10 = vpack.c.bf16 %v5413_v5, %v5411_v4  ;;  %v5536_v4 = vld [vmem:[#allocation9 + $0x580] sm:$0xff] }
 0x9eb   : > { %8432 = vmatpush1.bf16.msra.mxu0 %v8431_v31  ;;  %v5415_v31 = vld [vmem:[#allocation9 + $0x460] sm:$0xff] }
 0x9ec   : > { %8434 = vmatprep.subr.bf16.mxu0 %v8433_v11  ;;  %v5417_v11 = vld [vmem:[#allocation9 + $0x470] sm:$0xff] }
 0x9ed   : > { %v8471_v49 = vpack.c.bf16 %v5417_v11, %v5415_v31  ;;  %v5624_v31 = vld [vmem:[#allocation9 + $0x5b0] sm:$0xff]  ;;  %v5627_v11 = vld [vmem:[#allocation9 + $0x5c8] sm:$0xff] }
 0x9ef   : > { %8436 = vmatpush1.bf16.msra.mxu0 %v8435_v17  ;;  %v5419_v17 = vld [vmem:[#allocation9 + $0x480] sm:$0xff] }
 0x9f0   : > { %8438 = vmatprep.subr.bf16.mxu0 %v8437_v59  ;;  %v5421_v59 = vld [vmem:[#allocation9 + $0x490] sm:$0xff] }
 0x9f1   : > { %v8475_v18 = vpack.c.bf16 %v5421_v59, %v5419_v17 }
 0x9f3   : > { %8440 = vmatpush1.bf16.msra.mxu0 %v8439_v21  ;;  %v5510_v21 = vld [vmem:[#allocation9 + $0x4b0] sm:$0xff] }
 0x9f4   : > { %8442 = vmatprep.subr.bf16.mxu0 %v8441_v22  ;;  %v5512_v22 = vld [vmem:[#allocation9 + $0x4c0] sm:$0xff] }
 0x9f5   : > { %v8479_v27 = vpack.c.bf16 %v5512_v22, %v5510_v21  ;;  %v5631_v21 = vld [vmem:[#allocation9 + $0x5e8] sm:$0xff]  ;;  %v5633_v22 = vld [vmem:[#allocation9 + $0x5f8] sm:$0xff] }
 0x9f6   : > { %v8513_v15 = vpack.c.bf16 %v5633_v22, %v5631_v21 }
 0x9f7   : > { %8444 = vmatpush1.bf16.msra.mxu0 %v8443_v19  ;;  %v5423_v19 = vld [vmem:[#allocation9 + $0x4a0] sm:$0xff] }
 0x9f8   : > { %8446 = vmatprep.subr.bf16.mxu0 %v8445_v2  ;;  %v8477_v2 = vpack.c.bf16 %v5513_v23, %v5511_v20  ;;  %v5628_v20 = vld [vmem:[#allocation9 + $0x5d0] sm:$0xff] }
 0x9fb   : > { %8448 = vmatpush1.bf16.msra.mxu0 %v8447_v43  ;;  %v5514_v43 = vld [vmem:[#allocation9 + $0x4d0] sm:$0xff] }
 0x9fc   : > { %5347 = vmatprep.subr.mxu0 %v5314_v28  ;;  %v5516_v28 = vld [vmem:[#allocation9 + $0x4e0] sm:$0xff] }
 0x9fd   : > { %v8483_v45 = vpack.c.bf16 %v5516_v28, %v5514_v43  ;;  %v5634_v43 = vld [vmem:[#allocation9 + $0x600] sm:$0xff]  ;;  %v5636_v28 = vld [vmem:[#allocation9 + $0x610] sm:$0xff] }
 0x9fe   : > { %v8519_v44 = vpack.c.bf16 %v5636_v28, %v5634_v43  ;;  %v5757_v43 = vld [vmem:[#allocation9 + $0x758] sm:$0xff]  ;;  %v5759_v28 = vld [vmem:[#allocation9 + $0x768] sm:$0xff] }
 0x9ff   : > { %5348 = vmatpush1.msra.mxu0 %v5313_v33  ;;  %v5523_v33 = vld [vmem:[#allocation9 + $0x518] sm:$0xff] }
 0xa00   : > { %7196 = vmatmul.mubr.msk.f32.vlgmr.msra.gmra.mrb[24].mxu0 %vm3491_vm9, %v5316_v47  ;;  %8450 = vmatprep.subr.bf16.mxu0 %v8449_v34  ;;  %v5525_v34 = vld [vmem:[#allocation9 + $0x528] sm:$0xff] }
 0xa01   : > { %8452 = vmatpush1.bf16.msra.mxu0 %v8451_v36  ;;  %5500 = vmatprep.mubr.f32.mxu0 %v11322_v16  ;;  %v8487_v36 = vpack.c.bf16 %v5520_v39, %v5518_v32  ;;  %v8489_v47 = vpack.c.bf16 %v5525_v34, %v5523_v33  ;;  %v5640_v32 = vld [vmem:[#allocation9 + $0x630] sm:$0xff]  ;;  %v5643_v39 = vld [vmem:[#allocation9 + $0x648] sm:$0xff]  ;;  %v5645_v33 = vld [vmem:[#allocation9 + $0x658] sm:$0xff] }
 0xa02   : > { %8454 = vmatprep.subr.bf16.mxu0 %v8453_v58  ;;  %v5522_v58 = vld [vmem:[#allocation9 + $0x510] sm:$0xff] }
 0xa03   : > { %v8491_v40 = vpack.c.bf16 %v5524_v14, %v5522_v58  ;;  %v5644_v58 = vld [vmem:[#allocation9 + $0x650] sm:$0xff]  ;;  %v5647_v14 = vld [vmem:[#allocation9 + $0x668] sm:$0xff] }
 0xa05   : > { %8456 = vmatpush1.bf16.msra.mxu0 %v8455_v52  ;;  %v8493_v52 = vpack.c.bf16 %v5529_v41, %v5527_v48  ;;  %v5649_v48 = vld [vmem:[#allocation9 + $0x678] sm:$0xff] }
 0xa06   : > { %8458 = vmatprep.subr.bf16.mxu0 %v8457_v53  ;;  %v5526_v53 = vld [vmem:[#allocation9 + $0x530] sm:$0xff] }
 0xa07   : > { %v8495_v35 = vpack.c.bf16 %v5528_v37, %v5526_v53  ;;  %v5648_v53 = vld [vmem:[#allocation9 + $0x670] sm:$0xff] }
 0xa09   : > { %8460 = vmatpush1.bf16.msra.mxu0 %v8459_v0  ;;  %v8497_v0 = vpack.c.bf16 %v5533_v60, %v5531_v8  ;;  %v5651_v8 = vld [vmem:[#allocation9 + $0x688] sm:$0xff]  ;;  %v5733_v60 = vld [vmem:[#allocation9 + $0x698] sm:$0xff] }
 0xa0a   : > { %8462 = vmatprep.subr.bf16.mxu0 %v8461_v57  ;;  %v5530_v57 = vld [vmem:[#allocation9 + $0x550] sm:$0xff] }
 0xa0b   : > { %v8499_v63 = vpack.c.bf16 %v5532_v50, %v5530_v57  ;;  %v5734_v57 = vld [vmem:[#allocation9 + $0x6a0] sm:$0xff]  ;;  %v5620_v50 = vld [vmem:[#allocation4] sm:$0xfc] }
 0xa0d   : > { %8464 = vmatpush1.bf16.msra.mxu0 %v8463_v1  ;;  %v8501_v1 = vpack.c.bf16 %v5537_v62, %v5535_v61  ;;  %v5737_v61 = vld [vmem:[#allocation9 + $0x6b8] sm:$0xff]  ;;  %v5739_v62 = vld [vmem:[#allocation9 + $0x6c8] sm:$0xff] }
 0xa0e   : > { %8466 = vmatprep.subr.bf16.mxu0 %v8465_v3  ;;  %v5534_v3 = vld [vmem:[#allocation9 + $0x570] sm:$0xff] }
 0xa0f   : > { %v8503_v5 = vpack.c.bf16 %v5536_v4, %v5534_v3  ;;  %v5653_v4 = vrot.slane %v5620_v50, 2 }
 0xa11   : > { %8468 = vmatpush1.bf16.msra.mxu0 %v8467_v10  ;;  %v5625_v10 = vld [vmem:[#allocation9 + $0x5b8] sm:$0xff] }
 0xa12   : > { %8470 = vmatprep.subr.bf16.mxu0 %v8469_v55  ;;  %v5622_v55 = vld [vmem:[#allocation9 + $0x5a0] sm:$0xff]  ;;  %v8505_v17 = vpack.c.bf16 %v5625_v10, %v5623_v7  ;;  %v5741_v10 = vld [vmem:[#allocation9 + $0x6d8] sm:$0xff] }
 0xa13   : > { %v8507_v59 = vpack.c.bf16 %v5624_v31, %v5622_v55  ;;  %v5738_v7 = vld [vmem:[#allocation9 + $0x6c0] sm:$0xff]  ;;  %v5743_v55 = vld [vmem:[#allocation9 + $0x6e8] sm:$0xff] }
 0xa15   : > { %8472 = vmatpush1.bf16.msra.mxu0 %v8471_v49  ;;  %v5541_v49 = vpop.permute.xlu1 %5540 }
 0xa16   : > { %8474 = vmatprep.subr.bf16.mxu0 %v8473_v51  ;;  %v5538_v51 = vld [vmem:[#allocation9 + $0x590] sm:$0xff]  ;;  %v5544_v23 = vsel %vm5206_vm4, %v5541_v49, %v5543_v13  ;;  %v5742_v13 = vld [vmem:[#allocation9 + $0x6e0] sm:$0xff]  ;;  %v5745_v49 = vld [vmem:[#allocation9 + $0x6f8] sm:$0xff] }
 0xa19   : > { %8476 = vmatpush1.bf16.msra.mxu0 %v8475_v18  ;;  %v8509_v18 = vpack.c.bf16 %v5629_v12, %v5627_v11  ;;  %v8541_v11 = vpack.c.bf16 %v5743_v55, %v5741_v10  ;;  %v5740_v12 = vld [vmem:[#allocation9 + $0x6d0] sm:$0xff]  ;;  %v5866_v10 = vld [vmem:[#allocation9 + $0x818] sm:$0xff] }
 0xa1a   : > { %5464 = vmatprep.subr.mxu0 %v5424_v9  ;;  %v5626_v9 = vld [vmem:[#allocation9 + $0x5c0] sm:$0xff] }
 0xa1b   : > { %v8511_v24 = vpack.c.bf16 %v5628_v20, %v5626_v9  ;;  %v5746_v9 = vld [vmem:[#allocation9 + $0x700] sm:$0xff]  ;;  %v5749_v20 = vld [vmem:[#allocation9 + $0x718] sm:$0xff] }
 0xa1d   : > { %5465 = vmatpush1.msra.mxu0 %v5423_v19  ;;  %v5635_v19 = vld [vmem:[#allocation9 + $0x608] sm:$0xff] }
 0xa1e   : > { %7197 = vmatmul.mubr.msk.f32.vlgmr.msra.gmra.mrb[24].mxu0 %vm3491_vm9, %v5433_v29  ;;  %8478 = vmatprep.subr.bf16.mxu0 %v8477_v2  ;;  %v5637_v2 = vld [vmem:[#allocation9 + $0x618] sm:$0xff]  ;;  %v5639_v29 = vld [vmem:[#allocation9 + $0x628] sm:$0xff] }
 0xa1f   : > { %8480 = vmatpush1.bf16.msra.mxu0 %v8479_v27  ;;  %5611 = vmatprep.mubr.f32.mxu0 %v11322_v16  ;;  %v8515_v27 = vpack.c.bf16 %v5632_v42, %v5630_v26  ;;  %v5753_v26 = vld [vmem:[#allocation9 + $0x738] sm:$0xff]  ;;  %v5755_v42 = vld [vmem:[#allocation9 + $0x748] sm:$0xff] }
 0xa20   : > { %8482 = vmatprep.subr.bf16.mxu0 %v8481_v38  ;;  %v8517_v38 = vpack.c.bf16 %v5637_v2, %v5635_v19  ;;  %v8553_v2 = vpack.c.bf16 %v5755_v42, %v5753_v26  ;;  %v5876_v26 = vld [vmem:[#allocation9 + $0x868] sm:$0xff] }
 0xa23   : > { %8484 = vmatpush1.bf16.msra.mxu0 %v8483_v45  ;;  %v8521_v45 = vpack.c.bf16 %v5641_v30, %v5639_v29  ;;  %v8557_v30 = vpack.c.bf16 %v5759_v28, %v5757_v43 }
 0xa24   : > { %8486 = vmatprep.subr.bf16.mxu0 %v8485_v25  ;;  %v5638_v25 = vld [vmem:[#allocation9 + $0x620] sm:$0xff] }
 0xa25   : > { %v8523_v34 = vpack.c.bf16 %v5640_v32, %v5638_v25  ;;  %v5761_v32 = vld [vmem:[#allocation9 + $0x778] sm:$0xff] }
 0xa27   : > { %8488 = vmatpush1.bf16.msra.mxu0 %v8487_v36  ;;  %v8525_v36 = vpack.c.bf16 %v5645_v33, %v5643_v39  ;;  %v5848_v39 = vld [vmem:[#allocation9 + $0x788] sm:$0xff]  ;;  %v5850_v33 = vld [vmem:[#allocation9 + $0x798] sm:$0xff] }
 0xa28   : > { %8490 = vmatprep.subr.bf16.mxu0 %v8489_v47  ;;  %v5642_v47 = vld [vmem:[#allocation9 + $0x640] sm:$0xff] }
 0xa29   : > { %v8527_v41 = vpack.c.bf16 %v5644_v58, %v5642_v47  ;;  %v5852_v47 = vld [vmem:[#allocation9 + $0x7a8] sm:$0xff]  ;;  %v5854_v58 = vld [vmem:[#allocation9 + $0x7b8] sm:$0xff] }
 0xa2b   : > { %8492 = vmatpush1.bf16.msra.mxu0 %v8491_v40  ;;  %v8529_v40 = vpack.c.bf16 %v5649_v48, %v5647_v14  ;;  %v5769_v14 = vpop.permute.xlu0 %5768  ;;  %v5767_v48 = vpop.permute.xlu1 %5766 }
 0xa2c   : > { %8494 = vmatprep.subr.bf16.mxu0 %v8493_v52  ;;  %v5646_v52 = vld [vmem:[#allocation9 + $0x660] sm:$0xff] }
 0xa2d   : > { %v8531_v37 = vpack.c.bf16 %v5648_v53, %v5646_v52  ;;  %v8565_v53 = vpack.c.bf16 %v5854_v58, %v5852_v47  ;;  %v6135_v47 = vld [vmem:[#allocation12 + $0x20] sm:$0xff]  ;;  %v6136_v58 = vld [vmem:[#allocation12 + $0x28] sm:$0xff] }
 0xa2f   : > { %8496 = vmatpush1.bf16.msra.mxu0 %v8495_v35  ;;  %v5735_v35 = vld [vmem:[#allocation9 + $0x6a8] sm:$0xff]  ;;  %v5880_v42 = vpop.permute.xlu0 %5879 }
 0xa30   : > { %8498 = vmatprep.subr.bf16.mxu0 %v8497_v0  ;;  %v5732_v0 = vld [vmem:[#allocation9 + $0x690] sm:$0xff] }
 0xa31   : > { %v8535_v3 = vpack.c.bf16 %v5734_v57, %v5732_v0  ;;  %v5858_v0 = vld [vmem:[#allocation9 + $0x7d8] sm:$0xff] }
 0xa33   : > { %8500 = vmatpush1.bf16.msra.mxu0 %v8499_v63  ;;  %v5650_v63 = vld [vmem:[#allocation9 + $0x680] sm:$0xff] }
 0xa34   : > { %8502 = vmatprep.subr.bf16.mxu0 %v8501_v1  ;;  %v8533_v1 = vpack.c.bf16 %v5735_v35, %v5733_v60  ;;  %v5770_v60 = vsel %vm3693_vm14, %v5767_v48, %v5769_v14  ;;  %v5856_v35 = vld [vmem:[#allocation9 + $0x7c8] sm:$0xff]  ;;  %v8596_v14 = vpack.c.bf16 %v6136_v58, %v6135_v47  ;;  %v6137_v48 = vld [vmem:[#allocation12 + $0x30] sm:$0xff] }
 0xa35   : > { %v8569_v50 = vpack.c.bf16 %v5858_v0, %v5856_v35  ;;  %v6143_v0 = vld [vmem:[#allocation12 + $0x60] sm:$0xff]  ;;  %v6247_v58 = vld [vmem:[#allocation12 + $0x150] sm:$0xff] }
 0xa37   : > { %8504 = vmatpush1.bf16.msra.mxu0 %v8503_v5  ;;  %v8537_v5 = vpack.c.bf16 %v5739_v62, %v5737_v61  ;;  %v5855_v61 = vld [vmem:[#allocation9 + $0x7c0] sm:$0xff]  ;;  %v5857_v62 = vld [vmem:[#allocation9 + $0x7d0] sm:$0xff] }
 0xa38   : > { %5575 = vmatprep.subr.mxu0 %v5539_v6  ;;  %v5736_v6 = vld [vmem:[#allocation9 + $0x6b0] sm:$0xff] }
 0xa39   : > { %v8539_v31 = vpack.c.bf16 %v5738_v7, %v5736_v6  ;;  %v5861_v6 = vld [vmem:[#allocation9 + $0x7f0] sm:$0xff]  ;;  %v5864_v7 = vld [vmem:[#allocation9 + $0x808] sm:$0xff] }
 0xa3b   : > { %5576 = vmatpush1.msra.mxu0 %v5538_v51  ;;  %v5747_v51 = vld [vmem:[#allocation9 + $0x708] sm:$0xff] }
 0xa3c   : > { %7198 = vmatmul.mubr.msk.f32.vlgmr.msra.gmra.mrb[24].mxu0 %vm3491_vm9, %v5544_v23  ;;  %8506 = vmatprep.subr.bf16.mxu0 %v8505_v17  ;;  %v8543_v17 = vpack.c.bf16 %v5742_v13, %v5740_v12  ;;  %v5751_v23 = vld [vmem:[#allocation9 + $0x728] sm:$0xff]  ;;  %v5865_v12 = vld [vmem:[#allocation9 + $0x810] sm:$0xff] }
 0xa3d   : > { %8508 = vmatpush1.bf16.msra.mxu0 %v8507_v59  ;;  %5720 = vmatprep.mubr.f32.mxu0 %v11322_v16  ;;  %v8545_v59 = vpack.c.bf16 %v5747_v51, %v5745_v49  ;;  %v8549_v22 = vpack.c.bf16 %v5751_v23, %v5749_v20  ;;  %v5868_v13 = vld [vmem:[#allocation9 + $0x828] sm:$0xff]  ;;  %v5870_v49 = vld [vmem:[#allocation9 + $0x838] sm:$0xff] }
 0xa3e   : > { %8510 = vmatprep.subr.bf16.mxu0 %v8509_v18  ;;  %v5744_v18 = vld [vmem:[#allocation9 + $0x6f0] sm:$0xff]  ;;  %v5874_v20 = vld [vmem:[#allocation9 + $0x858] sm:$0xff] }
 0xa3f   : > { %v8547_v21 = vpack.c.bf16 %v5746_v9, %v5744_v18  ;;  %v5869_v18 = vld [vmem:[#allocation9 + $0x830] sm:$0xff]  ;;  %v5872_v9 = vld [vmem:[#allocation9 + $0x848] sm:$0xff] }
 0xa41   : > { %8512 = vmatpush1.bf16.msra.mxu0 %v8511_v24  ;;  %v5748_v24 = vld [vmem:[#allocation9 + $0x710] sm:$0xff] }
 0xa42   : > { %8514 = vmatprep.subr.bf16.mxu0 %v8513_v15  ;;  %v5750_v15 = vld [vmem:[#allocation9 + $0x720] sm:$0xff] }
 0xa43   : > { %v8551_v19 = vpack.c.bf16 %v5750_v15, %v5748_v24  ;;  %v5873_v24 = vld [vmem:[#allocation9 + $0x850] sm:$0xff] }
 0xa45   : > { %8516 = vmatpush1.bf16.msra.mxu0 %v8515_v27  ;;  %v5752_v27 = vld [vmem:[#allocation9 + $0x730] sm:$0xff] }
 0xa46   : > { %8518 = vmatprep.subr.bf16.mxu0 %v8517_v38  ;;  %v5754_v38 = vld [vmem:[#allocation9 + $0x740] sm:$0xff] }
 0xa47   : > { %v8555_v29 = vpack.c.bf16 %v5754_v38, %v5752_v27  ;;  %v5957_v38 = vld [vmem:[%s11636_s6] sm:$0x3] }
 0xa48   : > { %v5966_v43 = vrot.slane %v5957_v38, %v9964_v56  ;;  %v5962_v28 = vrot.slane %v5957_v38, %v9961_v54  ;;  %v7205_v54 = vld [vmem:[%s11641_s11 + $0x4] sm:$0x7] }
 0xa49   : > { %8520 = vmatpush1.bf16.msra.mxu0 %v8519_v44  ;;  %v5756_v44 = vld [vmem:[#allocation9 + $0x750] sm:$0xff] }
 0xa4a   : > { %8522 = vmatprep.subr.bf16.mxu0 %v8521_v45  ;;  %v5758_v45 = vld [vmem:[#allocation9 + $0x760] sm:$0xff] }
 0xa4b   : > { %v8559_v25 = vpack.c.bf16 %v5758_v45, %v5756_v44 }
 0xa4d   : > { %8524 = vmatpush1.bf16.msra.mxu0 %v8523_v34  ;;  %v5847_v34 = vld [vmem:[#allocation9 + $0x780] sm:$0xff] }
 0xa4e   : > { %8526 = vmatprep.subr.bf16.mxu0 %v8525_v36  ;;  %v5849_v36 = vld [vmem:[#allocation9 + $0x790] sm:$0xff] }
 0xa4f   : > { %v8563_v52 = vpack.c.bf16 %v5849_v36, %v5847_v34  ;;  %v6134_v34 = vld [vmem:[#allocation12 + $0x18] sm:$0xff] }
 0xa51   : > { %8528 = vmatpush1.bf16.msra.mxu0 %v8527_v41  ;;  %v5760_v41 = vld [vmem:[#allocation9 + $0x770] sm:$0xff] }
 0xa52   : > { %8530 = vmatprep.subr.bf16.mxu0 %v8529_v40  ;;  %v8561_v40 = vpack.c.bf16 %v5850_v33, %v5848_v39  ;;  %v6132_v39 = vld [vmem:[#allocation12 + $0x8] sm:$0xff]  ;;  %v6133_v33 = vld [vmem:[#allocation12 + $0x10] sm:$0xff] }
 0xa53   : > { %v8593_v36 = vpack.c.bf16 %v6134_v34, %v6133_v33  ;;  %v6245_v34 = vld [vmem:[#allocation12 + $0x140] sm:$0xff] }
 0xa55   : > { %8532 = vmatpush1.bf16.msra.mxu0 %v8531_v37  ;;  %v5851_v37 = vld [vmem:[#allocation9 + $0x7a0] sm:$0xff] }
 0xa56   : > { %5684 = vmatprep.subr.mxu0 %v5651_v8  ;;  %v5853_v8 = vld [vmem:[#allocation9 + $0x7b0] sm:$0xff] }
 0xa57   : > { %v8567_v57 = vpack.c.bf16 %v5853_v8, %v5851_v37  ;;  %v6141_v8 = vld [vmem:[#allocation12 + $0x50] sm:$0xff] }
 0xa59   : > { %5685 = vmatpush1.msra.mxu0 %v5650_v63  ;;  %v5860_v63 = vld [vmem:[#allocation9 + $0x7e8] sm:$0xff] }
 0xa5a   : > { %7199 = vmatmul.mubr.msk.f32.vlgmr.msra.gmra.mrb[24].mxu0 %vm3491_vm9, %v5653_v4  ;;  %8534 = vmatprep.subr.bf16.mxu0 %v8533_v1  ;;  %v5862_v1 = vld [vmem:[#allocation9 + $0x7f8] sm:$0xff] }
 0xa5b   : > { %8536 = vmatpush1.bf16.msra.mxu0 %v8535_v3  ;;  %5837 = vmatprep.mubr.f32.mxu0 %v11322_v16  ;;  %v8571_v3 = vpack.c.bf16 %v5857_v62, %v5855_v61  ;;  %v8573_v4 = vpack.c.bf16 %v5862_v1, %v5860_v63  ;;  %v6145_v61 = vld [vmem:[#allocation12 + $0x70] sm:$0xff]  ;;  %v6146_v62 = vld [vmem:[#allocation12 + $0x78] sm:$0xff]  ;;  %v6147_v1 = vld [vmem:[#allocation12 + $0x80] sm:$0xff] }
 0xa5c   : > { %8538 = vmatprep.subr.bf16.mxu0 %v8537_v5  ;;  %v5859_v5 = vld [vmem:[#allocation9 + $0x7e0] sm:$0xff]  ;;  %v8611_v63 = vpack.c.bf16 %v6146_v62, %v6145_v61  ;;  %v6257_v62 = vld [vmem:[#allocation12 + $0x1a0] sm:$0xff] }
 0xa5d   : > { %v8575_v55 = vpack.c.bf16 %v5861_v6, %v5859_v5  ;;  %v6149_v5 = vld [vmem:[#allocation12 + $0x90] sm:$0xff]  ;;  %v6150_v6 = vld [vmem:[#allocation12 + $0x98] sm:$0xff] }
 0xa5f   : > { %8540 = vmatpush1.bf16.msra.mxu0 %v8539_v31  ;;  %v8577_v31 = vpack.c.bf16 %v5866_v10, %v5864_v7  ;;  %v8617_v7 = vpack.c.bf16 %v6150_v6, %v6149_v5  ;;  %v6151_v10 = vld [vmem:[#allocation12 + $0xa0] sm:$0xff] }
 0xa60   : > { %8542 = vmatprep.subr.bf16.mxu0 %v8541_v11  ;;  %v5863_v11 = vld [vmem:[#allocation9 + $0x800] sm:$0xff]  ;;  %v6261_v6 = vld [vmem:[#allocation12 + $0x1c0] sm:$0xff] }
 0xa61   : > { %v8579_v51 = vpack.c.bf16 %v5865_v12, %v5863_v11  ;;  %v6153_v11 = vld [vmem:[#allocation12 + $0xb0] sm:$0xff]  ;;  %v6154_v12 = vld [vmem:[#allocation12 + $0xb8] sm:$0xff] }
 0xa63   : > { %8544 = vmatpush1.bf16.msra.mxu0 %v8543_v17  ;;  %v8581_v17 = vpack.c.bf16 %v5870_v49, %v5868_v13  ;;  %v8623_v13 = vpack.c.bf16 %v6154_v12, %v6153_v11  ;;  %v6155_v49 = vld [vmem:[#allocation12 + $0xc0] sm:$0xff] }
 0xa64   : > { %8546 = vmatprep.subr.bf16.mxu0 %v8545_v59  ;;  %v5867_v59 = vld [vmem:[#allocation9 + $0x820] sm:$0xff]  ;;  %v6341_v12 = vld [vmem:[%s11643_s13] sm:$0xff] }
 0xa65   : > { %v8583_v23 = vpack.c.bf16 %v5869_v18, %v5867_v59  ;;  %v6157_v59 = vld [vmem:[#allocation12 + $0xd0] sm:$0xff]  ;;  %v6158_v18 = vld [vmem:[#allocation12 + $0xd8] sm:$0xff] }
 0xa67   : > { %8548 = vmatpush1.bf16.msra.mxu0 %v8547_v21  ;;  %v8585_v21 = vpack.c.bf16 %v5874_v20, %v5872_v9  ;;  %v8629_v9 = vpack.c.bf16 %v6158_v18, %v6157_v59  ;;  %v6159_v20 = vld [vmem:[#allocation12 + $0xe0] sm:$0xff] }
 0xa68   : > { %8550 = vmatprep.subr.bf16.mxu0 %v8549_v22  ;;  %v5871_v22 = vld [vmem:[#allocation9 + $0x840] sm:$0xff]  ;;  %v6345_v18 = vld [vmem:[%s11643_s13 + $0x20] sm:$0xff] }
 0xa69   : > { %v8587_v15 = vpack.c.bf16 %v5873_v24, %v5871_v22 }
 0xa6b   : > { %8552 = vmatpush1.bf16.msra.mxu0 %v8551_v19  ;;  %v5878_v19 = vpop.permute.xlu1 %5877 }
 0xa6c   : > { %8554 = vmatprep.subr.bf16.mxu0 %v8553_v2  ;;  %v5875_v2 = vld [vmem:[#allocation9 + $0x860] sm:$0xff]  ;;  %v5881_v27 = vsel %vm5206_vm4, %v5878_v19, %v5880_v42 }
 0xa6f   : > { %8556 = vmatpush1.bf16.msra.mxu0 %v8555_v29 }
 0xa70   : > { %8558 = vmatprep.subr.bf16.mxu0 %v8557_v30 }
 0xa73   : > { %8560 = vmatpush1.bf16.msra.mxu0 %v8559_v25  ;;  %v5971_v25 = vld [vmem:[%s11641_s11] sm:$0x7] }
 0xa74   : > { %5801 = vmatprep.subr.mxu0 %v5761_v32  ;;  %v6131_v32 = vld [vmem:[#allocation12] sm:$0xff] }
 0xa75   : > { %v8590_v56 = vpack.c.bf16 %v6132_v39, %v6131_v32  ;;  %v6242_v32 = vld [vmem:[#allocation12 + $0x128] sm:$0xff] }
 0xa77   : > { %5802 = vmatpush1.msra.mxu0 %v5760_v41  ;;  %v6138_v41 = vld [vmem:[#allocation12 + $0x38] sm:$0xff] }
 0xa78   : > { %7200 = vmatmul.mubr.msk.f32.vlgmr.msra.gmra.mrb[24].mxu0 %vm3491_vm9, %v5770_v60  ;;  %8562 = vmatprep.subr.bf16.mxu0 %v8561_v40  ;;  %v8599_v40 = vpack.c.bf16 %v6138_v41, %v6137_v48  ;;  %v6142_v60 = vld [vmem:[#allocation12 + $0x58] sm:$0xff]  ;;  %v6249_v41 = vld [vmem:[#allocation12 + $0x160] sm:$0xff] }
 0xa79   : > { %8564 = vmatpush1.bf16.msra.mxu0 %v8563_v52  ;;  %5948 = vmatprep.mubr.f32.mxu0 %v11322_v16  ;;  %v6139_v52 = vld [vmem:[#allocation12 + $0x40] sm:$0xff]  ;;  %v8605_v35 = vpack.c.bf16 %v6142_v60, %v6141_v8 }
 0xa7a   : > { %8566 = vmatprep.subr.bf16.mxu0 %v8565_v53  ;;  %v6140_v53 = vld [vmem:[#allocation12 + $0x48] sm:$0xff]  ;;  %v6253_v60 = vld [vmem:[#allocation12 + $0x180] sm:$0xff] }
 0xa7b   : > { %v8602_v37 = vpack.c.bf16 %v6140_v53, %v6139_v52  ;;  %v6251_v53 = vld [vmem:[#allocation12 + $0x170] sm:$0xff] }
 0xa7d   : > { %8568 = vmatpush1.bf16.msra.mxu0 %v8567_v57  ;;  %v6144_v57 = vld [vmem:[#allocation12 + $0x68] sm:$0xff] }
 0xa7e   : > { %8570 = vmatprep.subr.bf16.mxu0 %v8569_v50  ;;  %v8608_v50 = vpack.c.bf16 %v6144_v57, %v6143_v0  ;;  %v6255_v57 = vld [vmem:[#allocation12 + $0x190] sm:$0xff] }
 0xa81   : > { %8572 = vmatpush1.bf16.msra.mxu0 %v8571_v3  ;;  %v6148_v3 = vld [vmem:[#allocation12 + $0x88] sm:$0xff] }
 0xa82   : > { %8574 = vmatprep.subr.bf16.mxu0 %v8573_v4  ;;  %v8614_v4 = vpack.c.bf16 %v6148_v3, %v6147_v1  ;;  %v6259_v3 = vld [vmem:[#allocation12 + $0x1b0] sm:$0xff] }
 0xa85   : > { %8576 = vmatpush1.bf16.msra.mxu0 %v8575_v55  ;;  %v6152_v55 = vld [vmem:[#allocation12 + $0xa8] sm:$0xff] }
 0xa86   : > { %8578 = vmatprep.subr.bf16.mxu0 %v8577_v31  ;;  %v8620_v31 = vpack.c.bf16 %v6152_v55, %v6151_v10  ;;  %v6263_v55 = vld [vmem:[#allocation12 + $0x1d0] sm:$0xff] }
 0xa89   : > { %8580 = vmatpush1.bf16.msra.mxu0 %v8579_v51  ;;  %v6156_v51 = vld [vmem:[#allocation12 + $0xc8] sm:$0xff] }
 0xa8a   : > { %8582 = vmatprep.subr.bf16.mxu0 %v8581_v17  ;;  %v8626_v17 = vpack.c.bf16 %v6156_v51, %v6155_v49  ;;  %v6343_v49 = vld [vmem:[%s11643_s13 + $0x10] sm:$0xff] }
 0xa8d   : > { %8584 = vmatpush1.bf16.msra.mxu0 %v8583_v23  ;;  %v6160_v23 = vld [vmem:[#allocation12 + $0xe8] sm:$0xff] }
 0xa8e   : > { %8586 = vmatprep.subr.bf16.mxu0 %v8585_v21  ;;  %v8632_v21 = vpack.c.bf16 %v6160_v23, %v6159_v20  ;;  %v6347_v23 = vld [vmem:[%s11643_s13 + $0x30] sm:$0xff] }
 0xa91   : > { %8588 = vmatpush1.bf16.msra.mxu0 %v8587_v15  ;;  %v6235_v15 = vld [vmem:[#allocation12 + $0xf0] sm:$0xff] }
 0xa92   : > { %5912 = vmatprep.subr.mxu0 %v5876_v26  ;;  %v6236_v26 = vld [vmem:[#allocation12 + $0xf8] sm:$0xff] }
 0xa93   : > { %v8635_v38 = vpack.c.bf16 %v6236_v26, %v6235_v15  ;;  %v6350_v15 = vld [vmem:[%s11643_s13 + $0x48] sm:$0xff] }
 0xa95   : > { %5913 = vmatpush1.msra.mxu0 %v5875_v2 }
 0xa96   : > { %7201 = vmatmul.mubr.msk.f32.vlgmr.msra.gmra.mrb[24].mxu0 %vm3491_vm9, %v5881_v27 }
 0xb69   : > { %v5950_v29 = vpop.f32.mrb[24].mxu0 }
 0xb6a   : > { %v5952_v30 = vpop.f32.mrb[25].mxu0  ;;  %v5969_v45 = vadd.f32 %v5962_v28, %v5950_v29  ;;  %v6238_v28 = vld [vmem:[#allocation12 + $0x108] sm:$0xff] }
 0xb6b   : > { %v5970_v44 = vadd.f32 %v5966_v43, %v5952_v30  ;;  %v6237_v43 = vld [vmem:[#allocation12 + $0x100] sm:$0xff]  ;;  %v6239_v30 = vld [vmem:[#allocation12 + $0x110] sm:$0xff] }
 0xb6c   : > { %v8638_v29 = vpack.c.bf16 %v6238_v28, %v6237_v43  ;;  %v6355_v28 = vld [vmem:[%s11643_s13 + $0x70] sm:$0xff] }
 0xb6d   : > { %7202 = vmatprep.subr.msk.mxu1 %vm4206_vm13, %v5970_v44 }
 0xb6e   : > { %7203 = vmatpush1.msk.msra.mxu1 %vm4206_vm13, %v5969_v45 }
 0xb6f   : > { %7204 = vmatmul.mubr.msk.f32.vlgmr.msra.gmra.mrb[24].mxu1 %vm5972_vm5, %v5971_v25  ;;  %7206 = vmatprep.subr.msk.mxu1 %vm4206_vm13, %v5970_v44  ;;  %v6240_v44 = vld [vmem:[#allocation12 + $0x118] sm:$0xff]  ;;  %v6241_v25 = vld [vmem:[#allocation12 + $0x120] sm:$0xff] }
 0xb70   : > { %7207 = vmatpush1.msk.msra.mxu1 %vm4206_vm13, %v5969_v45  ;;  %6122 = vmatprep.mubr.f32.mxu1 %v11322_v16  ;;  %v8641_v45 = vpack.c.bf16 %v6240_v44, %v6239_v30  ;;  %v8644_v39 = vpack.c.bf16 %v6242_v32, %v6241_v25 }
 0xb71   : > { %8589 = vmatprep.subr.bf16.mxu1 %v9204_v46 }
 0xb73   : > { %7208 = vmatmul.mubr.msk.f32.vlgmr.msra.gmra.mrb[26].mxu1 %vm5972_vm5, %v7205_v54  ;;  %v6243_v54 = vld [vmem:[#allocation12 + $0x130] sm:$0xff] }
 0xb74   : > { %8591 = vmatpush1.bf16.msra.mxu1 %v8590_v56  ;;  %v6244_v56 = vld [vmem:[#allocation12 + $0x138] sm:$0xff] }
 0xb75   : > { %8592 = vmatprep.subr.bf16.mxu1 %v9204_v46  ;;  %v8647_v33 = vpack.c.bf16 %v6244_v56, %v6243_v54  ;;  %v7213_v54 = vld [vmem:[%s11643_s13 + $0x80] sm:$0xff] }
 0xb78   : > { %8594 = vmatpush1.bf16.msra.mxu1 %v8593_v36  ;;  %v6246_v36 = vld [vmem:[#allocation12 + $0x148] sm:$0xff] }
 0xb79   : > { %8595 = vmatprep.subr.bf16.mxu1 %v9204_v46  ;;  %v8650_v47 = vpack.c.bf16 %v6246_v36, %v6245_v34  ;;  %v7215_v34 = vld [vmem:[%s11643_s13 + $0x90] sm:$0xff] }
 0xb7c   : > { %8597 = vmatpush1.bf16.msra.mxu1 %v8596_v14  ;;  %v6248_v14 = vld [vmem:[#allocation12 + $0x158] sm:$0xff] }
 0xb7d   : > { %8598 = vmatprep.subr.bf16.mxu1 %v9204_v46  ;;  %v8653_v48 = vpack.c.bf16 %v6248_v14, %v6247_v58  ;;  %v7216_v58 = vld [vmem:[%s11643_s13 + $0x98] sm:$0xff]  ;;  %v7217_v14 = vld [vmem:[%s11643_s13 + $0xa0] sm:$0xff] }
 0xb80   : > { %8600 = vmatpush1.bf16.msra.mxu1 %v8599_v40  ;;  %v6250_v40 = vld [vmem:[#allocation12 + $0x168] sm:$0xff] }
 0xb81   : > { %8601 = vmatprep.subr.bf16.mxu1 %v9204_v46  ;;  %v8656_v52 = vpack.c.bf16 %v6250_v40, %v6249_v41  ;;  %v7218_v41 = vld [vmem:[%s11643_s13 + $0xa8] sm:$0xff]  ;;  %v7219_v40 = vld [vmem:[%s11643_s13 + $0xb0] sm:$0xff] }
 0xb84   : > { %8603 = vmatpush1.bf16.msra.mxu1 %v8602_v37  ;;  %v6252_v37 = vld [vmem:[#allocation12 + $0x178] sm:$0xff] }
 0xb85   : > { %8604 = vmatprep.subr.bf16.mxu1 %v9204_v46  ;;  %v8659_v8 = vpack.c.bf16 %v6252_v37, %v6251_v53  ;;  %v7220_v53 = vld [vmem:[%s11643_s13 + $0xb8] sm:$0xff]  ;;  %v7221_v37 = vld [vmem:[%s11643_s13 + $0xc0] sm:$0xff] }
 0xb88   : > { %8606 = vmatpush1.bf16.msra.mxu1 %v8605_v35  ;;  %v6254_v35 = vld [vmem:[#allocation12 + $0x188] sm:$0xff] }
 0xb89   : > { %8607 = vmatprep.subr.bf16.mxu1 %v9204_v46  ;;  %v8662_v0 = vpack.c.bf16 %v6254_v35, %v6253_v60  ;;  %v7222_v60 = vld [vmem:[%s11643_s13 + $0xc8] sm:$0xff]  ;;  %v7223_v35 = vld [vmem:[%s11643_s13 + $0xd0] sm:$0xff] }
 0xb8c   : > { %8609 = vmatpush1.bf16.msra.mxu1 %v8608_v50  ;;  %v6256_v50 = vld [vmem:[#allocation12 + $0x198] sm:$0xff] }
 0xb8d   : > { %8610 = vmatprep.subr.bf16.mxu1 %v9204_v46  ;;  %v8665_v61 = vpack.c.bf16 %v6256_v50, %v6255_v57  ;;  %v7224_v57 = vld [vmem:[%s11643_s13 + $0xd8] sm:$0xff]  ;;  %v7225_v50 = vld [vmem:[%s11643_s13 + $0xe0] sm:$0xff] }
 0xb90   : > { %8612 = vmatpush1.bf16.msra.mxu1 %v8611_v63  ;;  %v6258_v63 = vld [vmem:[#allocation12 + $0x1a8] sm:$0xff] }
 0xb91   : > { %8613 = vmatprep.subr.bf16.mxu1 %v9204_v46  ;;  %v8668_v1 = vpack.c.bf16 %v6258_v63, %v6257_v62  ;;  %v7228_v62 = vld [vmem:[%s11643_s13 + $0xf0] sm:$0xff]  ;;  %v7229_v63 = vld [vmem:[%s11643_s13 + $0xf8] sm:$0xff] }
 0xb94   : > { %8615 = vmatpush1.bf16.msra.mxu1 %v8614_v4  ;;  %v6260_v4 = vld [vmem:[#allocation12 + $0x1b8] sm:$0xff] }
 0xb95   : > { %8616 = vmatprep.subr.bf16.mxu1 %v9204_v46  ;;  %v8671_v5 = vpack.c.bf16 %v6260_v4, %v6259_v3  ;;  %v8722_v3 = vpack.c.bf16 %v7229_v63, %v7228_v62  ;;  %v7230_v4 = vld [vmem:[%s11643_s13 + $0x100] sm:$0xff] }
 0xb98   : > { %8618 = vmatpush1.bf16.msra.mxu1 %v8617_v7  ;;  %v6262_v7 = vld [vmem:[#allocation12 + $0x1c8] sm:$0xff] }
 0xb99   : > { %8619 = vmatprep.subr.bf16.mxu1 %v9204_v46  ;;  %v8674_v10 = vpack.c.bf16 %v6262_v7, %v6261_v6 }
 0xb9c   : > { %8621 = vmatpush1.bf16.msra.mxu1 %v8620_v31  ;;  %v6264_v31 = vld [vmem:[#allocation12 + $0x1d8] sm:$0xff] }
 0xb9d   : > { %8622 = vmatprep.subr.bf16.mxu1 %v9204_v46  ;;  %v8677_v11 = vpack.c.bf16 %v6264_v31, %v6263_v55  ;;  %v7233_v55 = vld [vmem:[%s11643_s13 + $0x118] sm:$0xff] }
 0xba0   : > { %8624 = vmatpush1.bf16.msra.mxu1 %v8623_v13  ;;  %v6342_v13 = vld [vmem:[%s11643_s13 + $0x8] sm:$0xff] }
 0xba1   : > { %8625 = vmatprep.subr.bf16.mxu1 %v9204_v46  ;;  %v8680_v51 = vpack.c.bf16 %v6342_v13, %v6341_v12  ;;  %v7235_v12 = vld [vmem:[%s11643_s13 + $0x128] sm:$0xff] }
 0xba4   : > { %8627 = vmatpush1.bf16.msra.mxu1 %v8626_v17  ;;  %v6344_v17 = vld [vmem:[%s11643_s13 + $0x18] sm:$0xff] }
 0xba5   : > { %8628 = vmatprep.subr.bf16.mxu1 %v9204_v46  ;;  %v8683_v59 = vpack.c.bf16 %v6344_v17, %v6343_v49  ;;  %v7236_v49 = vld [vmem:[%s11643_s13 + $0x130] sm:$0xff] }
 0xba8   : > { %8630 = vmatpush1.bf16.msra.mxu1 %v8629_v9  ;;  %v6346_v9 = vld [vmem:[%s11643_s13 + $0x28] sm:$0xff] }
 0xba9   : > { %8631 = vmatprep.subr.bf16.mxu1 %v9204_v46  ;;  %v8686_v20 = vpack.c.bf16 %v6346_v9, %v6345_v18  ;;  %v7239_v18 = vld [vmem:[%s11643_s13 + $0x148] sm:$0xff] }
 0xbac   : > { %8633 = vmatpush1.bf16.msra.mxu1 %v8632_v21  ;;  %v6348_v21 = vld [vmem:[%s11643_s13 + $0x38] sm:$0xff] }
 0xbad   : > { %8634 = vmatprep.subr.bf16.mxu1 %v9204_v46 }
 0xc42   : > { %v6048_v22 = vpop.f32.mrb[24].mxu1 }
 0xc43   : > { %v6050_v24 = vpop.f32.mrb[25].mxu1 }
 0xc46   : > { %v6124_v42 = vpop.f32.mrb[26].mxu1 }
 0xc47   : > { %v11392_v19 = vmax.f32 %v6048_v22, %v6124_v42  ;;  %v6126_v2 = vpop.f32.mrb[27].mxu1  ;;  %v8689_v22 = vpack.c.bf16 %v6348_v21, %v6347_v23  ;;  %v6351_v42 = vld [vmem:[%s11643_s13 + $0x50] sm:$0xff]  ;;  %v7241_v23 = vld [vmem:[%s11643_s13 + $0x158] sm:$0xff] }
 0xc48   : > { %v6130_v27 = vmax.f32 %v6050_v24, %v6126_v2  ;;  %v6349_v24 = vld [vmem:[%s11643_s13 + $0x40] sm:$0xff] }
 0xc49   : > { %v8692_v26 = vpack.c.bf16 %v6350_v15, %v6349_v24  ;;  %v6353_v2 = vld [vmem:[%s11643_s13 + $0x60] sm:$0xff] }
 0xc4a   : > { %7209 = vmatprep.mubr.msk.f32.mxu1 %vm4766_vm0, %v6130_v27  ;;  %v6339_v15 = vld [vmem:[%s11687_s25] sm:$0x1] }
 0xc4b   : > { %6229 = vmatmul.mubr.f32.vlgmr.msra.gmra.mrb[28].mxu1 %v11392_v19 }
 0xc4c   : > { %8636 = vmatpush1.bf16.msra.mxu1 %v8635_v38  ;;  %7210 = vmatprep.mubr.msk.f32.mxu1 %vm4766_vm0, %v6130_v27  ;;  %v6354_v38 = vld [vmem:[%s11643_s13 + $0x68] sm:$0xff] }
 0xc4d   : > { %8637 = vmatprep.subr.bf16.mxu1 %v9204_v46  ;;  %v8698_v43 = vpack.c.bf16 %v6354_v38, %v6353_v2 }
 0xc50   : > { %8639 = vmatpush1.bf16.msra.mxu1 %v8638_v29 }
 0xc51   : > { %8640 = vmatprep.subr.bf16.mxu1 %v9204_v46 }
 0xc54   : > { %8642 = vmatpush1.bf16.msra.mxu1 %v8641_v45 }
 0xc55   : > { %8643 = vmatprep.subr.bf16.mxu1 %v9204_v46 }
 0xc58   : > { %8645 = vmatpush1.bf16.msra.mxu1 %v8644_v39  ;;  %v7212_v39 = vld [vmem:[%s11643_s13 + $0x78] sm:$0xff] }
 0xc59   : > { %8646 = vmatprep.subr.bf16.mxu1 %v9204_v46  ;;  %v8701_v56 = vpack.c.bf16 %v7213_v54, %v7212_v39 }
 0xc5c   : > { %8648 = vmatpush1.bf16.msra.mxu1 %v8647_v33  ;;  %v7214_v33 = vld [vmem:[%s11643_s13 + $0x88] sm:$0xff] }
 0xc5d   : > { %8649 = vmatprep.subr.bf16.mxu1 %v9204_v46 }
 0xc60   : > { %8651 = vmatpush1.bf16.msra.mxu1 %v8650_v47  ;;  %v8704_v47 = vpack.c.bf16 %v7215_v34, %v7214_v33 }
 0xc61   : > { %8652 = vmatprep.subr.bf16.mxu1 %v9204_v46 }
 0xc64   : > { %8654 = vmatpush1.bf16.msra.mxu1 %v8653_v48  ;;  %v8707_v48 = vpack.c.bf16 %v7217_v14, %v7216_v58 }
 0xc65   : > { %8655 = vmatprep.subr.bf16.mxu1 %v9204_v46 }
 0xc68   : > { %8657 = vmatpush1.bf16.msra.mxu1 %v8656_v52  ;;  %v8710_v52 = vpack.c.bf16 %v7219_v40, %v7218_v41 }
 0xc69   : > { %8658 = vmatprep.subr.bf16.mxu1 %v9204_v46 }
 0xc6c   : > { %8660 = vmatpush1.bf16.msra.mxu1 %v8659_v8  ;;  %v8713_v8 = vpack.c.bf16 %v7221_v37, %v7220_v53 }
 0xc6d   : > { %8661 = vmatprep.subr.bf16.mxu1 %v9204_v46 }
 0xc70   : > { %8663 = vmatpush1.bf16.msra.mxu1 %v8662_v0  ;;  %v8716_v0 = vpack.c.bf16 %v7223_v35, %v7222_v60 }
 0xc71   : > { %8664 = vmatprep.subr.bf16.mxu1 %v9204_v46 }
 0xc74   : > { %8666 = vmatpush1.bf16.msra.mxu1 %v8665_v61  ;;  %v8719_v61 = vpack.c.bf16 %v7225_v50, %v7224_v57 }
 0xc75   : > { %8667 = vmatprep.subr.bf16.mxu1 %v9204_v46 }
 0xc78   : > { %8669 = vmatpush1.bf16.msra.mxu1 %v8668_v1  ;;  %v7226_v1 = vld [vmem:[%s11643_s13 + $0xe8] sm:$0xff] }
 0xc79   : > { %8670 = vmatprep.subr.bf16.mxu1 %v9204_v46 }
 0xc7c   : > { %8672 = vmatpush1.bf16.msra.mxu1 %v8671_v5  ;;  %v7231_v5 = vld [vmem:[%s11643_s13 + $0x108] sm:$0xff] }
 0xc7d   : > { %8673 = vmatprep.subr.bf16.mxu1 %v9204_v46  ;;  %v8725_v7 = vpack.c.bf16 %v7231_v5, %v7230_v4 }
 0xc80   : > { %8675 = vmatpush1.bf16.msra.mxu1 %v8674_v10  ;;  %v7232_v10 = vld [vmem:[%s11643_s13 + $0x110] sm:$0xff] }
 0xc81   : > { %8676 = vmatprep.subr.bf16.mxu1 %v9204_v46  ;;  %v8728_v31 = vpack.c.bf16 %v7233_v55, %v7232_v10 }
 0xc84   : > { %8678 = vmatpush1.bf16.msra.mxu1 %v8677_v11  ;;  %v7234_v11 = vld [vmem:[%s11643_s13 + $0x120] sm:$0xff] }
 0xc85   : > { %8679 = vmatprep.subr.bf16.mxu1 %v9204_v46  ;;  %v8731_v13 = vpack.c.bf16 %v7235_v12, %v7234_v11 }
 0xc87   : > { %6330 = vmatmul.mubr.f32.vlgmr.msra.gmra.mrb[30].mxu1 %v11392_v19  ;;  %v6352_v19 = vld [vmem:[%s11643_s13 + $0x58] sm:$0xff] }
 0xc88   : > { %8681 = vmatpush3.bf16.msra.mxu1 %v8680_v51  ;;  %v8695_v27 = vpack.c.bf16 %v6352_v19, %v6351_v42  ;;  %7558 = vmatprep.mubr.msk.f32.mxu1 %vm9207_vm6, %v11322_v16  ;;  %v7237_v51 = vld [vmem:[%s11643_s13 + $0x138] sm:$0xff] }
 0xc89   : > { %8682 = vmatprep.subr.bf16.mxu1 %v9204_v46  ;;  %v8734_v17 = vpack.c.bf16 %v7237_v51, %v7236_v49 }
 0xc8c   : > { %8684 = vmatpush3.bf16.msra.mxu1 %v8683_v59  ;;  %v7238_v59 = vld [vmem:[%s11643_s13 + $0x140] sm:$0xff] }
 0xc8d   : > { %8685 = vmatprep.subr.bf16.mxu1 %v9204_v46  ;;  %v8737_v9 = vpack.c.bf16 %v7239_v18, %v7238_v59 }
 0xc90   : > { %8687 = vmatpush3.bf16.msra.mxu1 %v8686_v20  ;;  %v7240_v20 = vld [vmem:[%s11643_s13 + $0x150] sm:$0xff] }
 0xc91   : > { %8688 = vmatprep.subr.bf16.mxu1 %v9204_v46  ;;  %v8740_v21 = vpack.c.bf16 %v7241_v23, %v7240_v20 }
 0xc94   : > { %8690 = vmatpush3.bf16.msra.mxu1 %v8689_v22  ;;  %v7242_v22 = vld [vmem:[%s11643_s13 + $0x160] sm:$0xff] }
 0xc95   : > { %8691 = vmatprep.subr.bf16.mxu1 %v9204_v46 }
 0xc98   : > { %8693 = vmatpush3.bf16.msra.mxu1 %v8692_v26 }
 0xc99   : > { %8694 = vmatprep.subr.bf16.mxu1 %v9204_v46 }
 0xc9c   : > { %8696 = vmatpush3.bf16.msra.mxu1 %v8695_v27 }
 0xc9d   : > { %8697 = vmatprep.subr.bf16.mxu1 %v9204_v46 }
 0xca0   : > { %8699 = vmatpush3.bf16.msra.mxu1 %v8698_v43 }
 0xca1   : > { %7556 = vmatprep.subr.mxu1 %v11322_v16 }
 0xca4   : > { %7557 = vmatpush3.msra.mxu1 %v6355_v28 }
 0xca5   : > { %8700 = vmatprep.subr.bf16.mxu1 %v9204_v46 }
 0xd1e   : > { %v6230_v29 = vpop.f32.mrb[28].mxu1 }
 0xd1f   : > { %v6232_v30 = vpop.f32.mrb[29].mxu1 }
 0xd5a   : > { %v6331_v44 = vpop.f32.mrb[30].mxu1 }
 0xd5b   : > { %v6335_v45 = vmax.f32 %v6230_v29, %v6331_v44  ;;  %v6333_v25 = vpop.f32.mrb[31].mxu1 }
 0xd5d   : > { %v6336_v32 = vmax.f32 %v6335_v45, 0.0 }
 0xd5f   : > { %6338 = vst.msk [vmem:[#allocation5] sm:$0x7] %vm6337_vm7, %v6336_v32 }
 0xd66   : > { %v6340_v36 = vld [vmem:[#allocation5] sm:$0x1]  ;;  %v6430_v6 = vld [vmem:[#allocation5 + $0x1] sm:$0x1]  ;;  %v6521_v24 = vld [vmem:[#allocation5 + $0x2] sm:$0x1] }
 0xd67   : > { %7559 = vmatmul.mubr.msk.f32.vlgmr.msra.gmra.mrb[32].mxu1 %vm3491_vm9, %v6340_v36 }
 0xd68   : > { %8702 = vmatpush3.bf16.msra.mxu1 %v8701_v56  ;;  %7591 = vmatprep.mubr.msk.f32.mxu1 %vm9207_vm6, %v11322_v16 }
 0xd69   : > { %8703 = vmatprep.subr.bf16.mxu1 %v9204_v46 }
 0xd6c   : > { %8705 = vmatpush3.bf16.msra.mxu1 %v8704_v47 }
 0xd6d   : > { %8706 = vmatprep.subr.bf16.mxu1 %v9204_v46 }
 0xd70   : > { %8708 = vmatpush3.bf16.msra.mxu1 %v8707_v48 }
 0xd71   : > { %8709 = vmatprep.subr.bf16.mxu1 %v9204_v46 }
 0xd74   : > { %8711 = vmatpush3.bf16.msra.mxu1 %v8710_v52 }
 0xd75   : > { %8712 = vmatprep.subr.bf16.mxu1 %v9204_v46 }
 0xd78   : > { %8714 = vmatpush3.bf16.msra.mxu1 %v8713_v8 }
 0xd79   : > { %8715 = vmatprep.subr.bf16.mxu1 %v9204_v46 }
 0xd7c   : > { %8717 = vmatpush3.bf16.msra.mxu1 %v8716_v0 }
 0xd7d   : > { %8718 = vmatprep.subr.bf16.mxu1 %v9204_v46 }
 0xd80   : > { %8720 = vmatpush3.bf16.msra.mxu1 %v8719_v61 }
 0xd81   : > { %7589 = vmatprep.subr.mxu1 %v11322_v16 }
 0xd84   : > { %7590 = vmatpush3.msra.mxu1 %v7226_v1 }
 0xd85   : > { %7592 = vmatmul.mubr.msk.f32.vlgmr.msra.gmra.mrb[32].mxu1 %vm3491_vm9, %v6430_v6  ;;  %8721 = vmatprep.subr.bf16.mxu1 %v9204_v46 }
 0xd86   : > { %8723 = vmatpush3.bf16.msra.mxu1 %v8722_v3  ;;  %7624 = vmatprep.mubr.msk.f32.mxu1 %vm9207_vm6, %v11322_v16 }
 0xd87   : > { %8724 = vmatprep.subr.bf16.mxu1 %v9204_v46 }
 0xd8a   : > { %8726 = vmatpush3.bf16.msra.mxu1 %v8725_v7 }
 0xd8b   : > { %8727 = vmatprep.subr.bf16.mxu1 %v9204_v46 }
 0xd8e   : > { %8729 = vmatpush3.bf16.msra.mxu1 %v8728_v31 }
 0xd8f   : > { %8730 = vmatprep.subr.bf16.mxu1 %v9204_v46 }
 0xd92   : > { %8732 = vmatpush3.bf16.msra.mxu1 %v8731_v13 }
 0xd93   : > { %8733 = vmatprep.subr.bf16.mxu1 %v9204_v46 }
 0xd96   : > { %8735 = vmatpush3.bf16.msra.mxu1 %v8734_v17 }
 0xd97   : > { %8736 = vmatprep.subr.bf16.mxu1 %v9204_v46 }
 0xd9a   : > { %8738 = vmatpush3.bf16.msra.mxu1 %v8737_v9 }
 0xd9b   : > { %8739 = vmatprep.subr.bf16.mxu1 %v9204_v46 }
 0xd9e   : > { %8741 = vmatpush3.bf16.msra.mxu1 %v8740_v21 }
 0xd9f   : > { %7622 = vmatprep.subr.mxu1 %v11322_v16 }
 0xda2   : > { %7623 = vmatpush3.msra.mxu1 %v7242_v22 }
 0xda3   : > { %7625 = vmatmul.mubr.msk.f32.vlgmr.msra.gmra.mrb[32].mxu1 %vm3491_vm9, %v6521_v24 }
 0xe76   : > { %v6607_v46 = vpop.f32.mrb[32].mxu1 }
 0xe77   : > { %v8746_v16 = vadd.f32 %v6607_v46, %v6339_v15  ;;  %v7626_v26 = vpop.f32.mrb[33].mxu1 }
 0xe79   : > { %6613 = vst.msk [vmem:[%s545_s20] sm:$0x1] %vm6612_vm8, %v8746_v16 }
 0xe7a   : > { %9124 = shalt.err (!%p9121_p5)
}
 0xe7b   : > { %s9125_s18 = scalar_lea.hbm %s11588_s23, 16  ;;  %s9129_s29 = scalar_lea.hbm %s11688_s30, 32 }
 0xe7c   : > { %p9126_p0 = scmp.ne.s32.totalorder %s11588_s23, %s9125_s18  ;;  %p9130_p10 = scmp.lt.u32.totalorder %s11588_s23, %s11688_s30 }
 0xe7d   : > { %p9131_p12 = scmp.lt.u32.totalorder %s9129_s29, %s9125_s18  ;;  %p9133_p2 = scmp.lt.u32.totalorder %s9125_s18, %s11588_s23 }
 0xe7e   : > { %p9127_p6 = pnand %p9126_p0, %p11689_p3 }
 0xe7f   : > { %p9132_p1 = por %p9131_p12, %p9130_p10 }
 0xe80   : > { %p9128_p9 = pneg %p9127_p6 }
 0xe81   : > { %p9134_p4 = por %p9133_p2, %p9132_p1 }
 0xe83   : > { %p9135_p7 = pnand %p9134_p4, %p9128_p9 }
 0xe85   : > { %9138 = shalt.err (!%p9135_p7)
}
 0xe86   : > { %8915 = dma.vmem_to_hbm [thread:$0]  (%p11689_p3), %s11590_s26, 16, %s11588_s23, %s6615_s19  }
 0xe87 PF: > { %s11690_s20 = sld [smem:[#allocation22_spill]]  ;;  %s11691_s27 = sld [smem:[#allocation19_spill]] }
 0xe88   : > { %s11692_s5 = sld [smem:[#allocation26_spill]] }
 0xe8d   : > { %p8942_p8 = scmp.ge.s32.totalorder %s11690_s20, 2  ;;  %s6639_s16 = sand.u32 1, %s11691_s27  }
 0xe8e   : > { %p11693_p11 = scmp.ne.s32.totalorder %s11692_s5, 0  ;;  %s6640_s22 = scalar_lea.sflag [#allocation8], %s6639_s16 }
 0xe90   : > { %p8931_p13 = pnand %p8942_p8, %p11693_p11 }
 0xe92   : > { %9168 = dma.done.wait (!%p8931_p13), %s6640_s22, 16  }
 0xe93   : > { %9170 = vsyncadd (!%p8931_p13), %s6640_s22, 4294967280  ;;  %s11694_s21 = sld [smem:[#allocation23_spill]]  ;;  %s11695_s18 = sld [smem:[#allocation20_spill]] }
 0xe94   : > { %s11696_s19 = sld [smem:[#allocation21_spill]]  ;;  %s11697_s20 = sld [smem:[#allocation24_spill]] }
 0xe99   : > { %p28_p5 = scmp.ge.s32.totalorder %s11694_s21, 4  }
 0xe9b   :  { %30 = sbr.rel (!%p28_p5) target bundleno = 10 (0xa), region = 164 }
 0xea2   :  { %6644 = vsyncpa [#allocation7], 1 }
 0xea3   :  { %6646 = vsyncpa [#allocation7 + $0x1], 1 }
 0xea4   :  { %6647 = vsyncpa [#allocation10], 1 }
 0xea5   :  { %6648 = vsyncpa [#allocation13], 1 }
 0xea6   :  { %6649 = vsyncpa [#allocation8], 1 }
 0xea7   :  { %6651 = vsyncpa [#allocation8 + $0x1], 1 }

</bundles_post_ra>
